<compile_context>
chip_gen: v7x
topology: tpu7x:2x2x1
jax: 0.10.0
libtpu: 0.0.40
codegen_flags: <defaults>
</compile_context>

<pallas_src>
import jax
import jax.numpy as jnp
from jax.experimental import pallas as pl
from jax.experimental.pallas import tpu as pltpu

# Layer sizes from the PyTorch module.
DIMS = [32 * 32 * 3, 512, 256, 128, 64, 10]
# Lane-padded layer sizes (last two widths padded 64 -> 128, 10 -> 128 for lane-dense
# MXU tiles and an unmasked output store).
PAD_DIMS = [32 * 32 * 3, 512, 256, 128, 128, 128]


def _round_up(n, m):
    return ((n + m - 1) // m) * m


def _mlp_kernel(x_ref,
                w1_ref, b1_ref,
                w2_ref, b2_ref,
                w3_ref, b3_ref,
                w4_ref, b4_ref,
                w5_ref, b5_ref,
                o_ref):
    """Fused 5-layer MLP on one batch tile: (Linear+ReLU) x4 then Linear.

    Matmuls: bf16 operands, f32 accumulation on the MXU. Bias add / ReLU on the VPU in
    f32, then a single cast back to bf16 for the next layer. Weights/biases are
    grid-invariant (resident in VMEM across batch tiles).
    """

    def hidden(h, w_ref, b_ref):
        y = jnp.dot(h, w_ref[...], preferred_element_type=jnp.float32) + b_ref[...]
        return jnp.maximum(y, 0.0).astype(jnp.bfloat16)

    h = x_ref[...]                    # [TB, 3072] bf16
    h = hidden(h, w1_ref, b1_ref)     # [TB, 512]  bf16
    h = hidden(h, w2_ref, b2_ref)     # [TB, 256]  bf16
    h = hidden(h, w3_ref, b3_ref)     # [TB, 128]  bf16
    h = hidden(h, w4_ref, b4_ref)     # [TB, 128]  bf16 (cols 64..127 are zero)
    # Final layer: f32 result, lane-dense 128-wide store (cols 10..127 are zero).
    o_ref[...] = jnp.dot(h, w5_ref[...],
                         preferred_element_type=jnp.float32) + b5_ref[...]


def pack_params(params):
    """One-time packing: cast weights to bf16 and zero-pad widths to PAD_DIMS.

    Call this ONCE at parameter-load time (outside the per-step forward) and pass the
    result to fully_connected_network.
    """
    packed = []
    for i, (w, b) in enumerate(params):
        in_d, out_d = w.shape
        in_p, out_p = PAD_DIMS[i], PAD_DIMS[i + 1]
        w_p = jnp.zeros((in_p, out_p), jnp.bfloat16)
        w_p = w_p.at[:in_d, :out_d].set(w.astype(jnp.bfloat16))
        b_p = jnp.zeros((1, out_p), jnp.float32)
        b_p = b_p.at[:, :out_d].set(b.reshape(1, -1).astype(jnp.float32))
        packed.append((w_p, b_p))
    return packed


def _choose_tb(B):
    """Batch-tile rows: multiple of 8 sublanes, capped at 512; >=2 tiles for B > 16 so
    the 'parallel' grid axis can use both TensorCores on v7x."""
    if B <= 16:
        return _round_up(B, 8)
    return min(512, _round_up((B + 1) // 2, 8))


@jax.jit
def fully_connected_network(x, packed_params):
    """x: [B, 3, 32, 32] (any float dtype). packed_params: output of pack_params()."""
    B = x.shape[0]
    # Row-major flatten (== torch .view(B, -1)) fused with a single f32->bf16 cast.
    x_flat = x.reshape(B, -1).astype(jnp.bfloat16)

    TB = _choose_tb(B)
    grid = (pl.cdiv(B, TB),)   # ragged tail block handled by the pipeline (masked)

    flat_args = [x_flat]
    for w_p, b_p in packed_params:
        flat_args.append(w_p)
        flat_args.append(b_p)

    # x / out tiles march over the batch; weights & biases are grid-invariant.
    in_specs = [pl.BlockSpec((TB, PAD_DIMS[0]), lambda i: (i, 0))]
    for w_p, b_p in packed_params:
        in_specs.append(pl.BlockSpec(w_p.shape, lambda i: (0, 0)))
        in_specs.append(pl.BlockSpec(b_p.shape, lambda i: (0, 0)))
    out_spec = pl.BlockSpec((TB, PAD_DIMS[-1]), lambda i: (i, 0))

    flops = 2 * B * sum(PAD_DIMS[i] * PAD_DIMS[i + 1] for i in range(5))
    bytes_accessed = (
        B * PAD_DIMS[0] * 2                                     # x in (bf16)
        + sum(int(w.size) * 2 + int(b.size) * 4
              for w, b in packed_params)                         # weights bf16 + biases f32
        + B * PAD_DIMS[-1] * 4                                   # out (f32)
    )

    out_padded = pl.pallas_call(
        _mlp_kernel,
        out_shape=jax.ShapeDtypeStruct((B, PAD_DIMS[-1]), jnp.float32),
        grid=grid,
        in_specs=in_specs,
        out_specs=out_spec,
        compiler_params=pltpu.CompilerParams(
            dimension_semantics=("parallel",),
            vmem_limit_bytes=32 << 20,
        ),
        cost_estimate=pl.CostEstimate(
            flops=flops, transcendentals=0, bytes_accessed=bytes_accessed),
    )(*flat_args)

    return out_padded[:, :DIMS[-1]]


def init_params(key):
    """Deterministic init mirroring nn.Linear's default U(-1/sqrt(fan_in), +1/sqrt(fan_in))."""
    params = []
    for i in range(len(DIMS) - 1):
        fan_in, fan_out = DIMS[i], DIMS[i + 1]
        key, kw, kb = jax.random.split(key, 3)
        bound = 1.0 / (fan_in ** 0.5)
        # Stored as (in, out) so the kernel does x @ W; equivalent to torch's W.T.
        w = jax.random.uniform(kw, (fan_in, fan_out), jnp.float32, -bound, bound)
        b = jax.random.uniform(kb, (1, fan_out), jnp.float32, -bound, bound)
        params.append((w, b))
    return params


def _reference(x, params):
    """Plain-JAX reference using the same bf16-operand / f32-accumulate arithmetic."""
    h = x.reshape(x.shape[0], -1).astype(jnp.bfloat16)
    y = None
    for i, (w, b) in enumerate(params):
        y = jnp.dot(h, w.astype(jnp.bfloat16),
                    preferred_element_type=jnp.float32) + b
        if i < len(params) - 1:
            h = jnp.maximum(y, 0.0).astype(jnp.bfloat16)
    return y


if __name__ == "__main__":
    key = jax.random.PRNGKey(0)
    key, kx = jax.random.split(key)

    # CIFAR-10-shaped input (NCHW), small batch.
    x = jax.random.normal(kx, (2, 3, 32, 32), dtype=jnp.float32)
    params = init_params(key)
    packed = pack_params(params)   # one-time weight packing (hoisted out of forward)

    out = fully_connected_network(x, packed)
    out = jax.block_until_ready(out)

    ref = _reference(x, params)
    assert out.shape == (2, 10), out.shape
    assert jnp.allclose(out, ref, atol=1e-3, rtol=1e-3), "mismatch vs reference"

    print("KERNEL_OK")
</pallas_src>

<mosaic_0001>
module attributes {stable_mosaic.version = 11 : i64} {
  func.func @_mlp_kernel(%arg0: i32, %arg1: memref<8x3072xbf16, #tpu.memory_space<vmem>>, %arg2: memref<3072x512xbf16, #tpu.memory_space<vmem>>, %arg3: memref<1x512xf32, #tpu.memory_space<vmem>>, %arg4: memref<512x256xbf16, #tpu.memory_space<vmem>>, %arg5: memref<1x256xf32, #tpu.memory_space<vmem>>, %arg6: memref<256x128xbf16, #tpu.memory_space<vmem>>, %arg7: memref<1x128xf32, #tpu.memory_space<vmem>>, %arg8: memref<128x128xbf16, #tpu.memory_space<vmem>>, %arg9: memref<1x128xf32, #tpu.memory_space<vmem>>, %arg10: memref<128x128xbf16, #tpu.memory_space<vmem>>, %arg11: memref<1x128xf32, #tpu.memory_space<vmem>>, %arg12: memref<8x128xf32, #tpu.memory_space<vmem>>) attributes {dimension_semantics = [#tpu.dimension_semantics<parallel>], iteration_bounds = array<i64: 1>, scalar_prefetch = 0 : i64, scratch_operands = 0 : i64, tpu.core_type = #tpu.core_type<tc>, window_params = [{transform_indices = @transform_0, window_bounds = array<i64: 8, 3072>}, {pipeline_mode = #tpu.pipeline_mode<synchronous>, transform_indices = @transform_1, window_bounds = array<i64: 3072, 512>}, {pipeline_mode = #tpu.pipeline_mode<synchronous>, transform_indices = @transform_2, window_bounds = array<i64: 1, 512>}, {pipeline_mode = #tpu.pipeline_mode<synchronous>, transform_indices = @transform_3, window_bounds = array<i64: 512, 256>}, {pipeline_mode = #tpu.pipeline_mode<synchronous>, transform_indices = @transform_4, window_bounds = array<i64: 1, 256>}, {pipeline_mode = #tpu.pipeline_mode<synchronous>, transform_indices = @transform_5, window_bounds = array<i64: 256, 128>}, {pipeline_mode = #tpu.pipeline_mode<synchronous>, transform_indices = @transform_6, window_bounds = array<i64: 1, 128>}, {pipeline_mode = #tpu.pipeline_mode<synchronous>, transform_indices = @transform_7, window_bounds = array<i64: 128, 128>}, {pipeline_mode = #tpu.pipeline_mode<synchronous>, transform_indices = @transform_8, window_bounds = array<i64: 1, 128>}, {pipeline_mode = #tpu.pipeline_mode<synchronous>, transform_indices = @transform_9, window_bounds = array<i64: 128, 128>}, {pipeline_mode = #tpu.pipeline_mode<synchronous>, transform_indices = @transform_10, window_bounds = array<i64: 1, 128>}, {transform_indices = @transform_11, window_bounds = array<i64: 8, 128>}]} {
    %c0 = arith.constant 0 : index
    %c0_0 = arith.constant 0 : index
    %0 = vector.load %arg1[%c0, %c0_0] : memref<8x3072xbf16, #tpu.memory_space<vmem>>, vector<8x3072xbf16>
    %c0_1 = arith.constant 0 : index
    %c0_2 = arith.constant 0 : index
    %1 = vector.load %arg2[%c0_1, %c0_2] : memref<3072x512xbf16, #tpu.memory_space<vmem>>, vector<3072x512xbf16>
    %cst = arith.constant dense<0.000000e+00> : vector<8x512xf32>
    %2 = tpu.matmul %0, %1, %cst {dimension_numbers = #tpu.dot_dimension_numbers<[1], [0], [0], [1], [0, 0, 1, 1], [], []>} : vector<8x3072xbf16>, vector<3072x512xbf16>, vector<8x512xf32> -> vector<8x512xf32>
    %c0_3 = arith.constant 0 : index
    %c0_4 = arith.constant 0 : index
    %3 = vector.load %arg3[%c0_3, %c0_4] : memref<1x512xf32, #tpu.memory_space<vmem>>, vector<1x512xf32>
    %4 = vector.broadcast %3 : vector<1x512xf32> to vector<8x512xf32>
    %5 = arith.addf %2, %4 : vector<8x512xf32>
    %cst_5 = arith.constant 0.000000e+00 : f32
    %6 = vector.broadcast %cst_5 : f32 to vector<8x512xf32>
    %7 = arith.maximumf %5, %6 : vector<8x512xf32>
    %8 = arith.truncf %7 : vector<8x512xf32> to vector<8x512xbf16>
    %c0_6 = arith.constant 0 : index
    %c0_7 = arith.constant 0 : index
    %9 = vector.load %arg4[%c0_6, %c0_7] : memref<512x256xbf16, #tpu.memory_space<vmem>>, vector<512x256xbf16>
    %cst_8 = arith.constant dense<0.000000e+00> : vector<8x256xf32>
    %10 = tpu.matmul %8, %9, %cst_8 {dimension_numbers = #tpu.dot_dimension_numbers<[1], [0], [0], [1], [0, 0, 1, 1], [], []>} : vector<8x512xbf16>, vector<512x256xbf16>, vector<8x256xf32> -> vector<8x256xf32>
    %c0_9 = arith.constant 0 : index
    %c0_10 = arith.constant 0 : index
    %11 = vector.load %arg5[%c0_9, %c0_10] : memref<1x256xf32, #tpu.memory_space<vmem>>, vector<1x256xf32>
    %12 = vector.broadcast %11 : vector<1x256xf32> to vector<8x256xf32>
    %13 = arith.addf %10, %12 : vector<8x256xf32>
    %cst_11 = arith.constant 0.000000e+00 : f32
    %14 = vector.broadcast %cst_11 : f32 to vector<8x256xf32>
    %15 = arith.maximumf %13, %14 : vector<8x256xf32>
    %16 = arith.truncf %15 : vector<8x256xf32> to vector<8x256xbf16>
    %c0_12 = arith.constant 0 : index
    %c0_13 = arith.constant 0 : index
    %17 = vector.load %arg6[%c0_12, %c0_13] : memref<256x128xbf16, #tpu.memory_space<vmem>>, vector<256x128xbf16>
    %cst_14 = arith.constant dense<0.000000e+00> : vector<8x128xf32>
    %18 = tpu.matmul %16, %17, %cst_14 {dimension_numbers = #tpu.dot_dimension_numbers<[1], [0], [0], [1], [0, 0, 1, 1], [], []>} : vector<8x256xbf16>, vector<256x128xbf16>, vector<8x128xf32> -> vector<8x128xf32>
    %c0_15 = arith.constant 0 : index
    %c0_16 = arith.constant 0 : index
    %19 = vector.load %arg7[%c0_15, %c0_16] : memref<1x128xf32, #tpu.memory_space<vmem>>, vector<1x128xf32>
    %20 = vector.broadcast %19 : vector<1x128xf32> to vector<8x128xf32>
    %21 = arith.addf %18, %20 : vector<8x128xf32>
    %cst_17 = arith.constant 0.000000e+00 : f32
    %22 = vector.broadcast %cst_17 : f32 to vector<8x128xf32>
    %23 = arith.maximumf %21, %22 : vector<8x128xf32>
    %24 = arith.truncf %23 : vector<8x128xf32> to vector<8x128xbf16>
    %c0_18 = arith.constant 0 : index
    %c0_19 = arith.constant 0 : index
    %25 = vector.load %arg8[%c0_18, %c0_19] : memref<128x128xbf16, #tpu.memory_space<vmem>>, vector<128x128xbf16>
    %cst_20 = arith.constant dense<0.000000e+00> : vector<8x128xf32>
    %26 = tpu.matmul %24, %25, %cst_20 {dimension_numbers = #tpu.dot_dimension_numbers<[1], [0], [0], [1], [0, 0, 1, 1], [], []>} : vector<8x128xbf16>, vector<128x128xbf16>, vector<8x128xf32> -> vector<8x128xf32>
    %c0_21 = arith.constant 0 : index
    %c0_22 = arith.constant 0 : index
    %27 = vector.load %arg9[%c0_21, %c0_22] : memref<1x128xf32, #tpu.memory_space<vmem>>, vector<1x128xf32>
    %28 = vector.broadcast %27 : vector<1x128xf32> to vector<8x128xf32>
    %29 = arith.addf %26, %28 : vector<8x128xf32>
    %cst_23 = arith.constant 0.000000e+00 : f32
    %30 = vector.broadcast %cst_23 : f32 to vector<8x128xf32>
    %31 = arith.maximumf %29, %30 : vector<8x128xf32>
    %32 = arith.truncf %31 : vector<8x128xf32> to vector<8x128xbf16>
    %c0_24 = arith.constant 0 : index
    %c0_25 = arith.constant 0 : index
    %33 = vector.load %arg10[%c0_24, %c0_25] : memref<128x128xbf16, #tpu.memory_space<vmem>>, vector<128x128xbf16>
    %cst_26 = arith.constant dense<0.000000e+00> : vector<8x128xf32>
    %34 = tpu.matmul %32, %33, %cst_26 {dimension_numbers = #tpu.dot_dimension_numbers<[1], [0], [0], [1], [0, 0, 1, 1], [], []>} : vector<8x128xbf16>, vector<128x128xbf16>, vector<8x128xf32> -> vector<8x128xf32>
    %c0_27 = arith.constant 0 : index
    %c0_28 = arith.constant 0 : index
    %35 = vector.load %arg11[%c0_27, %c0_28] : memref<1x128xf32, #tpu.memory_space<vmem>>, vector<1x128xf32>
    %36 = vector.broadcast %35 : vector<1x128xf32> to vector<8x128xf32>
    %37 = arith.addf %34, %36 : vector<8x128xf32>
    %c0_29 = arith.constant 0 : index
    %c0_30 = arith.constant 0 : index
    %38 = vector.load %arg12[%c0_29, %c0_30] : memref<8x128xf32, #tpu.memory_space<vmem>>, vector<8x128xf32>
    tpu.vector_store %arg12[%c0_29, %c0_30], %37 {strides = array<i32>} : memref<8x128xf32, #tpu.memory_space<vmem>>, vector<8x128xf32>,
    return
  }
  func.func @transform_0(%arg0: i32) -> (i32, i32) {
    %c0_i32 = arith.constant 0 : i32
    %c0_i32_0 = arith.constant 0 : i32
    return %arg0, %c0_i32 : i32, i32
  }
  func.func @transform_1(%arg0: i32) -> (i32, i32) {
    %c0_i32 = arith.constant 0 : i32
    %c0_i32_0 = arith.constant 0 : i32
    %c0_i32_1 = arith.constant 0 : i32
    return %c0_i32, %c0_i32_0 : i32, i32
  }
  func.func @transform_2(%arg0: i32) -> (i32, i32) {
    %c0_i32 = arith.constant 0 : i32
    %c0_i32_0 = arith.constant 0 : i32
    %c0_i32_1 = arith.constant 0 : i32
    return %c0_i32, %c0_i32_0 : i32, i32
  }
  func.func @transform_3(%arg0: i32) -> (i32, i32) {
    %c0_i32 = arith.constant 0 : i32
    %c0_i32_0 = arith.constant 0 : i32
    %c0_i32_1 = arith.constant 0 : i32
    return %c0_i32, %c0_i32_0 : i32, i32
  }
  func.func @transform_4(%arg0: i32) -> (i32, i32) {
    %c0_i32 = arith.constant 0 : i32
    %c0_i32_0 = arith.constant 0 : i32
    %c0_i32_1 = arith.constant 0 : i32
    return %c0_i32, %c0_i32_0 : i32, i32
  }
  func.func @transform_5(%arg0: i32) -> (i32, i32) {
    %c0_i32 = arith.constant 0 : i32
    %c0_i32_0 = arith.constant 0 : i32
    %c0_i32_1 = arith.constant 0 : i32
    return %c0_i32, %c0_i32_0 : i32, i32
  }
  func.func @transform_6(%arg0: i32) -> (i32, i32) {
    %c0_i32 = arith.constant 0 : i32
    %c0_i32_0 = arith.constant 0 : i32
    %c0_i32_1 = arith.constant 0 : i32
    return %c0_i32, %c0_i32_0 : i32, i32
  }
  func.func @transform_7(%arg0: i32) -> (i32, i32) {
    %c0_i32 = arith.constant 0 : i32
    %c0_i32_0 = arith.constant 0 : i32
    %c0_i32_1 = arith.constant 0 : i32
    return %c0_i32, %c0_i32_0 : i32, i32
  }
  func.func @transform_8(%arg0: i32) -> (i32, i32) {
    %c0_i32 = arith.constant 0 : i32
    %c0_i32_0 = arith.constant 0 : i32
    %c0_i32_1 = arith.constant 0 : i32
    return %c0_i32, %c0_i32_0 : i32, i32
  }
  func.func @transform_9(%arg0: i32) -> (i32, i32) {
    %c0_i32 = arith.constant 0 : i32
    %c0_i32_0 = arith.constant 0 : i32
    %c0_i32_1 = arith.constant 0 : i32
    return %c0_i32, %c0_i32_0 : i32, i32
  }
  func.func @transform_10(%arg0: i32) -> (i32, i32) {
    %c0_i32 = arith.constant 0 : i32
    %c0_i32_0 = arith.constant 0 : i32
    %c0_i32_1 = arith.constant 0 : i32
    return %c0_i32, %c0_i32_0 : i32, i32
  }
  func.func @transform_11(%arg0: i32) -> (i32, i32) {
    %c0_i32 = arith.constant 0 : i32
    %c0_i32_0 = arith.constant 0 : i32
    return %arg0, %c0_i32 : i32, i32
  }
}

</mosaic_0001>

<bundles_post_ra>
// kernel: fully_connected_network.1
= control target key start
LH: loop header
LB: loop body
LE: loop exit
PB: predicated region body
PF: predicated region fallthrough
CT: control target
= control target key end

     0   :  { %16 = vsyncpa [#allocation3], 0  ;;  %s10000_s0 = inlined_call_operand.vmem [shape: bf16[2,3072], index: 0, kind: input, shape index: {}]   ;;  %s10001_s1 = inlined_call_operand.hbm [shape: bf16[3072,512], index: 1, kind: input, shape index: {}]   ;;  %s10002_s2 = inlined_call_operand.hbm [shape: f32[1,512], index: 2, kind: input, shape index: {}]   ;;  %s10003_s3 = inlined_call_operand.hbm [shape: bf16[512,256], index: 3, kind: input, shape index: {}]   ;;  %s10004_s4 = inlined_call_operand.hbm [shape: f32[1,256], index: 4, kind: input, shape index: {}]   ;;  %s10005_s5 = inlined_call_operand.hbm [shape: bf16[256,128], index: 5, kind: input, shape index: {}]   ;;  %s10006_s6 = inlined_call_operand.hbm [shape: f32[1,128], index: 6, kind: input, shape index: {}]   ;;  %s10007_s7 = inlined_call_operand.hbm [shape: bf16[128,128], index: 7, kind: input, shape index: {}]   ;;  %s10008_s8 = inlined_call_operand.hbm [shape: f32[1,128], index: 8, kind: input, shape index: {}]   ;;  %s10009_s9 = inlined_call_operand.hbm [shape: bf16[128,128], index: 9, kind: input, shape index: {}]   ;;  %s10010_s10 = inlined_call_operand.hbm [shape: f32[1,128], index: 10, kind: input, shape index: {}]   ;;  %s10011_s11 = inlined_call_operand.hbm [shape: f32[2,128], index: 11, kind: output, shape index: {}]  }
   0x1   :  { %17 = vsyncpa [#allocation6], 0 }
   0x2   :  { %18 = vsyncpa [#allocation9], 0 }
   0x3   :  { %19 = vsyncpa [#allocation12], 0 }
   0x4   :  { %20 = vsyncpa [#allocation15], 0 }
   0x5   :  { %21 = vsyncpa [#allocation18], 0 }
   0x6   :  { %22 = vsyncpa [#allocation4], 0  ;;  %s9567_s17 = smov [#allocation5]   ;;  %s9568_s19 = smov [#allocation8]  }
   0x7   :  { %s43_s18 = sshll.u32 %s9567_s17, 4  ;;  %s65_s20 = sshll.u32 %s9568_s19, 4  ;;  %s44_s18 = int_to_ptr.vmem [resolvable:$true] %s43_s18  ;;  %s66_s20 = int_to_ptr.vmem [resolvable:$true] %s65_s20 }
   0x8   :  { %s9311_s23 = scalar_lea.hbm %s10002_s2, 64 }
   0x9   :  { %p9312_p0 = scmp.ne.s32.totalorder %s10002_s2, %s9311_s23  ;;  %p9315_p1 = scmp.lt.u32.totalorder %s9311_s23, %s10002_s2 }
   0xb   :  { %p9317_p2 = pnand %p9315_p1, %p9312_p0 }
   0xd   :  { %9320 = shalt.err (!%p9317_p2)
}
   0xe   :  { %s9321_s28 = scalar_lea.vmem %s44_s18, 64  ;;  %p9326_p4 = scmp.lt.s32.totalorder %s44_s18, %s44_s18 }
   0xf   :  { %p9322_p3 = scmp.ne.s32.totalorder %s44_s18, %s9321_s28  ;;  %p9327_p5 = scmp.lt.s32.totalorder %s9321_s28, %s9321_s28 }
  0x11   :  { %p9328_p6 = por %p9327_p5, %p9326_p4 }
  0x13   :  { %p9329_p7 = pnand %p9328_p6, %p9322_p3 }
  0x15   :  { %9332 = shalt.err (!%p9329_p7)
}
  0x16   :  { %46 = dma.hbm_to_vmem [thread:$0]  %s10002_s2, 64, %s44_s18, [#allocation6]  }
  0x17   :  { %s9333_s14 = scalar_lea.hbm %s10004_s4, 32 }
  0x18   :  { %p9334_p8 = scmp.ne.s32.totalorder %s10004_s4, %s9333_s14  ;;  %p9337_p9 = scmp.lt.u32.totalorder %s9333_s14, %s10004_s4 }
  0x1a   :  { %p9339_p10 = pnand %p9337_p9, %p9334_p8 }
  0x1c   :  { %9342 = shalt.err (!%p9339_p10)
}
  0x1d   :  { %s9343_s21 = scalar_lea.vmem %s66_s20, 32  ;;  %p9348_p12 = scmp.lt.s32.totalorder %s66_s20, %s66_s20 }
  0x1e   :  { %p9344_p11 = scmp.ne.s32.totalorder %s66_s20, %s9343_s21  ;;  %p9349_p13 = scmp.lt.s32.totalorder %s9343_s21, %s9343_s21 }
  0x20   :  { %p9350_p0 = por %p9349_p13, %p9348_p12 }
  0x22   :  { %p9351_p1 = pnand %p9350_p0, %p9344_p11 }
  0x24   :  { %9354 = shalt.err (!%p9351_p1)
}
  0x25   :  { %68 = dma.hbm_to_vmem [thread:$0]  %s10004_s4, 32, %s66_s20, [#allocation9]  }
  0x26   :  { %s9569_s22 = smov [#allocation11]   ;;  %s9570_s24 = smov [#allocation14]  }
  0x27   :  { %s87_s23 = sshll.u32 %s9569_s22, 4  ;;  %s109_s25 = sshll.u32 %s9570_s24, 4  ;;  %s88_s23 = int_to_ptr.vmem [resolvable:$true] %s87_s23  ;;  %s110_s25 = int_to_ptr.vmem [resolvable:$true] %s109_s25 }
  0x28   :  { %s9355_s28 = scalar_lea.hbm %s10006_s6, 16 }
  0x29   :  { %p9356_p2 = scmp.ne.s32.totalorder %s10006_s6, %s9355_s28  ;;  %p9359_p3 = scmp.lt.u32.totalorder %s9355_s28, %s10006_s6 }
  0x2b   :  { %p9361_p4 = pnand %p9359_p3, %p9356_p2 }
  0x2d   :  { %9364 = shalt.err (!%p9361_p4)
}
  0x2e   :  { %s9365_s4 = scalar_lea.vmem %s88_s23, 16  ;;  %s9369_s20 = scalar_lea.vmem %s88_s23, 32 }
  0x2f   :  { %p9366_p5 = scmp.ne.s32.totalorder %s88_s23, %s9365_s4  ;;  %p9370_p6 = scmp.lt.s32.totalorder %s88_s23, %s88_s23 }
  0x30   :  { %p9371_p7 = scmp.lt.s32.totalorder %s9369_s20, %s9365_s4 }
  0x32   :  { %p9372_p8 = por %p9371_p7, %p9370_p6 }
  0x34   :  { %p9373_p9 = pnand %p9372_p8, %p9366_p5 }
  0x36   :  { %9376 = shalt.err (!%p9373_p9)
}
  0x37   :  { %90 = dma.hbm_to_vmem [thread:$0]  %s10006_s6, 16, %s88_s23, [#allocation12]  }
  0x38   :  { %s9377_s19 = scalar_lea.hbm %s10008_s8, 16 }
  0x39   :  { %p9378_p10 = scmp.ne.s32.totalorder %s10008_s8, %s9377_s19  ;;  %p9381_p11 = scmp.lt.u32.totalorder %s9377_s19, %s10008_s8 }
  0x3b   :  { %p9383_p12 = pnand %p9381_p11, %p9378_p10 }
  0x3d   :  { %9386 = shalt.err (!%p9383_p12)
}
  0x3e   :  { %s9387_s24 = scalar_lea.vmem %s110_s25, 16  ;;  %s9391_s26 = scalar_lea.vmem %s110_s25, 32 }
  0x3f   :  { %p9388_p13 = scmp.ne.s32.totalorder %s110_s25, %s9387_s24  ;;  %p9392_p0 = scmp.lt.s32.totalorder %s110_s25, %s110_s25 }
  0x40   :  { %p9393_p1 = scmp.lt.s32.totalorder %s9391_s26, %s9387_s24 }
  0x42   :  { %p9394_p2 = por %p9393_p1, %p9392_p0 }
  0x44   :  { %p9395_p3 = pnand %p9394_p2, %p9388_p13 }
  0x46   :  { %9398 = shalt.err (!%p9395_p3)
}
  0x47   :  { %112 = dma.hbm_to_vmem [thread:$0]  %s10008_s8, 16, %s110_s25, [#allocation15]  }
  0x48   :  { %s9571_s27 = smov [#allocation2]   ;;  %s9399_s12 = scalar_lea.hbm %s10001_s1, 98304 }
  0x49   :  { %s30_s28 = sshll.u32 %s9571_s27, 4  ;;  %p9400_p4 = scmp.ne.s32.totalorder %s10001_s1, %s9399_s12  ;;  %s31_s28 = int_to_ptr.vmem [resolvable:$true] %s30_s28 }
  0x4a   :  { %p9403_p5 = scmp.lt.u32.totalorder %s9399_s12, %s10001_s1 }
  0x4c   :  { %p9405_p6 = pnand %p9403_p5, %p9400_p4 }
  0x4e   :  { %9408 = shalt.err (!%p9405_p6)
}
  0x4f   :  { %s9409_s15 = scalar_lea.vmem %s31_s28, 98304  ;;  %p9414_p8 = scmp.lt.s32.totalorder %s31_s28, %s31_s28 }
  0x50   :  { %p9410_p7 = scmp.ne.s32.totalorder %s31_s28, %s9409_s15  ;;  %p9415_p9 = scmp.lt.s32.totalorder %s9409_s15, %s9409_s15 }
  0x52   :  { %p9416_p10 = por %p9415_p9, %p9414_p8 }
  0x54   :  { %p9417_p11 = pnand %p9416_p10, %p9410_p7 }
  0x56   :  { %9420 = shalt.err (!%p9417_p11)
}
  0x57   :  { %s9572_s8 = smov 256   ;;  %s9573_s25 = smov 16  }
  0x58   :  { %36 = dma.hbm_to_vmem [thread:$0]  %s10001_s1, 98304, %s31_s28, [#allocation3], %s9572_s8, %s9572_s8, %s9573_s25  }
  0x59   :  { %s9574_s19 = smov [#allocation7]   ;;  %s9421_s22 = scalar_lea.hbm %s10003_s3, 8192 }
  0x5a   :  { %s52_s21 = sshll.u32 %s9574_s19, 4  ;;  %p9422_p12 = scmp.ne.s32.totalorder %s10003_s3, %s9421_s22  ;;  %s53_s21 = int_to_ptr.vmem [resolvable:$true] %s52_s21 }
  0x5b   :  { %p9425_p13 = scmp.lt.u32.totalorder %s9421_s22, %s10003_s3 }
  0x5d   :  { %p9427_p0 = pnand %p9425_p13, %p9422_p12 }
  0x5f   :  { %9430 = shalt.err (!%p9427_p0)
}
  0x60   :  { %s9431_s27 = scalar_lea.vmem %s53_s21, 8192  ;;  %p9436_p2 = scmp.lt.s32.totalorder %s53_s21, %s53_s21 }
  0x61   :  { %p9432_p1 = scmp.ne.s32.totalorder %s53_s21, %s9431_s27  ;;  %p9437_p3 = scmp.lt.s32.totalorder %s9431_s27, %s9431_s27 }
  0x63   :  { %p9438_p4 = por %p9437_p3, %p9436_p2 }
  0x65   :  { %p9439_p5 = pnand %p9438_p4, %p9432_p1 }
  0x67   :  { %9442 = shalt.err (!%p9439_p5)
}
  0x68   :  { %s9575_s1 = smov 128   ;;  %s9576_s28 = smov 8  }
  0x69   :  { %58 = dma.hbm_to_vmem [thread:$0]  %s10003_s3, 8192, %s53_s21, [#allocation6], %s9575_s1, %s9575_s1, %s9576_s28  }
  0x6a   :  { %s9577_s12 = smov [#allocation10]   ;;  %s9443_s14 = scalar_lea.hbm %s10005_s5, 2048 }
  0x6b   :  { %s74_s13 = sshll.u32 %s9577_s12, 4  ;;  %p9444_p6 = scmp.ne.s32.totalorder %s10005_s5, %s9443_s14  ;;  %s75_s13 = int_to_ptr.vmem [resolvable:$true] %s74_s13 }
  0x6c   :  { %p9447_p7 = scmp.lt.u32.totalorder %s9443_s14, %s10005_s5 }
  0x6e   :  { %p9449_p8 = pnand %p9447_p7, %p9444_p6 }
  0x70   :  { %9452 = shalt.err (!%p9449_p8)
}
  0x71   :  { %s9453_s17 = scalar_lea.vmem %s75_s13, 2048  ;;  %p9458_p10 = scmp.lt.s32.totalorder %s75_s13, %s75_s13 }
  0x72   :  { %p9454_p9 = scmp.ne.s32.totalorder %s75_s13, %s9453_s17  ;;  %p9459_p11 = scmp.lt.s32.totalorder %s9453_s17, %s9453_s17 }
  0x74   :  { %p9460_p12 = por %p9459_p11, %p9458_p10 }
  0x76   :  { %p9461_p13 = pnand %p9460_p12, %p9454_p9 }
  0x78   :  { %9464 = shalt.err (!%p9461_p13)
}
  0x79   :  { %s9578_s3 = smov 64   ;;  %s9579_s19 = smov 4  }
  0x7a   :  { %80 = dma.hbm_to_vmem [thread:$0]  %s10005_s5, 2048, %s75_s13, [#allocation9], %s9578_s3, %s9578_s3, %s9579_s19  }
  0x7b   :  { %s9580_s18 = smov [#allocation13]   ;;  %s9581_s24 = smov [#allocation16]  }
  0x7c   :  { %s96_s22 = sshll.u32 %s9580_s18, 4  ;;  %s118_s26 = sshll.u32 %s9581_s24, 4  ;;  %s97_s22 = int_to_ptr.vmem [resolvable:$true] %s96_s22  ;;  %s119_s26 = int_to_ptr.vmem [resolvable:$true] %s118_s26 }
  0x7d   :  { %s9465_s27 = scalar_lea.hbm %s10007_s7, 1024 }
  0x7e   :  { %p9466_p0 = scmp.ne.s32.totalorder %s10007_s7, %s9465_s27  ;;  %p9469_p1 = scmp.lt.u32.totalorder %s9465_s27, %s10007_s7 }
  0x80   :  { %p9471_p2 = pnand %p9469_p1, %p9466_p0 }
  0x82   :  { %9474 = shalt.err (!%p9471_p2)
}
  0x83   :  { %s9475_s5 = scalar_lea.vmem %s97_s22, 1024  ;;  %p9480_p4 = scmp.lt.s32.totalorder %s97_s22, %s97_s22 }
  0x84   :  { %p9476_p3 = scmp.ne.s32.totalorder %s97_s22, %s9475_s5  ;;  %p9481_p5 = scmp.lt.s32.totalorder %s9475_s5, %s9475_s5 }
  0x86   :  { %p9482_p6 = por %p9481_p5, %p9480_p4 }
  0x88   :  { %p9483_p7 = pnand %p9482_p6, %p9476_p3 }
  0x8a   :  { %9486 = shalt.err (!%p9483_p7)
}
  0x8b   :  { %102 = dma.hbm_to_vmem [thread:$0]  %s10007_s7, 1024, %s97_s22, [#allocation12], %s9578_s3, %s9578_s3, %s9579_s19  }
  0x8c   :  { %s9487_s14 = scalar_lea.hbm %s10009_s9, 1024 }
  0x8d   :  { %p9488_p8 = scmp.ne.s32.totalorder %s10009_s9, %s9487_s14  ;;  %p9491_p9 = scmp.lt.u32.totalorder %s9487_s14, %s10009_s9 }
  0x8f   :  { %p9493_p10 = pnand %p9491_p9, %p9488_p8 }
  0x91   :  { %9496 = shalt.err (!%p9493_p10)
}
  0x92   :  { %s9497_s17 = scalar_lea.vmem %s119_s26, 1024  ;;  %p9502_p12 = scmp.lt.s32.totalorder %s119_s26, %s119_s26 }
  0x93   :  { %p9498_p11 = scmp.ne.s32.totalorder %s119_s26, %s9497_s17  ;;  %p9503_p13 = scmp.lt.s32.totalorder %s9497_s17, %s9497_s17 }
  0x95   :  { %p9504_p0 = por %p9503_p13, %p9502_p12 }
  0x97   :  { %p9505_p1 = pnand %p9504_p0, %p9498_p11 }
  0x99   :  { %9508 = shalt.err (!%p9505_p1)
}
  0x9a   :  { %124 = dma.hbm_to_vmem [thread:$0]  %s10009_s9, 1024, %s119_s26, [#allocation15], %s9578_s3, %s9578_s3, %s9579_s19  }
  0x9b   :  { %s9582_s2 = smov [#allocation17]   ;;  %s9509_s6 = scalar_lea.hbm %s10010_s10, 16 }
  0x9c   :  { %s131_s18 = sshll.u32 %s9582_s2, 4  ;;  %p9510_p2 = scmp.ne.s32.totalorder %s10010_s10, %s9509_s6  ;;  %s132_s18 = int_to_ptr.vmem [resolvable:$true] %s131_s18 }
  0x9d   :  { %p9513_p3 = scmp.lt.u32.totalorder %s9509_s6, %s10010_s10 }
  0x9f   :  { %p9515_p4 = pnand %p9513_p3, %p9510_p2 }
  0xa1   :  { %9518 = shalt.err (!%p9515_p4)
}
  0xa2   :  { %s9519_s29 = scalar_lea.vmem %s132_s18, 16  ;;  %s9523_s9 = scalar_lea.vmem %s132_s18, 32 }
  0xa3   :  { %p9520_p5 = scmp.ne.s32.totalorder %s132_s18, %s9519_s29  ;;  %p9524_p6 = scmp.lt.s32.totalorder %s132_s18, %s132_s18 }
  0xa4   :  { %p9525_p7 = scmp.lt.s32.totalorder %s9523_s9, %s9519_s29 }
  0xa6   :  { %p9526_p8 = por %p9525_p7, %p9524_p6 }
  0xa8   :  { %p9527_p9 = pnand %p9526_p8, %p9520_p5 }
  0xaa   :  { %9530 = shalt.err (!%p9527_p9)
}
  0xab   :  { %134 = dma.hbm_to_vmem [thread:$0]  %s10010_s10, 16, %s132_s18, [#allocation18]  }
  0xac   :  { %9553 = dma.done.wait [#allocation3], 98304  }
  0xad   :  { %9554 = vsyncadd [#allocation3], 4294868992 }
  0xae   :  { %9555 = dma.done.wait [#allocation6], 8256  }
  0xaf   :  { %9556 = vsyncadd [#allocation6], 4294959040 }
  0xb0   :  { %9557 = dma.done.wait [#allocation9], 2080  }
  0xb1   :  { %9558 = vsyncadd [#allocation9], 4294965216 }
  0xb2   :  { %9559 = dma.done.wait [#allocation12], 1040  }
  0xb3   :  { %9560 = vsyncadd [#allocation12], 4294966256 }
  0xb4   :  { %9561 = dma.done.wait [#allocation15], 1040  }
  0xb5   :  { %9562 = vsyncadd [#allocation15], 4294966256 }
  0xb6   :  { %9563 = dma.done.wait [#allocation18], 16  }
  0xb7   :  { %9564 = vsyncadd [#allocation18], 4294967280  ;;  %v8013_v0 = vld [vmem:[#allocation2 + $0x4] ss:$16 sps:$4 sm:$0xff]   ;;  %v8015_v1 = vld [vmem:[#allocation2 + $0xc] ss:$16 sps:$4 sm:$0xff]   ;;  %v948_v38 = vlaneseq }
  0xb8   :  { %5048 = vmatprep.subr.bf16.mxu0 %v8013_v0  ;;  %v8017_v2 = vld [vmem:[#allocation2] ss:$16 sps:$4 sm:$0xff]   ;;  %v8018_v3 = vld [vmem:[#allocation2 + $0x8] ss:$16 sps:$4 sm:$0xff]   ;;  %5540 = vmatprep.subr.bf16.mxu1 %v8015_v1  ;;  %v8019_v4 = vld [vmem:[#allocation2 + $0x24] ss:$16 sps:$4 sm:$0xff]  }
  0xb9   :  { %5049 = vmatpush1.bf16.msra.mxu0 %v8017_v2  ;;  %5541 = vmatpush1.bf16.msra.mxu1 %v8018_v3  ;;  %v8021_v5 = vld [vmem:[#allocation2 + $0x2c] ss:$16 sps:$4 sm:$0xff]   ;;  %v8023_v6 = vld [vmem:[#allocation2 + $0x20] ss:$16 sps:$4 sm:$0xff]   ;;  %v8024_v7 = vld [vmem:[#allocation2 + $0x28] ss:$16 sps:$4 sm:$0xff]  }
  0xba   :  { %5050 = vmatprep.subr.bf16.mxu0 %v8019_v4  ;;  %5542 = vmatprep.subr.bf16.mxu1 %v8021_v5  ;;  %v8025_v8 = vld [vmem:[#allocation2 + $0x44] ss:$16 sps:$4 sm:$0xff]   ;;  %v8027_v9 = vld [vmem:[#allocation2 + $0x4c] ss:$16 sps:$4 sm:$0xff]   ;;  %v8029_v10 = vld [vmem:[#allocation2 + $0x40] ss:$16 sps:$4 sm:$0xff]  }
  0xbb   :  { %v8030_v11 = vld [vmem:[#allocation2 + $0x48] ss:$16 sps:$4 sm:$0xff]   ;;  %v8031_v12 = vld [vmem:[#allocation2 + $0x64] ss:$16 sps:$4 sm:$0xff]   ;;  %v8033_v13 = vld [vmem:[#allocation2 + $0x6c] ss:$16 sps:$4 sm:$0xff]  }
  0xbc   :  { %v8035_v14 = vld [vmem:[#allocation2 + $0x60] ss:$16 sps:$4 sm:$0xff]   ;;  %v8036_v15 = vld [vmem:[#allocation2 + $0x68] ss:$16 sps:$4 sm:$0xff]   ;;  %v8037_v16 = vld [vmem:[#allocation2 + $0x84] ss:$16 sps:$4 sm:$0xff]  }
  0xbd   :  { %5051 = vmatpush1.bf16.msra.mxu0 %v8023_v6  ;;  %5543 = vmatpush1.bf16.msra.mxu1 %v8024_v7  ;;  %v8039_v17 = vld [vmem:[#allocation2 + $0x8c] ss:$16 sps:$4 sm:$0xff]   ;;  %v8041_v18 = vld [vmem:[#allocation2 + $0x80] ss:$16 sps:$4 sm:$0xff]   ;;  %v8042_v19 = vld [vmem:[#allocation2 + $0x88] ss:$16 sps:$4 sm:$0xff]  }
  0xbe   :  { %5052 = vmatprep.subr.bf16.mxu0 %v8025_v8  ;;  %5544 = vmatprep.subr.bf16.mxu1 %v8027_v9  ;;  %v8043_v20 = vld [vmem:[#allocation2 + $0xa4] ss:$16 sps:$4 sm:$0xff]   ;;  %v8045_v21 = vld [vmem:[#allocation2 + $0xac] ss:$16 sps:$4 sm:$0xff]   ;;  %v8047_v22 = vld [vmem:[#allocation2 + $0xa0] ss:$16 sps:$4 sm:$0xff]  }
  0xbf   :  { %v8048_v23 = vld [vmem:[#allocation2 + $0xa8] ss:$16 sps:$4 sm:$0xff]   ;;  %v8049_v24 = vld [vmem:[#allocation2 + $0xc4] ss:$16 sps:$4 sm:$0xff]   ;;  %v8051_v25 = vld [vmem:[#allocation2 + $0xcc] ss:$16 sps:$4 sm:$0xff]  }
  0xc0   :  { %v8053_v26 = vld [vmem:[#allocation2 + $0xc0] ss:$16 sps:$4 sm:$0xff]   ;;  %v8054_v27 = vld [vmem:[#allocation2 + $0xc8] ss:$16 sps:$4 sm:$0xff]   ;;  %v8055_v28 = vld [vmem:[#allocation2 + $0xe4] ss:$16 sps:$4 sm:$0xff]  }
  0xc1   :  { %5053 = vmatpush1.bf16.msra.mxu0 %v8029_v10  ;;  %5545 = vmatpush1.bf16.msra.mxu1 %v8030_v11  ;;  %v8057_v29 = vld [vmem:[#allocation2 + $0xec] ss:$16 sps:$4 sm:$0xff]   ;;  %v8059_v30 = vld [vmem:[#allocation2 + $0xe0] ss:$16 sps:$4 sm:$0xff]   ;;  %v8060_v31 = vld [vmem:[#allocation2 + $0xe8] ss:$16 sps:$4 sm:$0xff]  }
  0xc2   :  { %5054 = vmatprep.subr.bf16.mxu0 %v8031_v12  ;;  %5546 = vmatprep.subr.bf16.mxu1 %v8033_v13  ;;  %v8061_v32 = vld [vmem:[#allocation2 + $0x104] ss:$16 sps:$4 sm:$0xff]   ;;  %v8063_v33 = vld [vmem:[#allocation2 + $0x10c] ss:$16 sps:$4 sm:$0xff]   ;;  %v8065_v34 = vld [vmem:[#allocation2 + $0x100] ss:$16 sps:$4 sm:$0xff]  }
  0xc3   :  { %v8066_v35 = vld [vmem:[#allocation2 + $0x108] ss:$16 sps:$4 sm:$0xff]   ;;  %v8067_v36 = vld [vmem:[#allocation2 + $0x124] ss:$16 sps:$4 sm:$0xff]   ;;  %v8069_v37 = vld [vmem:[#allocation2 + $0x12c] ss:$16 sps:$4 sm:$0xff]  }
  0xc4   :  { %v9583_v39 = vmov 1966171168   ;;  %v8071_v41 = vld [vmem:[#allocation2 + $0x120] ss:$16 sps:$4 sm:$0xff]   ;;  %v8072_v42 = vld [vmem:[#allocation2 + $0x128] ss:$16 sps:$4 sm:$0xff]  }
  0xc5   :  { %5055 = vmatpush1.bf16.msra.mxu0 %v8035_v14  ;;  %5547 = vmatpush1.bf16.msra.mxu1 %v8036_v15  ;;  %v985_v40 = vunpack.c.l.s4 %v9583_v39  ;;  %v8073_v43 = vld [vmem:[#allocation2 + $0x144] ss:$16 sps:$4 sm:$0xff]   ;;  %v8075_v44 = vld [vmem:[#allocation2 + $0x14c] ss:$16 sps:$4 sm:$0xff]   ;;  %v9778_v45 = vshrl.u32 %v948_v38, 7  ;;  %vm9585_vm0 = vmmov 0  }
  0xc6   :  { %5056 = vmatprep.subr.bf16.mxu0 %v8037_v16  ;;  %5548 = vmatprep.subr.bf16.mxu1 %v8039_v17  ;;  %v8077_v47 = vld [vmem:[#allocation2 + $0x140] ss:$16 sps:$4 sm:$0xff]   ;;  %v8078_v48 = vld [vmem:[#allocation2 + $0x148] ss:$16 sps:$4 sm:$0xff]   ;;  %v8079_v49 = vld [vmem:[#allocation2 + $0x164] ss:$16 sps:$4 sm:$0xff]  }
  0xc7   :  { %v986_v46 = vunpack.c.0.s8 %v985_v40  ;;  %v8081_v50 = vld [vmem:[#allocation2 + $0x16c] ss:$16 sps:$4 sm:$0xff]   ;;  %v8083_v51 = vld [vmem:[#allocation2 + $0x160] ss:$16 sps:$4 sm:$0xff]   ;;  %v8084_v52 = vld [vmem:[#allocation2 + $0x168] ss:$16 sps:$4 sm:$0xff]  }
  0xc8   :  { %v8109_v54 = vld [vmem:[%s10000_s0] ss:$24 sps:$4 sm:$0xff]   ;;  %v8111_v55 = vld [vmem:[%s10000_s0 + $0x30] ss:$24 sps:$4 sm:$0xff]   ;;  %v8085_v56 = vld [vmem:[#allocation2 + $0x184] ss:$16 sps:$4 sm:$0xff]  }
  0xc9   :  { %5057 = vmatpush1.bf16.msra.mxu0 %v8041_v18  ;;  %5549 = vmatpush1.bf16.msra.mxu1 %v8042_v19  ;;  %v9781_v53 = vsub.s32 %v986_v46, %v9778_v45  ;;  %v8087_v57 = vld [vmem:[#allocation2 + $0x18c] ss:$16 sps:$4 sm:$0xff]   ;;  %v8089_v60 = vld [vmem:[#allocation2 + $0x180] ss:$16 sps:$4 sm:$0xff]   ;;  %v8090_v61 = vld [vmem:[#allocation2 + $0x188] ss:$16 sps:$4 sm:$0xff]  }
  0xca   :  { %5058 = vmatprep.subr.bf16.mxu0 %v8043_v20  ;;  %5550 = vmatprep.subr.bf16.mxu1 %v8045_v21  ;;  %v8091_v63 = vld [vmem:[#allocation2 + $0x1a4] ss:$16 sps:$4 sm:$0xff]   ;;  %v8093_v0 = vld [vmem:[#allocation2 + $0x1ac] ss:$16 sps:$4 sm:$0xff]   ;;  %v8095_v2 = vld [vmem:[#allocation2 + $0x1a0] ss:$16 sps:$4 sm:$0xff]  }
  0xcb   :  { %v990_v58 = vrot.slane %v8109_v54, %v9781_v53  ;;  %v1004_v59 = vrot.slane %v8111_v55, %v9781_v53  ;;  %v8096_v3 = vld [vmem:[#allocation2 + $0x1a8] ss:$16 sps:$4 sm:$0xff]   ;;  %v8097_v4 = vld [vmem:[#allocation2 + $0x1c4] ss:$16 sps:$4 sm:$0xff]   ;;  %v8099_v5 = vld [vmem:[#allocation2 + $0x1cc] ss:$16 sps:$4 sm:$0xff]  }
  0xcc   :  { %v8101_v6 = vld [vmem:[#allocation2 + $0x1c0] ss:$16 sps:$4 sm:$0xff]   ;;  %v8102_v7 = vld [vmem:[#allocation2 + $0x1c8] ss:$16 sps:$4 sm:$0xff]   ;;  %v8103_v8 = vld [vmem:[#allocation2 + $0x1e4] ss:$16 sps:$4 sm:$0xff]  }
  0xcd   :  { %5059 = vmatpush1.bf16.msra.mxu0 %v8047_v22  ;;  %5551 = vmatpush1.bf16.msra.mxu1 %v8048_v23  ;;  %v1013_v62 = vcombine.high %v990_v58, %v1004_v59  ;;  %v8105_v9 = vld [vmem:[#allocation2 + $0x1ec] ss:$16 sps:$4 sm:$0xff]   ;;  %v1012_v10 = vcombine.low %v990_v58, %v1004_v59  ;;  %v8107_v11 = vld [vmem:[#allocation2 + $0x1e0] ss:$16 sps:$4 sm:$0xff]   ;;  %v8108_v12 = vld [vmem:[#allocation2 + $0x1e8] ss:$16 sps:$4 sm:$0xff]  }
  0xce   :  { %5060 = vmatprep.subr.bf16.mxu0 %v8049_v24  ;;  %5552 = vmatprep.subr.bf16.mxu1 %v8051_v25  ;;  %v8115_v13 = vld [vmem:[#allocation2 + $0x204] ss:$16 sps:$4 sm:$0xff]   ;;  %v8118_v14 = vld [vmem:[#allocation2 + $0x20c] ss:$16 sps:$4 sm:$0xff]   ;;  %v8113_v16 = vld [vmem:[#allocation2 + $0x200] ss:$16 sps:$4 sm:$0xff]  }
  0xcf   :  { %v1036_v1 = vrot.slane %v1013_v62, %v9781_v53  ;;  %v9793_v15 = vrot.slane %v1012_v10, %v9781_v53  ;;  %v8116_v17 = vld [vmem:[#allocation2 + $0x208] ss:$16 sps:$4 sm:$0xff]   ;;  %v8121_v18 = vld [vmem:[#allocation2 + $0x224] ss:$16 sps:$4 sm:$0xff]   ;;  %v8124_v19 = vld [vmem:[#allocation2 + $0x22c] ss:$16 sps:$4 sm:$0xff]  }
  0xd0   :  { %v8119_v21 = vld [vmem:[#allocation2 + $0x220] ss:$16 sps:$4 sm:$0xff]   ;;  %v8122_v22 = vld [vmem:[#allocation2 + $0x228] ss:$16 sps:$4 sm:$0xff]   ;;  %v8127_v23 = vld [vmem:[#allocation2 + $0x244] ss:$16 sps:$4 sm:$0xff]  }
  0xd1   :  { %5061 = vmatpush1.bf16.msra.mxu0 %v8053_v26  ;;  %5553 = vmatpush1.bf16.msra.mxu1 %v8054_v27  ;;  %v1046_v20 = vcombine.high %v1036_v1, %v1036_v1  ;;  %v8130_v24 = vld [vmem:[#allocation2 + $0x24c] ss:$16 sps:$4 sm:$0xff]   ;;  %v8125_v25 = vld [vmem:[#allocation2 + $0x240] ss:$16 sps:$4 sm:$0xff]   ;;  %v8128_v26 = vld [vmem:[#allocation2 + $0x248] ss:$16 sps:$4 sm:$0xff]  }
  0xd2   :  { %5062 = vmatprep.subr.bf16.mxu0 %v8055_v28  ;;  %5554 = vmatprep.subr.bf16.mxu1 %v8057_v29  ;;  %v8133_v27 = vld [vmem:[#allocation2 + $0x264] ss:$16 sps:$4 sm:$0xff]   ;;  %v8136_v28 = vld [vmem:[#allocation2 + $0x26c] ss:$16 sps:$4 sm:$0xff]   ;;  %v8131_v29 = vld [vmem:[#allocation2 + $0x260] ss:$16 sps:$4 sm:$0xff]  }
  0xd3   :  { %5080 = vmatprep.mubr.bf16.mxu0 %v1036_v1  ;;  %5572 = vmatprep.mubr.bf16.mxu1 %v1036_v1  ;;  %v8146_v38 = vld [vmem:[#allocation2 + $0x2a8] ss:$16 sps:$4 sm:$0xff]   ;;  %v8151_v39 = vld [vmem:[#allocation2 + $0x2c4] ss:$16 sps:$4 sm:$0xff]   ;;  %v8154_v40 = vld [vmem:[#allocation2 + $0x2cc] ss:$16 sps:$4 sm:$0xff]  }
  0xd4   :  { %v8155_v46 = vld [vmem:[#allocation2 + $0x2e0] ss:$16 sps:$4 sm:$0xff]   ;;  %v8172_v54 = vld [vmem:[#allocation2 + $0x32c] ss:$16 sps:$4 sm:$0xff]   ;;  %v8187_v1 = vld [vmem:[#allocation2 + $0x384] ss:$16 sps:$4 sm:$0xff]  }
  0xd5   :  { %5063 = vmatpush1.bf16.msra.mxu0 %v8059_v30  ;;  %5555 = vmatpush1.bf16.msra.mxu1 %v8060_v31  ;;  %v8134_v30 = vld [vmem:[#allocation2 + $0x268] ss:$16 sps:$4 sm:$0xff]   ;;  %v8139_v31 = vld [vmem:[#allocation2 + $0x284] ss:$16 sps:$4 sm:$0xff]   ;;  %v8167_v55 = vld [vmem:[#allocation2 + $0x320] ss:$16 sps:$4 sm:$0xff]  }
  0xd6   :  { %5064 = vmatprep.subr.bf16.mxu0 %v8061_v32  ;;  %5556 = vmatprep.subr.bf16.mxu1 %v8063_v33  ;;  %v8142_v32 = vld [vmem:[#allocation2 + $0x28c] ss:$16 sps:$4 sm:$0xff]   ;;  %v8137_v33 = vld [vmem:[#allocation2 + $0x280] ss:$16 sps:$4 sm:$0xff]  }
  0xd7   :  { %v8178_v58 = vld [vmem:[#allocation2 + $0x34c] ss:$16 sps:$4 sm:$0xff]   ;;  %v8173_v59 = vld [vmem:[#allocation2 + $0x340] ss:$16 sps:$4 sm:$0xff]  }
  0xd8   :  { %v8184_v62 = vld [vmem:[#allocation2 + $0x36c] ss:$16 sps:$4 sm:$0xff]  }
  0xd9   :  { %5065 = vmatpush1.bf16.msra.mxu0 %v8065_v34  ;;  %5557 = vmatpush1.bf16.msra.mxu1 %v8066_v35  ;;  %v8140_v34 = vld [vmem:[#allocation2 + $0x288] ss:$16 sps:$4 sm:$0xff]   ;;  %v8145_v35 = vld [vmem:[#allocation2 + $0x2a4] ss:$16 sps:$4 sm:$0xff]   ;;  %v8202_v10 = vld [vmem:[#allocation2 + $0x3cc] ss:$16 sps:$4 sm:$0xff]  }
  0xda   :  { %5066 = vmatprep.subr.bf16.mxu0 %v8067_v36  ;;  %5558 = vmatprep.subr.bf16.mxu1 %v8069_v37  ;;  %v8148_v36 = vld [vmem:[#allocation2 + $0x2ac] ss:$16 sps:$4 sm:$0xff]   ;;  %v8143_v37 = vld [vmem:[#allocation2 + $0x2a0] ss:$16 sps:$4 sm:$0xff]  }
  0xdd   :  { %5067 = vmatpush1.bf16.msra.mxu0 %v8071_v41  ;;  %5559 = vmatpush1.bf16.msra.mxu1 %v8072_v42  ;;  %v8149_v41 = vld [vmem:[#allocation2 + $0x2c0] ss:$16 sps:$4 sm:$0xff]   ;;  %v8152_v42 = vld [vmem:[#allocation2 + $0x2c8] ss:$16 sps:$4 sm:$0xff]  }
  0xde   :  { %5068 = vmatprep.subr.bf16.mxu0 %v8073_v43  ;;  %5560 = vmatprep.subr.bf16.mxu1 %v8075_v44  ;;  %v8157_v43 = vld [vmem:[#allocation2 + $0x2e4] ss:$16 sps:$4 sm:$0xff]   ;;  %v8160_v44 = vld [vmem:[#allocation2 + $0x2ec] ss:$16 sps:$4 sm:$0xff]  }
  0xe1   :  { %5069 = vmatpush1.bf16.msra.mxu0 %v8077_v47  ;;  %5561 = vmatpush1.bf16.msra.mxu1 %v8078_v48  ;;  %v8158_v47 = vld [vmem:[#allocation2 + $0x2e8] ss:$16 sps:$4 sm:$0xff]   ;;  %v8163_v48 = vld [vmem:[#allocation2 + $0x304] ss:$16 sps:$4 sm:$0xff]  }
  0xe2   :  { %5070 = vmatprep.subr.bf16.mxu0 %v8079_v49  ;;  %5562 = vmatprep.subr.bf16.mxu1 %v8081_v50  ;;  %v8166_v49 = vld [vmem:[#allocation2 + $0x30c] ss:$16 sps:$4 sm:$0xff]   ;;  %v8161_v50 = vld [vmem:[#allocation2 + $0x300] ss:$16 sps:$4 sm:$0xff]  }
  0xe5   :  { %5071 = vmatpush1.bf16.msra.mxu0 %v8083_v51  ;;  %5563 = vmatpush1.bf16.msra.mxu1 %v8084_v52  ;;  %v8164_v51 = vld [vmem:[#allocation2 + $0x308] ss:$16 sps:$4 sm:$0xff]   ;;  %v8169_v52 = vld [vmem:[#allocation2 + $0x324] ss:$16 sps:$4 sm:$0xff]  }
  0xe6   :  { %5072 = vmatprep.subr.bf16.mxu0 %v8085_v56  ;;  %5564 = vmatprep.subr.bf16.mxu1 %v8087_v57  ;;  %v8170_v56 = vld [vmem:[#allocation2 + $0x328] ss:$16 sps:$4 sm:$0xff]   ;;  %v8175_v57 = vld [vmem:[#allocation2 + $0x344] ss:$16 sps:$4 sm:$0xff]  }
  0xe9   :  { %5073 = vmatpush1.bf16.msra.mxu0 %v8089_v60  ;;  %5565 = vmatpush1.bf16.msra.mxu1 %v8090_v61  ;;  %v8176_v60 = vld [vmem:[#allocation2 + $0x348] ss:$16 sps:$4 sm:$0xff]   ;;  %v8181_v61 = vld [vmem:[#allocation2 + $0x364] ss:$16 sps:$4 sm:$0xff]  }
  0xea   :  { %5074 = vmatprep.subr.bf16.mxu0 %v8091_v63  ;;  %5566 = vmatprep.subr.bf16.mxu1 %v8093_v0  ;;  %v8179_v63 = vld [vmem:[#allocation2 + $0x360] ss:$16 sps:$4 sm:$0xff]   ;;  %v8182_v0 = vld [vmem:[#allocation2 + $0x368] ss:$16 sps:$4 sm:$0xff]  }
  0xed   :  { %5075 = vmatpush1.bf16.msra.mxu0 %v8095_v2  ;;  %5567 = vmatpush1.bf16.msra.mxu1 %v8096_v3  ;;  %v8190_v2 = vld [vmem:[#allocation2 + $0x38c] ss:$16 sps:$4 sm:$0xff]   ;;  %v8185_v3 = vld [vmem:[#allocation2 + $0x380] ss:$16 sps:$4 sm:$0xff]  }
  0xee   :  { %5076 = vmatprep.subr.bf16.mxu0 %v8097_v4  ;;  %5568 = vmatprep.subr.bf16.mxu1 %v8099_v5  ;;  %v8188_v4 = vld [vmem:[#allocation2 + $0x388] ss:$16 sps:$4 sm:$0xff]   ;;  %v8193_v5 = vld [vmem:[#allocation2 + $0x3a4] ss:$16 sps:$4 sm:$0xff]  }
  0xf1   :  { %5077 = vmatpush1.bf16.msra.mxu0 %v8101_v6  ;;  %5569 = vmatpush1.bf16.msra.mxu1 %v8102_v7  ;;  %v8196_v6 = vld [vmem:[#allocation2 + $0x3ac] ss:$16 sps:$4 sm:$0xff]   ;;  %v8191_v7 = vld [vmem:[#allocation2 + $0x3a0] ss:$16 sps:$4 sm:$0xff]  }
  0xf2   :  { %5078 = vmatprep.subr.bf16.mxu0 %v8103_v8  ;;  %5570 = vmatprep.subr.bf16.mxu1 %v8105_v9  ;;  %v8194_v8 = vld [vmem:[#allocation2 + $0x3a8] ss:$16 sps:$4 sm:$0xff]   ;;  %v8199_v9 = vld [vmem:[#allocation2 + $0x3c4] ss:$16 sps:$4 sm:$0xff]  }
  0xf5   :  { %5079 = vmatpush1.bf16.msra.mxu0 %v8107_v11  ;;  %5571 = vmatpush1.bf16.msra.mxu1 %v8108_v12  ;;  %v8197_v11 = vld [vmem:[#allocation2 + $0x3c0] ss:$16 sps:$4 sm:$0xff]   ;;  %v8200_v12 = vld [vmem:[#allocation2 + $0x3c8] ss:$16 sps:$4 sm:$0xff]  }
  0xf6   :  { %5089 = vmatprep.subr.bf16.mxu0 %v8115_v13  ;;  %5581 = vmatprep.subr.bf16.mxu1 %v8118_v14  ;;  %v8205_v13 = vld [vmem:[#allocation2 + $0x3e4] ss:$16 sps:$4 sm:$0xff]   ;;  %v8208_v14 = vld [vmem:[#allocation2 + $0x3ec] ss:$16 sps:$4 sm:$0xff]  }
  0xf8   :  { %5081 = vmatmul.mubr.bf16.vlgmr.msra.gmra.mrb[0].mxu0 %v9793_v15  ;;  %5573 = vmatmul.mubr.bf16.vlgmr.msra.gmra.mrb[0].mxu1 %v9793_v15 }
  0xf9   :  { %5090 = vmatpush1.bf16.msra.mxu0 %v8113_v16  ;;  %5582 = vmatpush1.bf16.msra.mxu1 %v8116_v17  ;;  %v8203_v16 = vld [vmem:[#allocation2 + $0x3e0] ss:$16 sps:$4 sm:$0xff]   ;;  %v8206_v17 = vld [vmem:[#allocation2 + $0x3e8] ss:$16 sps:$4 sm:$0xff]  }
  0xfa   :  { %5091 = vmatprep.subr.bf16.mxu0 %v8121_v18  ;;  %5583 = vmatprep.subr.bf16.mxu1 %v8124_v19  ;;  %v8211_v18 = vld [vmem:[#allocation2 + $0x404] ss:$16 sps:$4 sm:$0xff]   ;;  %v8214_v19 = vld [vmem:[#allocation2 + $0x40c] ss:$16 sps:$4 sm:$0xff]  }
  0xfb   :  { %5121 = vmatprep.mubr.bf16.mxu0 %v1046_v20  ;;  %5613 = vmatprep.mubr.bf16.mxu1 %v1046_v20  ;;  %v1044_v20 = vcombine.high %v9793_v15, %v9793_v15  ;;  %v8218_v15 = vld [vmem:[#allocation2 + $0x428] ss:$16 sps:$4 sm:$0xff]  }
  0xfd   :  { %5092 = vmatpush1.bf16.msra.mxu0 %v8119_v21  ;;  %5584 = vmatpush1.bf16.msra.mxu1 %v8122_v22  ;;  %v8209_v21 = vld [vmem:[#allocation2 + $0x400] ss:$16 sps:$4 sm:$0xff]   ;;  %v8212_v22 = vld [vmem:[#allocation2 + $0x408] ss:$16 sps:$4 sm:$0xff]  }
  0xfe   :  { %5093 = vmatprep.subr.bf16.mxu0 %v8127_v23  ;;  %5585 = vmatprep.subr.bf16.mxu1 %v8130_v24  ;;  %v8217_v23 = vld [vmem:[#allocation2 + $0x424] ss:$16 sps:$4 sm:$0xff]   ;;  %v8220_v24 = vld [vmem:[#allocation2 + $0x42c] ss:$16 sps:$4 sm:$0xff]  }
 0x101   :  { %5094 = vmatpush1.bf16.msra.mxu0 %v8125_v25  ;;  %5586 = vmatpush1.bf16.msra.mxu1 %v8128_v26  ;;  %v8305_v25 = vld [vmem:[%s10000_s0 + $0x4] ss:$24 sps:$4 sm:$0xff]   ;;  %v8306_v26 = vld [vmem:[%s10000_s0 + $0x34] ss:$24 sps:$4 sm:$0xff]  }
 0x102   :  { %5095 = vmatprep.subr.bf16.mxu0 %v8133_v27  ;;  %5587 = vmatprep.subr.bf16.mxu1 %v8136_v28  ;;  %v8215_v27 = vld [vmem:[#allocation2 + $0x420] ss:$16 sps:$4 sm:$0xff]   ;;  %v8223_v28 = vld [vmem:[#allocation2 + $0x444] ss:$16 sps:$4 sm:$0xff]  }
 0x105   :  { %5096 = vmatpush1.bf16.msra.mxu0 %v8131_v29  ;;  %5588 = vmatpush1.bf16.msra.mxu1 %v8134_v30  ;;  %v9806_v29 = vrot.slane %v8305_v25, %v9781_v53  ;;  %v9809_v30 = vrot.slane %v8306_v26, %v9781_v53  ;;  %v8299_v25 = vld [vmem:[#allocation2 + $0x5e0] ss:$16 sps:$4 sm:$0xff]   ;;  %v8302_v26 = vld [vmem:[#allocation2 + $0x5e8] ss:$16 sps:$4 sm:$0xff]  }
 0x106   :  { %5097 = vmatprep.subr.bf16.mxu0 %v8139_v31  ;;  %5589 = vmatprep.subr.bf16.mxu1 %v8142_v32  ;;  %v8226_v31 = vld [vmem:[#allocation2 + $0x44c] ss:$16 sps:$4 sm:$0xff]  }
 0x107   :  { %v1015_v32 = vcombine.high %v9806_v29, %v9809_v30 }
 0x109   :  { %5098 = vmatpush1.bf16.msra.mxu0 %v8137_v33  ;;  %5590 = vmatpush1.bf16.msra.mxu1 %v8140_v34  ;;  %v8221_v33 = vld [vmem:[#allocation2 + $0x440] ss:$16 sps:$4 sm:$0xff]   ;;  %v8224_v34 = vld [vmem:[#allocation2 + $0x448] ss:$16 sps:$4 sm:$0xff]  }
 0x10a   :  { %5099 = vmatprep.subr.bf16.mxu0 %v8145_v35  ;;  %5591 = vmatprep.subr.bf16.mxu1 %v8148_v36  ;;  %v8229_v35 = vld [vmem:[#allocation2 + $0x464] ss:$16 sps:$4 sm:$0xff]   ;;  %v9814_v36 = vrot.slane %v1015_v32, %v9781_v53  ;;  %v8310_v32 = vld [vmem:[#allocation2 + $0x608] ss:$16 sps:$4 sm:$0xff]  }
 0x10d   :  { %5100 = vmatpush1.bf16.msra.mxu0 %v8143_v37  ;;  %5592 = vmatpush1.bf16.msra.mxu1 %v8146_v38  ;;  %v8232_v37 = vld [vmem:[#allocation2 + $0x46c] ss:$16 sps:$4 sm:$0xff]   ;;  %v8227_v38 = vld [vmem:[#allocation2 + $0x460] ss:$16 sps:$4 sm:$0xff]  }
 0x10e   :  { %5101 = vmatprep.subr.bf16.mxu0 %v8151_v39  ;;  %5593 = vmatprep.subr.bf16.mxu1 %v8154_v40  ;;  %v8230_v39 = vld [vmem:[#allocation2 + $0x468] ss:$16 sps:$4 sm:$0xff]   ;;  %v8235_v40 = vld [vmem:[#allocation2 + $0x484] ss:$16 sps:$4 sm:$0xff]  }
 0x111   :  { %5102 = vmatpush1.bf16.msra.mxu0 %v8149_v41  ;;  %5594 = vmatpush1.bf16.msra.mxu1 %v8152_v42  ;;  %v8238_v41 = vld [vmem:[#allocation2 + $0x48c] ss:$16 sps:$4 sm:$0xff]   ;;  %v8233_v42 = vld [vmem:[#allocation2 + $0x480] ss:$16 sps:$4 sm:$0xff]  }
 0x112   :  { %5103 = vmatprep.subr.bf16.mxu0 %v8157_v43  ;;  %5595 = vmatprep.subr.bf16.mxu1 %v8160_v44  ;;  %v8236_v43 = vld [vmem:[#allocation2 + $0x488] ss:$16 sps:$4 sm:$0xff]   ;;  %v8241_v44 = vld [vmem:[#allocation2 + $0x4a4] ss:$16 sps:$4 sm:$0xff]  }
 0x115   :  { %5104 = vmatpush1.bf16.msra.mxu0 %v8155_v46  ;;  %5596 = vmatpush1.bf16.msra.mxu1 %v8158_v47  ;;  %v8244_v46 = vld [vmem:[#allocation2 + $0x4ac] ss:$16 sps:$4 sm:$0xff]   ;;  %v8239_v47 = vld [vmem:[#allocation2 + $0x4a0] ss:$16 sps:$4 sm:$0xff]  }
 0x116   :  { %5105 = vmatprep.subr.bf16.mxu0 %v8163_v48  ;;  %5597 = vmatprep.subr.bf16.mxu1 %v8166_v49  ;;  %v8242_v48 = vld [vmem:[#allocation2 + $0x4a8] ss:$16 sps:$4 sm:$0xff]   ;;  %v8247_v49 = vld [vmem:[#allocation2 + $0x4c4] ss:$16 sps:$4 sm:$0xff]  }
 0x119   :  { %5106 = vmatpush1.bf16.msra.mxu0 %v8161_v50  ;;  %5598 = vmatpush1.bf16.msra.mxu1 %v8164_v51  ;;  %v8250_v50 = vld [vmem:[#allocation2 + $0x4cc] ss:$16 sps:$4 sm:$0xff]   ;;  %v8245_v51 = vld [vmem:[#allocation2 + $0x4c0] ss:$16 sps:$4 sm:$0xff]  }
 0x11a   :  { %5107 = vmatprep.subr.bf16.mxu0 %v8169_v52  ;;  %5599 = vmatprep.subr.bf16.mxu1 %v8172_v54  ;;  %v8248_v52 = vld [vmem:[#allocation2 + $0x4c8] ss:$16 sps:$4 sm:$0xff]   ;;  %v8253_v54 = vld [vmem:[#allocation2 + $0x4e4] ss:$16 sps:$4 sm:$0xff]  }
 0x11d   :  { %5108 = vmatpush1.bf16.msra.mxu0 %v8167_v55  ;;  %5600 = vmatpush1.bf16.msra.mxu1 %v8170_v56  ;;  %v8256_v55 = vld [vmem:[#allocation2 + $0x4ec] ss:$16 sps:$4 sm:$0xff]   ;;  %v8251_v56 = vld [vmem:[#allocation2 + $0x4e0] ss:$16 sps:$4 sm:$0xff]  }
 0x11e   :  { %5109 = vmatprep.subr.bf16.mxu0 %v8175_v57  ;;  %5601 = vmatprep.subr.bf16.mxu1 %v8178_v58  ;;  %v8254_v57 = vld [vmem:[#allocation2 + $0x4e8] ss:$16 sps:$4 sm:$0xff]   ;;  %v8259_v58 = vld [vmem:[#allocation2 + $0x504] ss:$16 sps:$4 sm:$0xff]  }
 0x121   :  { %5110 = vmatpush1.bf16.msra.mxu0 %v8173_v59  ;;  %5602 = vmatpush1.bf16.msra.mxu1 %v8176_v60  ;;  %v8262_v59 = vld [vmem:[#allocation2 + $0x50c] ss:$16 sps:$4 sm:$0xff]   ;;  %v8257_v60 = vld [vmem:[#allocation2 + $0x500] ss:$16 sps:$4 sm:$0xff]  }
 0x122   :  { %5111 = vmatprep.subr.bf16.mxu0 %v8181_v61  ;;  %5603 = vmatprep.subr.bf16.mxu1 %v8184_v62  ;;  %v8260_v61 = vld [vmem:[#allocation2 + $0x508] ss:$16 sps:$4 sm:$0xff]   ;;  %v8265_v62 = vld [vmem:[#allocation2 + $0x524] ss:$16 sps:$4 sm:$0xff]  }
 0x125   :  { %5112 = vmatpush1.bf16.msra.mxu0 %v8179_v63  ;;  %5604 = vmatpush1.bf16.msra.mxu1 %v8182_v0  ;;  %v8268_v63 = vld [vmem:[#allocation2 + $0x52c] ss:$16 sps:$4 sm:$0xff]   ;;  %v8263_v0 = vld [vmem:[#allocation2 + $0x520] ss:$16 sps:$4 sm:$0xff]  }
 0x126   :  { %5113 = vmatprep.subr.bf16.mxu0 %v8187_v1  ;;  %5605 = vmatprep.subr.bf16.mxu1 %v8190_v2  ;;  %v8266_v1 = vld [vmem:[#allocation2 + $0x528] ss:$16 sps:$4 sm:$0xff]   ;;  %v8271_v2 = vld [vmem:[#allocation2 + $0x544] ss:$16 sps:$4 sm:$0xff]  }
 0x129   :  { %5114 = vmatpush1.bf16.msra.mxu0 %v8185_v3  ;;  %5606 = vmatpush1.bf16.msra.mxu1 %v8188_v4  ;;  %v8274_v3 = vld [vmem:[#allocation2 + $0x54c] ss:$16 sps:$4 sm:$0xff]   ;;  %v8269_v4 = vld [vmem:[#allocation2 + $0x540] ss:$16 sps:$4 sm:$0xff]  }
 0x12a   :  { %5115 = vmatprep.subr.bf16.mxu0 %v8193_v5  ;;  %5607 = vmatprep.subr.bf16.mxu1 %v8196_v6  ;;  %v8272_v5 = vld [vmem:[#allocation2 + $0x548] ss:$16 sps:$4 sm:$0xff]   ;;  %v8277_v6 = vld [vmem:[#allocation2 + $0x564] ss:$16 sps:$4 sm:$0xff]  }
 0x12d   :  { %5116 = vmatpush1.bf16.msra.mxu0 %v8191_v7  ;;  %5608 = vmatpush1.bf16.msra.mxu1 %v8194_v8  ;;  %v8280_v7 = vld [vmem:[#allocation2 + $0x56c] ss:$16 sps:$4 sm:$0xff]   ;;  %v8275_v8 = vld [vmem:[#allocation2 + $0x560] ss:$16 sps:$4 sm:$0xff]  }
 0x12e   :  { %5117 = vmatprep.subr.bf16.mxu0 %v8199_v9  ;;  %5609 = vmatprep.subr.bf16.mxu1 %v8202_v10  ;;  %v8278_v9 = vld [vmem:[#allocation2 + $0x568] ss:$16 sps:$4 sm:$0xff]   ;;  %v8283_v10 = vld [vmem:[#allocation2 + $0x584] ss:$16 sps:$4 sm:$0xff]  }
 0x131   :  { %5118 = vmatpush1.bf16.msra.mxu0 %v8197_v11  ;;  %5610 = vmatpush1.bf16.msra.mxu1 %v8200_v12  ;;  %v8286_v11 = vld [vmem:[#allocation2 + $0x58c] ss:$16 sps:$4 sm:$0xff]   ;;  %v8281_v12 = vld [vmem:[#allocation2 + $0x580] ss:$16 sps:$4 sm:$0xff]  }
 0x132   :  { %5119 = vmatprep.subr.bf16.mxu0 %v8205_v13  ;;  %5611 = vmatprep.subr.bf16.mxu1 %v8208_v14  ;;  %v8284_v13 = vld [vmem:[#allocation2 + $0x588] ss:$16 sps:$4 sm:$0xff]   ;;  %v8289_v14 = vld [vmem:[#allocation2 + $0x5a4] ss:$16 sps:$4 sm:$0xff]  }
 0x135   :  { %5120 = vmatpush1.bf16.msra.mxu0 %v8203_v16  ;;  %5612 = vmatpush1.bf16.msra.mxu1 %v8206_v17  ;;  %v8292_v16 = vld [vmem:[#allocation2 + $0x5ac] ss:$16 sps:$4 sm:$0xff]   ;;  %v8287_v17 = vld [vmem:[#allocation2 + $0x5a0] ss:$16 sps:$4 sm:$0xff]  }
 0x136   :  { %5130 = vmatprep.subr.bf16.mxu0 %v8211_v18  ;;  %5622 = vmatprep.subr.bf16.mxu1 %v8214_v19  ;;  %v8290_v18 = vld [vmem:[#allocation2 + $0x5a8] ss:$16 sps:$4 sm:$0xff]   ;;  %v8295_v19 = vld [vmem:[#allocation2 + $0x5c4] ss:$16 sps:$4 sm:$0xff]  }
 0x138   :  { %5122 = vmatmul.mubr.bf16.vlgmr.msra.gmra.mrb[0].mxu0 %v1044_v20  ;;  %5614 = vmatmul.mubr.bf16.vlgmr.msra.gmra.mrb[0].mxu1 %v1044_v20  ;;  %v8298_v20 = vld [vmem:[#allocation2 + $0x5cc] ss:$16 sps:$4 sm:$0xff]  }
 0x139   :  { %5131 = vmatpush1.bf16.msra.mxu0 %v8209_v21  ;;  %5623 = vmatpush1.bf16.msra.mxu1 %v8212_v22  ;;  %v8293_v21 = vld [vmem:[#allocation2 + $0x5c0] ss:$16 sps:$4 sm:$0xff]   ;;  %v8296_v22 = vld [vmem:[#allocation2 + $0x5c8] ss:$16 sps:$4 sm:$0xff]  }
 0x13a   :  { %5132 = vmatprep.subr.bf16.mxu0 %v8217_v23  ;;  %5624 = vmatprep.subr.bf16.mxu1 %v8220_v24  ;;  %v8301_v23 = vld [vmem:[#allocation2 + $0x5e4] ss:$16 sps:$4 sm:$0xff]   ;;  %v8304_v24 = vld [vmem:[#allocation2 + $0x5ec] ss:$16 sps:$4 sm:$0xff]  }
 0x13b   :  { %5162 = vmatprep.mubr.bf16.mxu0 %v9814_v36  ;;  %5654 = vmatprep.mubr.bf16.mxu1 %v9814_v36 }
 0x13d   :  { %5133 = vmatpush1.bf16.msra.mxu0 %v8215_v27  ;;  %5625 = vmatpush1.bf16.msra.mxu1 %v8218_v15  ;;  %v1014_v27 = vcombine.low %v9806_v29, %v9809_v30  ;;  %v8309_v15 = vld [vmem:[#allocation2 + $0x604] ss:$16 sps:$4 sm:$0xff]   ;;  %v1047_v29 = vcombine.high %v9814_v36, %v9814_v36  ;;  %v8313_v30 = vld [vmem:[#allocation2 + $0x620] ss:$16 sps:$4 sm:$0xff]   ;;  %v8330_v36 = vld [vmem:[#allocation2 + $0x66c] ss:$16 sps:$4 sm:$0xff]  }
 0x13e   :  { %5134 = vmatprep.subr.bf16.mxu0 %v8223_v28  ;;  %5626 = vmatprep.subr.bf16.mxu1 %v8226_v31  ;;  %v8312_v28 = vld [vmem:[#allocation2 + $0x60c] ss:$16 sps:$4 sm:$0xff]   ;;  %v8307_v31 = vld [vmem:[#allocation2 + $0x600] ss:$16 sps:$4 sm:$0xff]  }
 0x141   :  { %5135 = vmatpush1.bf16.msra.mxu0 %v8221_v33  ;;  %5627 = vmatpush1.bf16.msra.mxu1 %v8224_v34  ;;  %v9821_v33 = vrot.slane %v1014_v27, %v9781_v53  ;;  %v8315_v34 = vld [vmem:[#allocation2 + $0x624] ss:$16 sps:$4 sm:$0xff]   ;;  %v8501_v27 = vld [vmem:[%s10000_s0 + $0x38] ss:$24 sps:$4 sm:$0xff]  }
 0x142   :  { %5136 = vmatprep.subr.bf16.mxu0 %v8229_v35  ;;  %5628 = vmatprep.subr.bf16.mxu1 %v8232_v37  ;;  %v8318_v35 = vld [vmem:[#allocation2 + $0x62c] ss:$16 sps:$4 sm:$0xff]   ;;  %v8316_v37 = vld [vmem:[#allocation2 + $0x628] ss:$16 sps:$4 sm:$0xff]  }
 0x145   :  { %5137 = vmatpush1.bf16.msra.mxu0 %v8227_v38  ;;  %5629 = vmatpush1.bf16.msra.mxu1 %v8230_v39  ;;  %v8321_v38 = vld [vmem:[#allocation2 + $0x644] ss:$16 sps:$4 sm:$0xff]   ;;  %v8324_v39 = vld [vmem:[#allocation2 + $0x64c] ss:$16 sps:$4 sm:$0xff]  }
 0x146   :  { %5138 = vmatprep.subr.bf16.mxu0 %v8235_v40  ;;  %5630 = vmatprep.subr.bf16.mxu1 %v8238_v41  ;;  %v8319_v40 = vld [vmem:[#allocation2 + $0x640] ss:$16 sps:$4 sm:$0xff]   ;;  %v8322_v41 = vld [vmem:[#allocation2 + $0x648] ss:$16 sps:$4 sm:$0xff]  }
 0x149   :  { %5139 = vmatpush1.bf16.msra.mxu0 %v8233_v42  ;;  %5631 = vmatpush1.bf16.msra.mxu1 %v8236_v43  ;;  %v8327_v42 = vld [vmem:[#allocation2 + $0x664] ss:$16 sps:$4 sm:$0xff]   ;;  %v8325_v43 = vld [vmem:[#allocation2 + $0x660] ss:$16 sps:$4 sm:$0xff]  }
 0x14a   :  { %5140 = vmatprep.subr.bf16.mxu0 %v8241_v44  ;;  %5632 = vmatprep.subr.bf16.mxu1 %v8244_v46  ;;  %v8328_v44 = vld [vmem:[#allocation2 + $0x668] ss:$16 sps:$4 sm:$0xff]   ;;  %v8333_v46 = vld [vmem:[#allocation2 + $0x684] ss:$16 sps:$4 sm:$0xff]  }
 0x14d   :  { %5141 = vmatpush1.bf16.msra.mxu0 %v8239_v47  ;;  %5633 = vmatpush1.bf16.msra.mxu1 %v8242_v48  ;;  %v8336_v47 = vld [vmem:[#allocation2 + $0x68c] ss:$16 sps:$4 sm:$0xff]   ;;  %v8331_v48 = vld [vmem:[#allocation2 + $0x680] ss:$16 sps:$4 sm:$0xff]  }
 0x14e   :  { %5142 = vmatprep.subr.bf16.mxu0 %v8247_v49  ;;  %5634 = vmatprep.subr.bf16.mxu1 %v8250_v50  ;;  %v8334_v49 = vld [vmem:[#allocation2 + $0x688] ss:$16 sps:$4 sm:$0xff]   ;;  %v8339_v50 = vld [vmem:[#allocation2 + $0x6a4] ss:$16 sps:$4 sm:$0xff]  }
 0x151   :  { %5143 = vmatpush1.bf16.msra.mxu0 %v8245_v51  ;;  %5635 = vmatpush1.bf16.msra.mxu1 %v8248_v52  ;;  %v8342_v51 = vld [vmem:[#allocation2 + $0x6ac] ss:$16 sps:$4 sm:$0xff]   ;;  %v8337_v52 = vld [vmem:[#allocation2 + $0x6a0] ss:$16 sps:$4 sm:$0xff]  }
 0x152   :  { %5144 = vmatprep.subr.bf16.mxu0 %v8253_v54  ;;  %5636 = vmatprep.subr.bf16.mxu1 %v8256_v55  ;;  %v8340_v54 = vld [vmem:[#allocation2 + $0x6a8] ss:$16 sps:$4 sm:$0xff]   ;;  %v8345_v55 = vld [vmem:[#allocation2 + $0x6c4] ss:$16 sps:$4 sm:$0xff]  }
 0x155   :  { %5145 = vmatpush1.bf16.msra.mxu0 %v8251_v56  ;;  %5637 = vmatpush1.bf16.msra.mxu1 %v8254_v57  ;;  %v8348_v56 = vld [vmem:[#allocation2 + $0x6cc] ss:$16 sps:$4 sm:$0xff]   ;;  %v8343_v57 = vld [vmem:[#allocation2 + $0x6c0] ss:$16 sps:$4 sm:$0xff]  }
 0x156   :  { %5146 = vmatprep.subr.bf16.mxu0 %v8259_v58  ;;  %5638 = vmatprep.subr.bf16.mxu1 %v8262_v59  ;;  %v8346_v58 = vld [vmem:[#allocation2 + $0x6c8] ss:$16 sps:$4 sm:$0xff]   ;;  %v8351_v59 = vld [vmem:[#allocation2 + $0x6e4] ss:$16 sps:$4 sm:$0xff]  }
 0x159   :  { %5147 = vmatpush1.bf16.msra.mxu0 %v8257_v60  ;;  %5639 = vmatpush1.bf16.msra.mxu1 %v8260_v61  ;;  %v8354_v60 = vld [vmem:[#allocation2 + $0x6ec] ss:$16 sps:$4 sm:$0xff]   ;;  %v8349_v61 = vld [vmem:[#allocation2 + $0x6e0] ss:$16 sps:$4 sm:$0xff]  }
 0x15a   :  { %5148 = vmatprep.subr.bf16.mxu0 %v8265_v62  ;;  %5640 = vmatprep.subr.bf16.mxu1 %v8268_v63  ;;  %v8352_v62 = vld [vmem:[#allocation2 + $0x6e8] ss:$16 sps:$4 sm:$0xff]   ;;  %v8357_v63 = vld [vmem:[#allocation2 + $0x704] ss:$16 sps:$4 sm:$0xff]  }
 0x15d   :  { %5149 = vmatpush1.bf16.msra.mxu0 %v8263_v0  ;;  %5641 = vmatpush1.bf16.msra.mxu1 %v8266_v1  ;;  %v8360_v0 = vld [vmem:[#allocation2 + $0x70c] ss:$16 sps:$4 sm:$0xff]   ;;  %v8355_v1 = vld [vmem:[#allocation2 + $0x700] ss:$16 sps:$4 sm:$0xff]  }
 0x15e   :  { %5150 = vmatprep.subr.bf16.mxu0 %v8271_v2  ;;  %5642 = vmatprep.subr.bf16.mxu1 %v8274_v3  ;;  %v8358_v2 = vld [vmem:[#allocation2 + $0x708] ss:$16 sps:$4 sm:$0xff]   ;;  %v8363_v3 = vld [vmem:[#allocation2 + $0x724] ss:$16 sps:$4 sm:$0xff]  }
 0x161   :  { %5151 = vmatpush1.bf16.msra.mxu0 %v8269_v4  ;;  %5643 = vmatpush1.bf16.msra.mxu1 %v8272_v5  ;;  %v8366_v4 = vld [vmem:[#allocation2 + $0x72c] ss:$16 sps:$4 sm:$0xff]   ;;  %v8361_v5 = vld [vmem:[#allocation2 + $0x720] ss:$16 sps:$4 sm:$0xff]  }
 0x162   :  { %5152 = vmatprep.subr.bf16.mxu0 %v8277_v6  ;;  %5644 = vmatprep.subr.bf16.mxu1 %v8280_v7  ;;  %v8364_v6 = vld [vmem:[#allocation2 + $0x728] ss:$16 sps:$4 sm:$0xff]   ;;  %v8369_v7 = vld [vmem:[#allocation2 + $0x744] ss:$16 sps:$4 sm:$0xff]  }
 0x165   :  { %5153 = vmatpush1.bf16.msra.mxu0 %v8275_v8  ;;  %5645 = vmatpush1.bf16.msra.mxu1 %v8278_v9  ;;  %v8372_v8 = vld [vmem:[#allocation2 + $0x74c] ss:$16 sps:$4 sm:$0xff]   ;;  %v8367_v9 = vld [vmem:[#allocation2 + $0x740] ss:$16 sps:$4 sm:$0xff]  }
 0x166   :  { %5154 = vmatprep.subr.bf16.mxu0 %v8283_v10  ;;  %5646 = vmatprep.subr.bf16.mxu1 %v8286_v11  ;;  %v8370_v10 = vld [vmem:[#allocation2 + $0x748] ss:$16 sps:$4 sm:$0xff]   ;;  %v8375_v11 = vld [vmem:[#allocation2 + $0x764] ss:$16 sps:$4 sm:$0xff]  }
 0x169   :  { %5155 = vmatpush1.bf16.msra.mxu0 %v8281_v12  ;;  %5647 = vmatpush1.bf16.msra.mxu1 %v8284_v13  ;;  %v8378_v12 = vld [vmem:[#allocation2 + $0x76c] ss:$16 sps:$4 sm:$0xff]   ;;  %v8373_v13 = vld [vmem:[#allocation2 + $0x760] ss:$16 sps:$4 sm:$0xff]  }
 0x16a   :  { %5156 = vmatprep.subr.bf16.mxu0 %v8289_v14  ;;  %5648 = vmatprep.subr.bf16.mxu1 %v8292_v16  ;;  %v8376_v14 = vld [vmem:[#allocation2 + $0x768] ss:$16 sps:$4 sm:$0xff]   ;;  %v8381_v16 = vld [vmem:[#allocation2 + $0x784] ss:$16 sps:$4 sm:$0xff]  }
 0x16d   :  { %5157 = vmatpush1.bf16.msra.mxu0 %v8287_v17  ;;  %5649 = vmatpush1.bf16.msra.mxu1 %v8290_v18  ;;  %v8384_v17 = vld [vmem:[#allocation2 + $0x78c] ss:$16 sps:$4 sm:$0xff]   ;;  %v8379_v18 = vld [vmem:[#allocation2 + $0x780] ss:$16 sps:$4 sm:$0xff]  }
 0x16e   :  { %5158 = vmatprep.subr.bf16.mxu0 %v8295_v19  ;;  %5650 = vmatprep.subr.bf16.mxu1 %v8298_v20  ;;  %v8382_v19 = vld [vmem:[#allocation2 + $0x788] ss:$16 sps:$4 sm:$0xff]   ;;  %v8387_v20 = vld [vmem:[#allocation2 + $0x7a4] ss:$16 sps:$4 sm:$0xff]  }
 0x171   :  { %5159 = vmatpush1.bf16.msra.mxu0 %v8293_v21  ;;  %5651 = vmatpush1.bf16.msra.mxu1 %v8296_v22  ;;  %v8390_v21 = vld [vmem:[#allocation2 + $0x7ac] ss:$16 sps:$4 sm:$0xff]   ;;  %v8385_v22 = vld [vmem:[#allocation2 + $0x7a0] ss:$16 sps:$4 sm:$0xff]  }
 0x172   :  { %5160 = vmatprep.subr.bf16.mxu0 %v8301_v23  ;;  %5652 = vmatprep.subr.bf16.mxu1 %v8304_v24  ;;  %v8388_v23 = vld [vmem:[#allocation2 + $0x7a8] ss:$16 sps:$4 sm:$0xff]   ;;  %v8393_v24 = vld [vmem:[#allocation2 + $0x7c4] ss:$16 sps:$4 sm:$0xff]  }
 0x175   :  { %5161 = vmatpush1.bf16.msra.mxu0 %v8299_v25  ;;  %5653 = vmatpush1.bf16.msra.mxu1 %v8302_v26  ;;  %v8396_v25 = vld [vmem:[#allocation2 + $0x7cc] ss:$16 sps:$4 sm:$0xff]   ;;  %v8499_v26 = vld [vmem:[%s10000_s0 + $0x8] ss:$24 sps:$4 sm:$0xff]  }
 0x176   :  { %5171 = vmatprep.subr.bf16.mxu0 %v8309_v15  ;;  %5663 = vmatprep.subr.bf16.mxu1 %v8312_v28  ;;  %v8391_v15 = vld [vmem:[#allocation2 + $0x7c0] ss:$16 sps:$4 sm:$0xff]   ;;  %v8394_v28 = vld [vmem:[#allocation2 + $0x7c8] ss:$16 sps:$4 sm:$0xff]  }
 0x178   :  { %5163 = vmatmul.mubr.bf16.vlgmr.msra.gmra.mrb[0].mxu0 %v9821_v33  ;;  %5655 = vmatmul.mubr.bf16.vlgmr.msra.gmra.mrb[0].mxu1 %v9821_v33 }
 0x179   :  { %5172 = vmatpush1.bf16.msra.mxu0 %v8307_v31  ;;  %5664 = vmatpush1.bf16.msra.mxu1 %v8310_v32  ;;  %v8399_v31 = vld [vmem:[#allocation2 + $0x7e4] ss:$16 sps:$4 sm:$0xff]   ;;  %v8402_v32 = vld [vmem:[#allocation2 + $0x7ec] ss:$16 sps:$4 sm:$0xff]  }
 0x17a   :  { %5173 = vmatprep.subr.bf16.mxu0 %v8315_v34  ;;  %5665 = vmatprep.subr.bf16.mxu1 %v8318_v35  ;;  %v9834_v34 = vrot.slane %v8499_v26, %v9781_v53  ;;  %v9837_v35 = vrot.slane %v8501_v27, %v9781_v53  ;;  %v8480_v26 = vld [vmem:[#allocation2 + $0x98c] ss:$16 sps:$4 sm:$0xff]   ;;  %v8475_v27 = vld [vmem:[#allocation2 + $0x980] ss:$16 sps:$4 sm:$0xff]  }
 0x17b   :  { %5203 = vmatprep.mubr.bf16.mxu0 %v1047_v29  ;;  %5695 = vmatprep.mubr.bf16.mxu1 %v1047_v29  ;;  %v8397_v29 = vld [vmem:[#allocation2 + $0x7e0] ss:$16 sps:$4 sm:$0xff]  }
 0x17d   :  { %5174 = vmatpush1.bf16.msra.mxu0 %v8313_v30  ;;  %5666 = vmatpush1.bf16.msra.mxu1 %v8316_v37  ;;  %v8400_v30 = vld [vmem:[#allocation2 + $0x7e8] ss:$16 sps:$4 sm:$0xff]   ;;  %v8405_v37 = vld [vmem:[#allocation2 + $0x804] ss:$16 sps:$4 sm:$0xff]  }
 0x17e   :  { %5175 = vmatprep.subr.bf16.mxu0 %v8321_v38  ;;  %5667 = vmatprep.subr.bf16.mxu1 %v8324_v39  ;;  %v8408_v38 = vld [vmem:[#allocation2 + $0x80c] ss:$16 sps:$4 sm:$0xff]   ;;  %v1081_v39 = vcombine.high %v9834_v34, %v9837_v35 }
 0x181   :  { %5176 = vmatpush1.bf16.msra.mxu0 %v8319_v40  ;;  %5668 = vmatpush1.bf16.msra.mxu1 %v8322_v41  ;;  %v1045_v40 = vcombine.high %v9821_v33, %v9821_v33  ;;  %v8403_v41 = vld [vmem:[#allocation2 + $0x800] ss:$16 sps:$4 sm:$0xff]   ;;  %v8417_v33 = vld [vmem:[#allocation2 + $0x844] ss:$16 sps:$4 sm:$0xff]  }
 0x182   :  { %5177 = vmatprep.subr.bf16.mxu0 %v8327_v42  ;;  %5669 = vmatprep.subr.bf16.mxu1 %v8330_v36  ;;  %v8406_v42 = vld [vmem:[#allocation2 + $0x808] ss:$16 sps:$4 sm:$0xff]   ;;  %v8411_v36 = vld [vmem:[#allocation2 + $0x824] ss:$16 sps:$4 sm:$0xff]  }
 0x185   :  { %5178 = vmatpush1.bf16.msra.mxu0 %v8325_v43  ;;  %5670 = vmatpush1.bf16.msra.mxu1 %v8328_v44  ;;  %v8414_v43 = vld [vmem:[#allocation2 + $0x82c] ss:$16 sps:$4 sm:$0xff]   ;;  %v9844_v44 = vrot.slane %v1081_v39, %v9781_v53  ;;  %v8490_v39 = vld [vmem:[#allocation2 + $0x9c8] ss:$16 sps:$4 sm:$0xff]  }
 0x186   :  { %5179 = vmatprep.subr.bf16.mxu0 %v8333_v46  ;;  %5671 = vmatprep.subr.bf16.mxu1 %v8336_v47  ;;  %v8409_v46 = vld [vmem:[#allocation2 + $0x820] ss:$16 sps:$4 sm:$0xff]   ;;  %v8412_v47 = vld [vmem:[#allocation2 + $0x828] ss:$16 sps:$4 sm:$0xff]  }
 0x189   :  { %5180 = vmatpush1.bf16.msra.mxu0 %v8331_v48  ;;  %5672 = vmatpush1.bf16.msra.mxu1 %v8334_v49  ;;  %v8420_v48 = vld [vmem:[#allocation2 + $0x84c] ss:$16 sps:$4 sm:$0xff]   ;;  %v8415_v49 = vld [vmem:[#allocation2 + $0x840] ss:$16 sps:$4 sm:$0xff]  }
 0x18a   :  { %5181 = vmatprep.subr.bf16.mxu0 %v8339_v50  ;;  %5673 = vmatprep.subr.bf16.mxu1 %v8342_v51  ;;  %v8418_v50 = vld [vmem:[#allocation2 + $0x848] ss:$16 sps:$4 sm:$0xff]   ;;  %v8423_v51 = vld [vmem:[#allocation2 + $0x864] ss:$16 sps:$4 sm:$0xff]  }
 0x18d   :  { %5182 = vmatpush1.bf16.msra.mxu0 %v8337_v52  ;;  %5674 = vmatpush1.bf16.msra.mxu1 %v8340_v54  ;;  %v8426_v52 = vld [vmem:[#allocation2 + $0x86c] ss:$16 sps:$4 sm:$0xff]   ;;  %v8421_v54 = vld [vmem:[#allocation2 + $0x860] ss:$16 sps:$4 sm:$0xff]  }
 0x18e   :  { %5183 = vmatprep.subr.bf16.mxu0 %v8345_v55  ;;  %5675 = vmatprep.subr.bf16.mxu1 %v8348_v56  ;;  %v8424_v55 = vld [vmem:[#allocation2 + $0x868] ss:$16 sps:$4 sm:$0xff]   ;;  %v8429_v56 = vld [vmem:[#allocation2 + $0x884] ss:$16 sps:$4 sm:$0xff]  }
 0x191   :  { %5184 = vmatpush1.bf16.msra.mxu0 %v8343_v57  ;;  %5676 = vmatpush1.bf16.msra.mxu1 %v8346_v58  ;;  %v8432_v57 = vld [vmem:[#allocation2 + $0x88c] ss:$16 sps:$4 sm:$0xff]   ;;  %v8427_v58 = vld [vmem:[#allocation2 + $0x880] ss:$16 sps:$4 sm:$0xff]  }
 0x192   :  { %5185 = vmatprep.subr.bf16.mxu0 %v8351_v59  ;;  %5677 = vmatprep.subr.bf16.mxu1 %v8354_v60  ;;  %v8430_v59 = vld [vmem:[#allocation2 + $0x888] ss:$16 sps:$4 sm:$0xff]   ;;  %v8435_v60 = vld [vmem:[#allocation2 + $0x8a4] ss:$16 sps:$4 sm:$0xff]  }
 0x195   :  { %5186 = vmatpush1.bf16.msra.mxu0 %v8349_v61  ;;  %5678 = vmatpush1.bf16.msra.mxu1 %v8352_v62  ;;  %v8438_v61 = vld [vmem:[#allocation2 + $0x8ac] ss:$16 sps:$4 sm:$0xff]   ;;  %v8433_v62 = vld [vmem:[#allocation2 + $0x8a0] ss:$16 sps:$4 sm:$0xff]  }
 0x196   :  { %5187 = vmatprep.subr.bf16.mxu0 %v8357_v63  ;;  %5679 = vmatprep.subr.bf16.mxu1 %v8360_v0  ;;  %v8436_v63 = vld [vmem:[#allocation2 + $0x8a8] ss:$16 sps:$4 sm:$0xff]   ;;  %v8441_v0 = vld [vmem:[#allocation2 + $0x8c4] ss:$16 sps:$4 sm:$0xff]  }
 0x199   :  { %5188 = vmatpush1.bf16.msra.mxu0 %v8355_v1  ;;  %5680 = vmatpush1.bf16.msra.mxu1 %v8358_v2  ;;  %v8444_v1 = vld [vmem:[#allocation2 + $0x8cc] ss:$16 sps:$4 sm:$0xff]   ;;  %v8439_v2 = vld [vmem:[#allocation2 + $0x8c0] ss:$16 sps:$4 sm:$0xff]  }
 0x19a   :  { %5189 = vmatprep.subr.bf16.mxu0 %v8363_v3  ;;  %5681 = vmatprep.subr.bf16.mxu1 %v8366_v4  ;;  %v8442_v3 = vld [vmem:[#allocation2 + $0x8c8] ss:$16 sps:$4 sm:$0xff]   ;;  %v8447_v4 = vld [vmem:[#allocation2 + $0x8e4] ss:$16 sps:$4 sm:$0xff]  }
 0x19d   :  { %5190 = vmatpush1.bf16.msra.mxu0 %v8361_v5  ;;  %5682 = vmatpush1.bf16.msra.mxu1 %v8364_v6  ;;  %v8450_v5 = vld [vmem:[#allocation2 + $0x8ec] ss:$16 sps:$4 sm:$0xff]   ;;  %v8445_v6 = vld [vmem:[#allocation2 + $0x8e0] ss:$16 sps:$4 sm:$0xff]  }
 0x19e   :  { %5191 = vmatprep.subr.bf16.mxu0 %v8369_v7  ;;  %5683 = vmatprep.subr.bf16.mxu1 %v8372_v8  ;;  %v8448_v7 = vld [vmem:[#allocation2 + $0x8e8] ss:$16 sps:$4 sm:$0xff]   ;;  %v8453_v8 = vld [vmem:[#allocation2 + $0x904] ss:$16 sps:$4 sm:$0xff]  }
 0x1a1   :  { %5192 = vmatpush1.bf16.msra.mxu0 %v8367_v9  ;;  %5684 = vmatpush1.bf16.msra.mxu1 %v8370_v10  ;;  %v8456_v9 = vld [vmem:[#allocation2 + $0x90c] ss:$16 sps:$4 sm:$0xff]   ;;  %v8451_v10 = vld [vmem:[#allocation2 + $0x900] ss:$16 sps:$4 sm:$0xff]  }
 0x1a2   :  { %5193 = vmatprep.subr.bf16.mxu0 %v8375_v11  ;;  %5685 = vmatprep.subr.bf16.mxu1 %v8378_v12  ;;  %v8454_v11 = vld [vmem:[#allocation2 + $0x908] ss:$16 sps:$4 sm:$0xff]   ;;  %v8459_v12 = vld [vmem:[#allocation2 + $0x924] ss:$16 sps:$4 sm:$0xff]  }
 0x1a5   :  { %5194 = vmatpush1.bf16.msra.mxu0 %v8373_v13  ;;  %5686 = vmatpush1.bf16.msra.mxu1 %v8376_v14  ;;  %v8462_v13 = vld [vmem:[#allocation2 + $0x92c] ss:$16 sps:$4 sm:$0xff]   ;;  %v8457_v14 = vld [vmem:[#allocation2 + $0x920] ss:$16 sps:$4 sm:$0xff]  }
 0x1a6   :  { %5195 = vmatprep.subr.bf16.mxu0 %v8381_v16  ;;  %5687 = vmatprep.subr.bf16.mxu1 %v8384_v17  ;;  %v8460_v16 = vld [vmem:[#allocation2 + $0x928] ss:$16 sps:$4 sm:$0xff]   ;;  %v8465_v17 = vld [vmem:[#allocation2 + $0x944] ss:$16 sps:$4 sm:$0xff]  }
 0x1a9   :  { %5196 = vmatpush1.bf16.msra.mxu0 %v8379_v18  ;;  %5688 = vmatpush1.bf16.msra.mxu1 %v8382_v19  ;;  %v8468_v18 = vld [vmem:[#allocation2 + $0x94c] ss:$16 sps:$4 sm:$0xff]   ;;  %v8463_v19 = vld [vmem:[#allocation2 + $0x940] ss:$16 sps:$4 sm:$0xff]  }
 0x1aa   :  { %5197 = vmatprep.subr.bf16.mxu0 %v8387_v20  ;;  %5689 = vmatprep.subr.bf16.mxu1 %v8390_v21  ;;  %v8466_v20 = vld [vmem:[#allocation2 + $0x948] ss:$16 sps:$4 sm:$0xff]   ;;  %v8471_v21 = vld [vmem:[#allocation2 + $0x964] ss:$16 sps:$4 sm:$0xff]  }
 0x1ad   :  { %5198 = vmatpush1.bf16.msra.mxu0 %v8385_v22  ;;  %5690 = vmatpush1.bf16.msra.mxu1 %v8388_v23  ;;  %v8474_v22 = vld [vmem:[#allocation2 + $0x96c] ss:$16 sps:$4 sm:$0xff]   ;;  %v8469_v23 = vld [vmem:[#allocation2 + $0x960] ss:$16 sps:$4 sm:$0xff]  }
 0x1ae   :  { %5199 = vmatprep.subr.bf16.mxu0 %v8393_v24  ;;  %5691 = vmatprep.subr.bf16.mxu1 %v8396_v25  ;;  %v8472_v24 = vld [vmem:[#allocation2 + $0x968] ss:$16 sps:$4 sm:$0xff]   ;;  %v8477_v25 = vld [vmem:[#allocation2 + $0x984] ss:$16 sps:$4 sm:$0xff]  }
 0x1b1   :  { %5200 = vmatpush1.bf16.msra.mxu0 %v8391_v15  ;;  %5692 = vmatpush1.bf16.msra.mxu1 %v8394_v28  ;;  %v8478_v15 = vld [vmem:[#allocation2 + $0x988] ss:$16 sps:$4 sm:$0xff]   ;;  %v8483_v28 = vld [vmem:[#allocation2 + $0x9a4] ss:$16 sps:$4 sm:$0xff]  }
 0x1b2   :  { %5201 = vmatprep.subr.bf16.mxu0 %v8399_v31  ;;  %5693 = vmatprep.subr.bf16.mxu1 %v8402_v32  ;;  %v8486_v31 = vld [vmem:[#allocation2 + $0x9ac] ss:$16 sps:$4 sm:$0xff]   ;;  %v8481_v32 = vld [vmem:[#allocation2 + $0x9a0] ss:$16 sps:$4 sm:$0xff]  }
 0x1b5   :  { %5202 = vmatpush1.bf16.msra.mxu0 %v8397_v29  ;;  %5694 = vmatpush1.bf16.msra.mxu1 %v8400_v30  ;;  %v8484_v29 = vld [vmem:[#allocation2 + $0x9a8] ss:$16 sps:$4 sm:$0xff]   ;;  %v8489_v30 = vld [vmem:[#allocation2 + $0x9c4] ss:$16 sps:$4 sm:$0xff]  }
 0x1b6   :  { %5212 = vmatprep.subr.bf16.mxu0 %v8405_v37  ;;  %5704 = vmatprep.subr.bf16.mxu1 %v8408_v38  ;;  %v8492_v37 = vld [vmem:[#allocation2 + $0x9cc] ss:$16 sps:$4 sm:$0xff]   ;;  %v8487_v38 = vld [vmem:[#allocation2 + $0x9c0] ss:$16 sps:$4 sm:$0xff]  }
 0x1b8   :  { %5204 = vmatmul.mubr.bf16.vlgmr.msra.gmra.mrb[0].mxu0 %v1045_v40  ;;  %5696 = vmatmul.mubr.bf16.vlgmr.msra.gmra.mrb[0].mxu1 %v1045_v40  ;;  %v8495_v40 = vld [vmem:[#allocation2 + $0x9e4] ss:$16 sps:$4 sm:$0xff]  }
 0x1b9   :  { %5213 = vmatpush1.bf16.msra.mxu0 %v8403_v41  ;;  %5705 = vmatpush1.bf16.msra.mxu1 %v8406_v42  ;;  %v8498_v41 = vld [vmem:[#allocation2 + $0x9ec] ss:$16 sps:$4 sm:$0xff]   ;;  %v1080_v42 = vcombine.low %v9834_v34, %v9837_v35  ;;  %v1114_v34 = vcombine.high %v9844_v44, %v9844_v44  ;;  %v8509_v35 = vld [vmem:[#allocation2 + $0xa20] ss:$16 sps:$4 sm:$0xff]  }
 0x1ba   :  { %5214 = vmatprep.subr.bf16.mxu0 %v8411_v36  ;;  %5706 = vmatprep.subr.bf16.mxu1 %v8414_v43  ;;  %v8493_v36 = vld [vmem:[#allocation2 + $0x9e0] ss:$16 sps:$4 sm:$0xff]   ;;  %v8496_v43 = vld [vmem:[#allocation2 + $0x9e8] ss:$16 sps:$4 sm:$0xff]  }
 0x1bb   :  { %5244 = vmatprep.mubr.bf16.mxu0 %v9844_v44  ;;  %5736 = vmatprep.mubr.bf16.mxu1 %v9844_v44  ;;  %v8523_v44 = vld [vmem:[#allocation2 + $0xa64] ss:$16 sps:$4 sm:$0xff]  }
 0x1bd   :  { %5215 = vmatpush1.bf16.msra.mxu0 %v8409_v46  ;;  %5707 = vmatpush1.bf16.msra.mxu1 %v8412_v47  ;;  %v8505_v46 = vld [vmem:[#allocation2 + $0xa04] ss:$16 sps:$4 sm:$0xff]   ;;  %v8508_v47 = vld [vmem:[#allocation2 + $0xa0c] ss:$16 sps:$4 sm:$0xff]  }
 0x1be   :  { %5216 = vmatprep.subr.bf16.mxu0 %v8417_v33  ;;  %5708 = vmatprep.subr.bf16.mxu1 %v8420_v48  ;;  %v9851_v33 = vrot.slane %v1080_v42, %v9781_v53  ;;  %v8503_v48 = vld [vmem:[#allocation2 + $0xa00] ss:$16 sps:$4 sm:$0xff]   ;;  %v8592_v42 = vld [vmem:[#allocation2 + $0xbcc] ss:$16 sps:$4 sm:$0xff]  }
 0x1c1   :  { %5217 = vmatpush1.bf16.msra.mxu0 %v8415_v49  ;;  %5709 = vmatpush1.bf16.msra.mxu1 %v8418_v50  ;;  %v8506_v49 = vld [vmem:[#allocation2 + $0xa08] ss:$16 sps:$4 sm:$0xff]   ;;  %v8511_v50 = vld [vmem:[#allocation2 + $0xa24] ss:$16 sps:$4 sm:$0xff]  }
 0x1c2   :  { %5218 = vmatprep.subr.bf16.mxu0 %v8423_v51  ;;  %5710 = vmatprep.subr.bf16.mxu1 %v8426_v52  ;;  %v8514_v51 = vld [vmem:[#allocation2 + $0xa2c] ss:$16 sps:$4 sm:$0xff]   ;;  %v8512_v52 = vld [vmem:[#allocation2 + $0xa28] ss:$16 sps:$4 sm:$0xff]  }
 0x1c5   :  { %5219 = vmatpush1.bf16.msra.mxu0 %v8421_v54  ;;  %5711 = vmatpush1.bf16.msra.mxu1 %v8424_v55  ;;  %v8517_v54 = vld [vmem:[#allocation2 + $0xa44] ss:$16 sps:$4 sm:$0xff]   ;;  %v8520_v55 = vld [vmem:[#allocation2 + $0xa4c] ss:$16 sps:$4 sm:$0xff]  }
 0x1c6   :  { %5220 = vmatprep.subr.bf16.mxu0 %v8429_v56  ;;  %5712 = vmatprep.subr.bf16.mxu1 %v8432_v57  ;;  %v8515_v56 = vld [vmem:[#allocation2 + $0xa40] ss:$16 sps:$4 sm:$0xff]   ;;  %v8518_v57 = vld [vmem:[#allocation2 + $0xa48] ss:$16 sps:$4 sm:$0xff]  }
 0x1c9   :  { %5221 = vmatpush1.bf16.msra.mxu0 %v8427_v58  ;;  %5713 = vmatpush1.bf16.msra.mxu1 %v8430_v59  ;;  %v8526_v58 = vld [vmem:[#allocation2 + $0xa6c] ss:$16 sps:$4 sm:$0xff]   ;;  %v8521_v59 = vld [vmem:[#allocation2 + $0xa60] ss:$16 sps:$4 sm:$0xff]  }
 0x1ca   :  { %5222 = vmatprep.subr.bf16.mxu0 %v8435_v60  ;;  %5714 = vmatprep.subr.bf16.mxu1 %v8438_v61  ;;  %v8524_v60 = vld [vmem:[#allocation2 + $0xa68] ss:$16 sps:$4 sm:$0xff]   ;;  %v8529_v61 = vld [vmem:[#allocation2 + $0xa84] ss:$16 sps:$4 sm:$0xff]  }
 0x1cd   :  { %5223 = vmatpush1.bf16.msra.mxu0 %v8433_v62  ;;  %5715 = vmatpush1.bf16.msra.mxu1 %v8436_v63  ;;  %v8532_v62 = vld [vmem:[#allocation2 + $0xa8c] ss:$16 sps:$4 sm:$0xff]   ;;  %v8527_v63 = vld [vmem:[#allocation2 + $0xa80] ss:$16 sps:$4 sm:$0xff]  }
 0x1ce   :  { %5224 = vmatprep.subr.bf16.mxu0 %v8441_v0  ;;  %5716 = vmatprep.subr.bf16.mxu1 %v8444_v1  ;;  %v8530_v0 = vld [vmem:[#allocation2 + $0xa88] ss:$16 sps:$4 sm:$0xff]   ;;  %v8535_v1 = vld [vmem:[#allocation2 + $0xaa4] ss:$16 sps:$4 sm:$0xff]  }
 0x1d1   :  { %5225 = vmatpush1.bf16.msra.mxu0 %v8439_v2  ;;  %5717 = vmatpush1.bf16.msra.mxu1 %v8442_v3  ;;  %v8538_v2 = vld [vmem:[#allocation2 + $0xaac] ss:$16 sps:$4 sm:$0xff]   ;;  %v8533_v3 = vld [vmem:[#allocation2 + $0xaa0] ss:$16 sps:$4 sm:$0xff]  }
 0x1d2   :  { %5226 = vmatprep.subr.bf16.mxu0 %v8447_v4  ;;  %5718 = vmatprep.subr.bf16.mxu1 %v8450_v5  ;;  %v8536_v4 = vld [vmem:[#allocation2 + $0xaa8] ss:$16 sps:$4 sm:$0xff]   ;;  %v8541_v5 = vld [vmem:[#allocation2 + $0xac4] ss:$16 sps:$4 sm:$0xff]  }
 0x1d5   :  { %5227 = vmatpush1.bf16.msra.mxu0 %v8445_v6  ;;  %5719 = vmatpush1.bf16.msra.mxu1 %v8448_v7  ;;  %v8544_v6 = vld [vmem:[#allocation2 + $0xacc] ss:$16 sps:$4 sm:$0xff]   ;;  %v8539_v7 = vld [vmem:[#allocation2 + $0xac0] ss:$16 sps:$4 sm:$0xff]  }
 0x1d6   :  { %5228 = vmatprep.subr.bf16.mxu0 %v8453_v8  ;;  %5720 = vmatprep.subr.bf16.mxu1 %v8456_v9  ;;  %v8542_v8 = vld [vmem:[#allocation2 + $0xac8] ss:$16 sps:$4 sm:$0xff]   ;;  %v8547_v9 = vld [vmem:[#allocation2 + $0xae4] ss:$16 sps:$4 sm:$0xff]  }
 0x1d9   :  { %5229 = vmatpush1.bf16.msra.mxu0 %v8451_v10  ;;  %5721 = vmatpush1.bf16.msra.mxu1 %v8454_v11  ;;  %v8550_v10 = vld [vmem:[#allocation2 + $0xaec] ss:$16 sps:$4 sm:$0xff]   ;;  %v8545_v11 = vld [vmem:[#allocation2 + $0xae0] ss:$16 sps:$4 sm:$0xff]  }
 0x1da   :  { %5230 = vmatprep.subr.bf16.mxu0 %v8459_v12  ;;  %5722 = vmatprep.subr.bf16.mxu1 %v8462_v13  ;;  %v8548_v12 = vld [vmem:[#allocation2 + $0xae8] ss:$16 sps:$4 sm:$0xff]   ;;  %v8553_v13 = vld [vmem:[#allocation2 + $0xb04] ss:$16 sps:$4 sm:$0xff]  }
 0x1dd   :  { %5231 = vmatpush1.bf16.msra.mxu0 %v8457_v14  ;;  %5723 = vmatpush1.bf16.msra.mxu1 %v8460_v16  ;;  %v8556_v14 = vld [vmem:[#allocation2 + $0xb0c] ss:$16 sps:$4 sm:$0xff]   ;;  %v8551_v16 = vld [vmem:[#allocation2 + $0xb00] ss:$16 sps:$4 sm:$0xff]  }
 0x1de   :  { %5232 = vmatprep.subr.bf16.mxu0 %v8465_v17  ;;  %5724 = vmatprep.subr.bf16.mxu1 %v8468_v18  ;;  %v8554_v17 = vld [vmem:[#allocation2 + $0xb08] ss:$16 sps:$4 sm:$0xff]   ;;  %v8559_v18 = vld [vmem:[#allocation2 + $0xb24] ss:$16 sps:$4 sm:$0xff]  }
 0x1e1   :  { %5233 = vmatpush1.bf16.msra.mxu0 %v8463_v19  ;;  %5725 = vmatpush1.bf16.msra.mxu1 %v8466_v20  ;;  %v8562_v19 = vld [vmem:[#allocation2 + $0xb2c] ss:$16 sps:$4 sm:$0xff]   ;;  %v8557_v20 = vld [vmem:[#allocation2 + $0xb20] ss:$16 sps:$4 sm:$0xff]  }
 0x1e2   :  { %5234 = vmatprep.subr.bf16.mxu0 %v8471_v21  ;;  %5726 = vmatprep.subr.bf16.mxu1 %v8474_v22  ;;  %v8560_v21 = vld [vmem:[#allocation2 + $0xb28] ss:$16 sps:$4 sm:$0xff]   ;;  %v8565_v22 = vld [vmem:[#allocation2 + $0xb44] ss:$16 sps:$4 sm:$0xff]  }
 0x1e5   :  { %5235 = vmatpush1.bf16.msra.mxu0 %v8469_v23  ;;  %5727 = vmatpush1.bf16.msra.mxu1 %v8472_v24  ;;  %v8568_v23 = vld [vmem:[#allocation2 + $0xb4c] ss:$16 sps:$4 sm:$0xff]   ;;  %v8563_v24 = vld [vmem:[#allocation2 + $0xb40] ss:$16 sps:$4 sm:$0xff]  }
 0x1e6   :  { %5236 = vmatprep.subr.bf16.mxu0 %v8477_v25  ;;  %5728 = vmatprep.subr.bf16.mxu1 %v8480_v26  ;;  %v8566_v25 = vld [vmem:[#allocation2 + $0xb48] ss:$16 sps:$4 sm:$0xff]   ;;  %v8571_v26 = vld [vmem:[#allocation2 + $0xb64] ss:$16 sps:$4 sm:$0xff]  }
 0x1e9   :  { %5237 = vmatpush1.bf16.msra.mxu0 %v8475_v27  ;;  %5729 = vmatpush1.bf16.msra.mxu1 %v8478_v15  ;;  %v8574_v27 = vld [vmem:[#allocation2 + $0xb6c] ss:$16 sps:$4 sm:$0xff]   ;;  %v8569_v15 = vld [vmem:[#allocation2 + $0xb60] ss:$16 sps:$4 sm:$0xff]  }
 0x1ea   :  { %5238 = vmatprep.subr.bf16.mxu0 %v8483_v28  ;;  %5730 = vmatprep.subr.bf16.mxu1 %v8486_v31  ;;  %v8572_v28 = vld [vmem:[#allocation2 + $0xb68] ss:$16 sps:$4 sm:$0xff]   ;;  %v8577_v31 = vld [vmem:[#allocation2 + $0xb84] ss:$16 sps:$4 sm:$0xff]  }
 0x1ed   :  { %5239 = vmatpush1.bf16.msra.mxu0 %v8481_v32  ;;  %5731 = vmatpush1.bf16.msra.mxu1 %v8484_v29  ;;  %v8580_v32 = vld [vmem:[#allocation2 + $0xb8c] ss:$16 sps:$4 sm:$0xff]   ;;  %v8575_v29 = vld [vmem:[#allocation2 + $0xb80] ss:$16 sps:$4 sm:$0xff]  }
 0x1ee   :  { %5240 = vmatprep.subr.bf16.mxu0 %v8489_v30  ;;  %5732 = vmatprep.subr.bf16.mxu1 %v8492_v37  ;;  %v8578_v30 = vld [vmem:[#allocation2 + $0xb88] ss:$16 sps:$4 sm:$0xff]   ;;  %v8583_v37 = vld [vmem:[#allocation2 + $0xba4] ss:$16 sps:$4 sm:$0xff]  }
 0x1f1   :  { %5241 = vmatpush1.bf16.msra.mxu0 %v8487_v38  ;;  %5733 = vmatpush1.bf16.msra.mxu1 %v8490_v39  ;;  %v8586_v38 = vld [vmem:[#allocation2 + $0xbac] ss:$16 sps:$4 sm:$0xff]   ;;  %v8581_v39 = vld [vmem:[#allocation2 + $0xba0] ss:$16 sps:$4 sm:$0xff]  }
 0x1f2   :  { %5242 = vmatprep.subr.bf16.mxu0 %v8495_v40  ;;  %5734 = vmatprep.subr.bf16.mxu1 %v8498_v41  ;;  %v8584_v40 = vld [vmem:[#allocation2 + $0xba8] ss:$16 sps:$4 sm:$0xff]   ;;  %v8589_v41 = vld [vmem:[#allocation2 + $0xbc4] ss:$16 sps:$4 sm:$0xff]  }
 0x1f5   :  { %5243 = vmatpush1.bf16.msra.mxu0 %v8493_v36  ;;  %5735 = vmatpush1.bf16.msra.mxu1 %v8496_v43  ;;  %v8695_v36 = vld [vmem:[%s10000_s0 + $0xc] ss:$24 sps:$4 sm:$0xff]   ;;  %v8696_v43 = vld [vmem:[%s10000_s0 + $0x3c] ss:$24 sps:$4 sm:$0xff]  }
 0x1f6   :  { %5253 = vmatprep.subr.bf16.mxu0 %v8505_v46  ;;  %5745 = vmatprep.subr.bf16.mxu1 %v8508_v47  ;;  %v8587_v46 = vld [vmem:[#allocation2 + $0xbc0] ss:$16 sps:$4 sm:$0xff]   ;;  %v8590_v47 = vld [vmem:[#allocation2 + $0xbc8] ss:$16 sps:$4 sm:$0xff]  }
 0x1f8   :  { %5245 = vmatmul.mubr.bf16.vlgmr.msra.gmra.mrb[0].mxu0 %v9851_v33  ;;  %5737 = vmatmul.mubr.bf16.vlgmr.msra.gmra.mrb[0].mxu1 %v9851_v33 }
 0x1f9   :  { %5254 = vmatpush1.bf16.msra.mxu0 %v8503_v48  ;;  %5746 = vmatpush1.bf16.msra.mxu1 %v8506_v49  ;;  %v8595_v48 = vld [vmem:[#allocation2 + $0xbe4] ss:$16 sps:$4 sm:$0xff]   ;;  %v8598_v49 = vld [vmem:[#allocation2 + $0xbec] ss:$16 sps:$4 sm:$0xff]  }
 0x1fa   :  { %5255 = vmatprep.subr.bf16.mxu0 %v8511_v50  ;;  %5747 = vmatprep.subr.bf16.mxu1 %v8514_v51  ;;  %v9864_v50 = vrot.slane %v8695_v36, %v9781_v53  ;;  %v9867_v51 = vrot.slane %v8696_v43, %v9781_v53  ;;  %v8676_v36 = vld [vmem:[#allocation2 + $0xd8c] ss:$16 sps:$4 sm:$0xff]   ;;  %v8671_v43 = vld [vmem:[#allocation2 + $0xd80] ss:$16 sps:$4 sm:$0xff]  }
 0x1fb   :  { %5285 = vmatprep.mubr.bf16.mxu0 %v1114_v34  ;;  %5777 = vmatprep.mubr.bf16.mxu1 %v1114_v34  ;;  %v8593_v34 = vld [vmem:[#allocation2 + $0xbe0] ss:$16 sps:$4 sm:$0xff]  }
 0x1fd   :  { %5256 = vmatpush1.bf16.msra.mxu0 %v8509_v35  ;;  %5748 = vmatpush1.bf16.msra.mxu1 %v8512_v52  ;;  %v8596_v35 = vld [vmem:[#allocation2 + $0xbe8] ss:$16 sps:$4 sm:$0xff]   ;;  %v8601_v52 = vld [vmem:[#allocation2 + $0xc04] ss:$16 sps:$4 sm:$0xff]  }
 0x1fe   :  { %5257 = vmatprep.subr.bf16.mxu0 %v8517_v54  ;;  %5749 = vmatprep.subr.bf16.mxu1 %v8520_v55  ;;  %v8604_v54 = vld [vmem:[#allocation2 + $0xc0c] ss:$16 sps:$4 sm:$0xff]   ;;  %v1083_v55 = vcombine.high %v9864_v50, %v9867_v51 }
 0x201   :  { %5258 = vmatpush1.bf16.msra.mxu0 %v8515_v56  ;;  %5750 = vmatpush1.bf16.msra.mxu1 %v8518_v57  ;;  %v1112_v56 = vcombine.high %v9851_v33, %v9851_v33  ;;  %v8599_v57 = vld [vmem:[#allocation2 + $0xc00] ss:$16 sps:$4 sm:$0xff]   ;;  %v8613_v33 = vld [vmem:[#allocation2 + $0xc44] ss:$16 sps:$4 sm:$0xff]  }
 0x202   :  { %5259 = vmatprep.subr.bf16.mxu0 %v8523_v44  ;;  %5751 = vmatprep.subr.bf16.mxu1 %v8526_v58  ;;  %v8602_v44 = vld [vmem:[#allocation2 + $0xc08] ss:$16 sps:$4 sm:$0xff]   ;;  %v8607_v58 = vld [vmem:[#allocation2 + $0xc24] ss:$16 sps:$4 sm:$0xff]  }
 0x205   :  { %5260 = vmatpush1.bf16.msra.mxu0 %v8521_v59  ;;  %5752 = vmatpush1.bf16.msra.mxu1 %v8524_v60  ;;  %v8610_v59 = vld [vmem:[#allocation2 + $0xc2c] ss:$16 sps:$4 sm:$0xff]   ;;  %v9874_v60 = vrot.slane %v1083_v55, %v9781_v53  ;;  %v8686_v55 = vld [vmem:[#allocation2 + $0xdc8] ss:$16 sps:$4 sm:$0xff]  }
 0x206   :  { %5261 = vmatprep.subr.bf16.mxu0 %v8529_v61  ;;  %5753 = vmatprep.subr.bf16.mxu1 %v8532_v62  ;;  %v8605_v61 = vld [vmem:[#allocation2 + $0xc20] ss:$16 sps:$4 sm:$0xff]   ;;  %v8608_v62 = vld [vmem:[#allocation2 + $0xc28] ss:$16 sps:$4 sm:$0xff]  }
 0x209   :  { %5262 = vmatpush1.bf16.msra.mxu0 %v8527_v63  ;;  %5754 = vmatpush1.bf16.msra.mxu1 %v8530_v0  ;;  %v8616_v63 = vld [vmem:[#allocation2 + $0xc4c] ss:$16 sps:$4 sm:$0xff]   ;;  %v8611_v0 = vld [vmem:[#allocation2 + $0xc40] ss:$16 sps:$4 sm:$0xff]  }
 0x20a   :  { %5263 = vmatprep.subr.bf16.mxu0 %v8535_v1  ;;  %5755 = vmatprep.subr.bf16.mxu1 %v8538_v2  ;;  %v8614_v1 = vld [vmem:[#allocation2 + $0xc48] ss:$16 sps:$4 sm:$0xff]   ;;  %v8619_v2 = vld [vmem:[#allocation2 + $0xc64] ss:$16 sps:$4 sm:$0xff]  }
 0x20d   :  { %5264 = vmatpush1.bf16.msra.mxu0 %v8533_v3  ;;  %5756 = vmatpush1.bf16.msra.mxu1 %v8536_v4  ;;  %v8622_v3 = vld [vmem:[#allocation2 + $0xc6c] ss:$16 sps:$4 sm:$0xff]   ;;  %v8617_v4 = vld [vmem:[#allocation2 + $0xc60] ss:$16 sps:$4 sm:$0xff]  }
 0x20e   :  { %5265 = vmatprep.subr.bf16.mxu0 %v8541_v5  ;;  %5757 = vmatprep.subr.bf16.mxu1 %v8544_v6  ;;  %v8620_v5 = vld [vmem:[#allocation2 + $0xc68] ss:$16 sps:$4 sm:$0xff]   ;;  %v8625_v6 = vld [vmem:[#allocation2 + $0xc84] ss:$16 sps:$4 sm:$0xff]  }
 0x211   :  { %5266 = vmatpush1.bf16.msra.mxu0 %v8539_v7  ;;  %5758 = vmatpush1.bf16.msra.mxu1 %v8542_v8  ;;  %v8628_v7 = vld [vmem:[#allocation2 + $0xc8c] ss:$16 sps:$4 sm:$0xff]   ;;  %v8623_v8 = vld [vmem:[#allocation2 + $0xc80] ss:$16 sps:$4 sm:$0xff]  }
 0x212   :  { %5267 = vmatprep.subr.bf16.mxu0 %v8547_v9  ;;  %5759 = vmatprep.subr.bf16.mxu1 %v8550_v10  ;;  %v8626_v9 = vld [vmem:[#allocation2 + $0xc88] ss:$16 sps:$4 sm:$0xff]   ;;  %v8631_v10 = vld [vmem:[#allocation2 + $0xca4] ss:$16 sps:$4 sm:$0xff]  }
 0x215   :  { %5268 = vmatpush1.bf16.msra.mxu0 %v8545_v11  ;;  %5760 = vmatpush1.bf16.msra.mxu1 %v8548_v12  ;;  %v8634_v11 = vld [vmem:[#allocation2 + $0xcac] ss:$16 sps:$4 sm:$0xff]   ;;  %v8629_v12 = vld [vmem:[#allocation2 + $0xca0] ss:$16 sps:$4 sm:$0xff]  }
 0x216   :  { %5269 = vmatprep.subr.bf16.mxu0 %v8553_v13  ;;  %5761 = vmatprep.subr.bf16.mxu1 %v8556_v14  ;;  %v8632_v13 = vld [vmem:[#allocation2 + $0xca8] ss:$16 sps:$4 sm:$0xff]   ;;  %v8637_v14 = vld [vmem:[#allocation2 + $0xcc4] ss:$16 sps:$4 sm:$0xff]  }
 0x219   :  { %5270 = vmatpush1.bf16.msra.mxu0 %v8551_v16  ;;  %5762 = vmatpush1.bf16.msra.mxu1 %v8554_v17  ;;  %v8640_v16 = vld [vmem:[#allocation2 + $0xccc] ss:$16 sps:$4 sm:$0xff]   ;;  %v8635_v17 = vld [vmem:[#allocation2 + $0xcc0] ss:$16 sps:$4 sm:$0xff]  }
 0x21a   :  { %5271 = vmatprep.subr.bf16.mxu0 %v8559_v18  ;;  %5763 = vmatprep.subr.bf16.mxu1 %v8562_v19  ;;  %v8638_v18 = vld [vmem:[#allocation2 + $0xcc8] ss:$16 sps:$4 sm:$0xff]   ;;  %v8643_v19 = vld [vmem:[#allocation2 + $0xce4] ss:$16 sps:$4 sm:$0xff]  }
 0x21d   :  { %5272 = vmatpush1.bf16.msra.mxu0 %v8557_v20  ;;  %5764 = vmatpush1.bf16.msra.mxu1 %v8560_v21  ;;  %v8646_v20 = vld [vmem:[#allocation2 + $0xcec] ss:$16 sps:$4 sm:$0xff]   ;;  %v8641_v21 = vld [vmem:[#allocation2 + $0xce0] ss:$16 sps:$4 sm:$0xff]  }
 0x21e   :  { %5273 = vmatprep.subr.bf16.mxu0 %v8565_v22  ;;  %5765 = vmatprep.subr.bf16.mxu1 %v8568_v23  ;;  %v8644_v22 = vld [vmem:[#allocation2 + $0xce8] ss:$16 sps:$4 sm:$0xff]   ;;  %v8649_v23 = vld [vmem:[#allocation2 + $0xd04] ss:$16 sps:$4 sm:$0xff]  }
 0x221   :  { %5274 = vmatpush1.bf16.msra.mxu0 %v8563_v24  ;;  %5766 = vmatpush1.bf16.msra.mxu1 %v8566_v25  ;;  %v8652_v24 = vld [vmem:[#allocation2 + $0xd0c] ss:$16 sps:$4 sm:$0xff]   ;;  %v8647_v25 = vld [vmem:[#allocation2 + $0xd00] ss:$16 sps:$4 sm:$0xff]  }
 0x222   :  { %5275 = vmatprep.subr.bf16.mxu0 %v8571_v26  ;;  %5767 = vmatprep.subr.bf16.mxu1 %v8574_v27  ;;  %v8650_v26 = vld [vmem:[#allocation2 + $0xd08] ss:$16 sps:$4 sm:$0xff]   ;;  %v8655_v27 = vld [vmem:[#allocation2 + $0xd24] ss:$16 sps:$4 sm:$0xff]  }
 0x225   :  { %5276 = vmatpush1.bf16.msra.mxu0 %v8569_v15  ;;  %5768 = vmatpush1.bf16.msra.mxu1 %v8572_v28  ;;  %v8658_v15 = vld [vmem:[#allocation2 + $0xd2c] ss:$16 sps:$4 sm:$0xff]   ;;  %v8653_v28 = vld [vmem:[#allocation2 + $0xd20] ss:$16 sps:$4 sm:$0xff]  }
 0x226   :  { %5277 = vmatprep.subr.bf16.mxu0 %v8577_v31  ;;  %5769 = vmatprep.subr.bf16.mxu1 %v8580_v32  ;;  %v8656_v31 = vld [vmem:[#allocation2 + $0xd28] ss:$16 sps:$4 sm:$0xff]   ;;  %v8661_v32 = vld [vmem:[#allocation2 + $0xd44] ss:$16 sps:$4 sm:$0xff]  }
 0x229   :  { %5278 = vmatpush1.bf16.msra.mxu0 %v8575_v29  ;;  %5770 = vmatpush1.bf16.msra.mxu1 %v8578_v30  ;;  %v8664_v29 = vld [vmem:[#allocation2 + $0xd4c] ss:$16 sps:$4 sm:$0xff]   ;;  %v8659_v30 = vld [vmem:[#allocation2 + $0xd40] ss:$16 sps:$4 sm:$0xff]  }
 0x22a   :  { %5279 = vmatprep.subr.bf16.mxu0 %v8583_v37  ;;  %5771 = vmatprep.subr.bf16.mxu1 %v8586_v38  ;;  %v8662_v37 = vld [vmem:[#allocation2 + $0xd48] ss:$16 sps:$4 sm:$0xff]   ;;  %v8667_v38 = vld [vmem:[#allocation2 + $0xd64] ss:$16 sps:$4 sm:$0xff]  }
 0x22d   :  { %5280 = vmatpush1.bf16.msra.mxu0 %v8581_v39  ;;  %5772 = vmatpush1.bf16.msra.mxu1 %v8584_v40  ;;  %v8670_v39 = vld [vmem:[#allocation2 + $0xd6c] ss:$16 sps:$4 sm:$0xff]   ;;  %v8665_v40 = vld [vmem:[#allocation2 + $0xd60] ss:$16 sps:$4 sm:$0xff]  }
 0x22e   :  { %5281 = vmatprep.subr.bf16.mxu0 %v8589_v41  ;;  %5773 = vmatprep.subr.bf16.mxu1 %v8592_v42  ;;  %v8668_v41 = vld [vmem:[#allocation2 + $0xd68] ss:$16 sps:$4 sm:$0xff]   ;;  %v8673_v42 = vld [vmem:[#allocation2 + $0xd84] ss:$16 sps:$4 sm:$0xff]  }
 0x231   :  { %5282 = vmatpush1.bf16.msra.mxu0 %v8587_v46  ;;  %5774 = vmatpush1.bf16.msra.mxu1 %v8590_v47  ;;  %v8674_v46 = vld [vmem:[#allocation2 + $0xd88] ss:$16 sps:$4 sm:$0xff]   ;;  %v8679_v47 = vld [vmem:[#allocation2 + $0xda4] ss:$16 sps:$4 sm:$0xff]  }
 0x232   :  { %5283 = vmatprep.subr.bf16.mxu0 %v8595_v48  ;;  %5775 = vmatprep.subr.bf16.mxu1 %v8598_v49  ;;  %v8682_v48 = vld [vmem:[#allocation2 + $0xdac] ss:$16 sps:$4 sm:$0xff]   ;;  %v8677_v49 = vld [vmem:[#allocation2 + $0xda0] ss:$16 sps:$4 sm:$0xff]  }
 0x235   :  { %5284 = vmatpush1.bf16.msra.mxu0 %v8593_v34  ;;  %5776 = vmatpush1.bf16.msra.mxu1 %v8596_v35  ;;  %v8680_v34 = vld [vmem:[#allocation2 + $0xda8] ss:$16 sps:$4 sm:$0xff]   ;;  %v8685_v35 = vld [vmem:[#allocation2 + $0xdc4] ss:$16 sps:$4 sm:$0xff]  }
 0x236   :  { %5294 = vmatprep.subr.bf16.mxu0 %v8601_v52  ;;  %5786 = vmatprep.subr.bf16.mxu1 %v8604_v54  ;;  %v8688_v52 = vld [vmem:[#allocation2 + $0xdcc] ss:$16 sps:$4 sm:$0xff]   ;;  %v8683_v54 = vld [vmem:[#allocation2 + $0xdc0] ss:$16 sps:$4 sm:$0xff]  }
 0x238   :  { %5286 = vmatmul.mubr.bf16.vlgmr.msra.gmra.mrb[0].mxu0 %v1112_v56  ;;  %5778 = vmatmul.mubr.bf16.vlgmr.msra.gmra.mrb[0].mxu1 %v1112_v56  ;;  %v8691_v56 = vld [vmem:[#allocation2 + $0xde4] ss:$16 sps:$4 sm:$0xff]  }
 0x239   :  { %5295 = vmatpush1.bf16.msra.mxu0 %v8599_v57  ;;  %5787 = vmatpush1.bf16.msra.mxu1 %v8602_v44  ;;  %v8694_v57 = vld [vmem:[#allocation2 + $0xdec] ss:$16 sps:$4 sm:$0xff]   ;;  %v1082_v44 = vcombine.low %v9864_v50, %v9867_v51  ;;  %v1115_v50 = vcombine.high %v9874_v60, %v9874_v60  ;;  %v8703_v51 = vld [vmem:[#allocation2 + $0xe20] ss:$16 sps:$4 sm:$0xff]  }
 0x23a   :  { %5296 = vmatprep.subr.bf16.mxu0 %v8607_v58  ;;  %5788 = vmatprep.subr.bf16.mxu1 %v8610_v59  ;;  %v8689_v58 = vld [vmem:[#allocation2 + $0xde0] ss:$16 sps:$4 sm:$0xff]   ;;  %v8692_v59 = vld [vmem:[#allocation2 + $0xde8] ss:$16 sps:$4 sm:$0xff]  }
 0x23b   :  { %5326 = vmatprep.mubr.bf16.mxu0 %v9874_v60  ;;  %5818 = vmatprep.mubr.bf16.mxu1 %v9874_v60  ;;  %v8717_v60 = vld [vmem:[#allocation2 + $0xe64] ss:$16 sps:$4 sm:$0xff]  }
 0x23d   :  { %5297 = vmatpush1.bf16.msra.mxu0 %v8605_v61  ;;  %5789 = vmatpush1.bf16.msra.mxu1 %v8608_v62  ;;  %v8699_v61 = vld [vmem:[#allocation2 + $0xe04] ss:$16 sps:$4 sm:$0xff]   ;;  %v8702_v62 = vld [vmem:[#allocation2 + $0xe0c] ss:$16 sps:$4 sm:$0xff]  }
 0x23e   :  { %5298 = vmatprep.subr.bf16.mxu0 %v8613_v33  ;;  %5790 = vmatprep.subr.bf16.mxu1 %v8616_v63  ;;  %v9881_v33 = vrot.slane %v1082_v44, %v9781_v53  ;;  %v8697_v63 = vld [vmem:[#allocation2 + $0xe00] ss:$16 sps:$4 sm:$0xff]   ;;  %v8786_v44 = vld [vmem:[#allocation2 + $0xfcc] ss:$16 sps:$4 sm:$0xff]  }
 0x241   :  { %5299 = vmatpush1.bf16.msra.mxu0 %v8611_v0  ;;  %5791 = vmatpush1.bf16.msra.mxu1 %v8614_v1  ;;  %v8700_v0 = vld [vmem:[#allocation2 + $0xe08] ss:$16 sps:$4 sm:$0xff]   ;;  %v8705_v1 = vld [vmem:[#allocation2 + $0xe24] ss:$16 sps:$4 sm:$0xff]  }
 0x242   :  { %5300 = vmatprep.subr.bf16.mxu0 %v8619_v2  ;;  %5792 = vmatprep.subr.bf16.mxu1 %v8622_v3  ;;  %v8708_v2 = vld [vmem:[#allocation2 + $0xe2c] ss:$16 sps:$4 sm:$0xff]   ;;  %v8706_v3 = vld [vmem:[#allocation2 + $0xe28] ss:$16 sps:$4 sm:$0xff]  }
 0x245   :  { %5301 = vmatpush1.bf16.msra.mxu0 %v8617_v4  ;;  %5793 = vmatpush1.bf16.msra.mxu1 %v8620_v5  ;;  %v8711_v4 = vld [vmem:[#allocation2 + $0xe44] ss:$16 sps:$4 sm:$0xff]   ;;  %v8714_v5 = vld [vmem:[#allocation2 + $0xe4c] ss:$16 sps:$4 sm:$0xff]  }
 0x246   :  { %5302 = vmatprep.subr.bf16.mxu0 %v8625_v6  ;;  %5794 = vmatprep.subr.bf16.mxu1 %v8628_v7  ;;  %v8709_v6 = vld [vmem:[#allocation2 + $0xe40] ss:$16 sps:$4 sm:$0xff]   ;;  %v8712_v7 = vld [vmem:[#allocation2 + $0xe48] ss:$16 sps:$4 sm:$0xff]  }
 0x249   :  { %5303 = vmatpush1.bf16.msra.mxu0 %v8623_v8  ;;  %5795 = vmatpush1.bf16.msra.mxu1 %v8626_v9  ;;  %v8720_v8 = vld [vmem:[#allocation2 + $0xe6c] ss:$16 sps:$4 sm:$0xff]   ;;  %v8715_v9 = vld [vmem:[#allocation2 + $0xe60] ss:$16 sps:$4 sm:$0xff]  }
 0x24a   :  { %5304 = vmatprep.subr.bf16.mxu0 %v8631_v10  ;;  %5796 = vmatprep.subr.bf16.mxu1 %v8634_v11  ;;  %v8718_v10 = vld [vmem:[#allocation2 + $0xe68] ss:$16 sps:$4 sm:$0xff]   ;;  %v8723_v11 = vld [vmem:[#allocation2 + $0xe84] ss:$16 sps:$4 sm:$0xff]  }
 0x24d   :  { %5305 = vmatpush1.bf16.msra.mxu0 %v8629_v12  ;;  %5797 = vmatpush1.bf16.msra.mxu1 %v8632_v13  ;;  %v8726_v12 = vld [vmem:[#allocation2 + $0xe8c] ss:$16 sps:$4 sm:$0xff]   ;;  %v8721_v13 = vld [vmem:[#allocation2 + $0xe80] ss:$16 sps:$4 sm:$0xff]  }
 0x24e   :  { %5306 = vmatprep.subr.bf16.mxu0 %v8637_v14  ;;  %5798 = vmatprep.subr.bf16.mxu1 %v8640_v16  ;;  %v8724_v14 = vld [vmem:[#allocation2 + $0xe88] ss:$16 sps:$4 sm:$0xff]   ;;  %v8729_v16 = vld [vmem:[#allocation2 + $0xea4] ss:$16 sps:$4 sm:$0xff]  }
 0x251   :  { %5307 = vmatpush1.bf16.msra.mxu0 %v8635_v17  ;;  %5799 = vmatpush1.bf16.msra.mxu1 %v8638_v18  ;;  %v8732_v17 = vld [vmem:[#allocation2 + $0xeac] ss:$16 sps:$4 sm:$0xff]   ;;  %v8727_v18 = vld [vmem:[#allocation2 + $0xea0] ss:$16 sps:$4 sm:$0xff]  }
 0x252   :  { %5308 = vmatprep.subr.bf16.mxu0 %v8643_v19  ;;  %5800 = vmatprep.subr.bf16.mxu1 %v8646_v20  ;;  %v8730_v19 = vld [vmem:[#allocation2 + $0xea8] ss:$16 sps:$4 sm:$0xff]   ;;  %v8735_v20 = vld [vmem:[#allocation2 + $0xec4] ss:$16 sps:$4 sm:$0xff]  }
 0x255   :  { %5309 = vmatpush1.bf16.msra.mxu0 %v8641_v21  ;;  %5801 = vmatpush1.bf16.msra.mxu1 %v8644_v22  ;;  %v8738_v21 = vld [vmem:[#allocation2 + $0xecc] ss:$16 sps:$4 sm:$0xff]   ;;  %v8733_v22 = vld [vmem:[#allocation2 + $0xec0] ss:$16 sps:$4 sm:$0xff]  }
 0x256   :  { %5310 = vmatprep.subr.bf16.mxu0 %v8649_v23  ;;  %5802 = vmatprep.subr.bf16.mxu1 %v8652_v24  ;;  %v8736_v23 = vld [vmem:[#allocation2 + $0xec8] ss:$16 sps:$4 sm:$0xff]   ;;  %v8741_v24 = vld [vmem:[#allocation2 + $0xee4] ss:$16 sps:$4 sm:$0xff]  }
 0x259   :  { %5311 = vmatpush1.bf16.msra.mxu0 %v8647_v25  ;;  %5803 = vmatpush1.bf16.msra.mxu1 %v8650_v26  ;;  %v8744_v25 = vld [vmem:[#allocation2 + $0xeec] ss:$16 sps:$4 sm:$0xff]   ;;  %v8739_v26 = vld [vmem:[#allocation2 + $0xee0] ss:$16 sps:$4 sm:$0xff]  }
 0x25a   :  { %5312 = vmatprep.subr.bf16.mxu0 %v8655_v27  ;;  %5804 = vmatprep.subr.bf16.mxu1 %v8658_v15  ;;  %v8742_v27 = vld [vmem:[#allocation2 + $0xee8] ss:$16 sps:$4 sm:$0xff]   ;;  %v8747_v15 = vld [vmem:[#allocation2 + $0xf04] ss:$16 sps:$4 sm:$0xff]  }
 0x25d   :  { %5313 = vmatpush1.bf16.msra.mxu0 %v8653_v28  ;;  %5805 = vmatpush1.bf16.msra.mxu1 %v8656_v31  ;;  %v8750_v28 = vld [vmem:[#allocation2 + $0xf0c] ss:$16 sps:$4 sm:$0xff]   ;;  %v8745_v31 = vld [vmem:[#allocation2 + $0xf00] ss:$16 sps:$4 sm:$0xff]  }
 0x25e   :  { %5314 = vmatprep.subr.bf16.mxu0 %v8661_v32  ;;  %5806 = vmatprep.subr.bf16.mxu1 %v8664_v29  ;;  %v8748_v32 = vld [vmem:[#allocation2 + $0xf08] ss:$16 sps:$4 sm:$0xff]   ;;  %v8753_v29 = vld [vmem:[#allocation2 + $0xf24] ss:$16 sps:$4 sm:$0xff]  }
 0x261   :  { %5315 = vmatpush1.bf16.msra.mxu0 %v8659_v30  ;;  %5807 = vmatpush1.bf16.msra.mxu1 %v8662_v37  ;;  %v8756_v30 = vld [vmem:[#allocation2 + $0xf2c] ss:$16 sps:$4 sm:$0xff]   ;;  %v8751_v37 = vld [vmem:[#allocation2 + $0xf20] ss:$16 sps:$4 sm:$0xff]  }
 0x262   :  { %5316 = vmatprep.subr.bf16.mxu0 %v8667_v38  ;;  %5808 = vmatprep.subr.bf16.mxu1 %v8670_v39  ;;  %v8754_v38 = vld [vmem:[#allocation2 + $0xf28] ss:$16 sps:$4 sm:$0xff]   ;;  %v8759_v39 = vld [vmem:[#allocation2 + $0xf44] ss:$16 sps:$4 sm:$0xff]  }
 0x265   :  { %5317 = vmatpush1.bf16.msra.mxu0 %v8665_v40  ;;  %5809 = vmatpush1.bf16.msra.mxu1 %v8668_v41  ;;  %v8762_v40 = vld [vmem:[#allocation2 + $0xf4c] ss:$16 sps:$4 sm:$0xff]   ;;  %v8757_v41 = vld [vmem:[#allocation2 + $0xf40] ss:$16 sps:$4 sm:$0xff]  }
 0x266   :  { %5318 = vmatprep.subr.bf16.mxu0 %v8673_v42  ;;  %5810 = vmatprep.subr.bf16.mxu1 %v8676_v36  ;;  %v8760_v42 = vld [vmem:[#allocation2 + $0xf48] ss:$16 sps:$4 sm:$0xff]   ;;  %v8765_v36 = vld [vmem:[#allocation2 + $0xf64] ss:$16 sps:$4 sm:$0xff]  }
 0x269   :  { %5319 = vmatpush1.bf16.msra.mxu0 %v8671_v43  ;;  %5811 = vmatpush1.bf16.msra.mxu1 %v8674_v46  ;;  %v8768_v43 = vld [vmem:[#allocation2 + $0xf6c] ss:$16 sps:$4 sm:$0xff]   ;;  %v8763_v46 = vld [vmem:[#allocation2 + $0xf60] ss:$16 sps:$4 sm:$0xff]  }
 0x26a   :  { %5320 = vmatprep.subr.bf16.mxu0 %v8679_v47  ;;  %5812 = vmatprep.subr.bf16.mxu1 %v8682_v48  ;;  %v8766_v47 = vld [vmem:[#allocation2 + $0xf68] ss:$16 sps:$4 sm:$0xff]   ;;  %v8771_v48 = vld [vmem:[#allocation2 + $0xf84] ss:$16 sps:$4 sm:$0xff]  }
 0x26d   :  { %5321 = vmatpush1.bf16.msra.mxu0 %v8677_v49  ;;  %5813 = vmatpush1.bf16.msra.mxu1 %v8680_v34  ;;  %v8774_v49 = vld [vmem:[#allocation2 + $0xf8c] ss:$16 sps:$4 sm:$0xff]   ;;  %v8769_v34 = vld [vmem:[#allocation2 + $0xf80] ss:$16 sps:$4 sm:$0xff]  }
 0x26e   :  { %5322 = vmatprep.subr.bf16.mxu0 %v8685_v35  ;;  %5814 = vmatprep.subr.bf16.mxu1 %v8688_v52  ;;  %v8772_v35 = vld [vmem:[#allocation2 + $0xf88] ss:$16 sps:$4 sm:$0xff]   ;;  %v8777_v52 = vld [vmem:[#allocation2 + $0xfa4] ss:$16 sps:$4 sm:$0xff]  }
 0x271   :  { %5323 = vmatpush1.bf16.msra.mxu0 %v8683_v54  ;;  %5815 = vmatpush1.bf16.msra.mxu1 %v8686_v55  ;;  %v8780_v54 = vld [vmem:[#allocation2 + $0xfac] ss:$16 sps:$4 sm:$0xff]   ;;  %v8775_v55 = vld [vmem:[#allocation2 + $0xfa0] ss:$16 sps:$4 sm:$0xff]  }
 0x272   :  { %5324 = vmatprep.subr.bf16.mxu0 %v8691_v56  ;;  %5816 = vmatprep.subr.bf16.mxu1 %v8694_v57  ;;  %v8778_v56 = vld [vmem:[#allocation2 + $0xfa8] ss:$16 sps:$4 sm:$0xff]   ;;  %v8783_v57 = vld [vmem:[#allocation2 + $0xfc4] ss:$16 sps:$4 sm:$0xff]  }
 0x275   :  { %5325 = vmatpush1.bf16.msra.mxu0 %v8689_v58  ;;  %5817 = vmatpush1.bf16.msra.mxu1 %v8692_v59  ;;  %v8889_v58 = vld [vmem:[%s10000_s0 + $0x10] ss:$24 sps:$4 sm:$0xff]   ;;  %v8891_v59 = vld [vmem:[%s10000_s0 + $0x40] ss:$24 sps:$4 sm:$0xff]  }
 0x276   :  { %5335 = vmatprep.subr.bf16.mxu0 %v8699_v61  ;;  %5827 = vmatprep.subr.bf16.mxu1 %v8702_v62  ;;  %v8781_v61 = vld [vmem:[#allocation2 + $0xfc0] ss:$16 sps:$4 sm:$0xff]   ;;  %v8784_v62 = vld [vmem:[#allocation2 + $0xfc8] ss:$16 sps:$4 sm:$0xff]  }
 0x278   :  { %5327 = vmatmul.mubr.bf16.vlgmr.msra.gmra.mrb[0].mxu0 %v9881_v33  ;;  %5819 = vmatmul.mubr.bf16.vlgmr.msra.gmra.mrb[0].mxu1 %v9881_v33 }
 0x279   :  { %5336 = vmatpush1.bf16.msra.mxu0 %v8697_v63  ;;  %5828 = vmatpush1.bf16.msra.mxu1 %v8700_v0  ;;  %v8789_v63 = vld [vmem:[#allocation2 + $0xfe4] ss:$16 sps:$4 sm:$0xff]   ;;  %v8792_v0 = vld [vmem:[#allocation2 + $0xfec] ss:$16 sps:$4 sm:$0xff]  }
 0x27a   :  { %5337 = vmatprep.subr.bf16.mxu0 %v8705_v1  ;;  %5829 = vmatprep.subr.bf16.mxu1 %v8708_v2  ;;  %v9894_v1 = vrot.slane %v8889_v58, %v9781_v53  ;;  %v9897_v2 = vrot.slane %v8891_v59, %v9781_v53  ;;  %v8870_v58 = vld [vmem:[#allocation2 + $0x118c] ss:$16 sps:$4 sm:$0xff]   ;;  %v8865_v59 = vld [vmem:[#allocation2 + $0x1180] ss:$16 sps:$4 sm:$0xff]  }
 0x27b   :  { %5367 = vmatprep.mubr.bf16.mxu0 %v1115_v50  ;;  %5859 = vmatprep.mubr.bf16.mxu1 %v1115_v50  ;;  %v8787_v50 = vld [vmem:[#allocation2 + $0xfe0] ss:$16 sps:$4 sm:$0xff]  }
 0x27d   :  { %5338 = vmatpush1.bf16.msra.mxu0 %v8703_v51  ;;  %5830 = vmatpush1.bf16.msra.mxu1 %v8706_v3  ;;  %v8790_v51 = vld [vmem:[#allocation2 + $0xfe8] ss:$16 sps:$4 sm:$0xff]   ;;  %v8795_v3 = vld [vmem:[#allocation2 + $0x1004] ss:$16 sps:$4 sm:$0xff]  }
 0x27e   :  { %5339 = vmatprep.subr.bf16.mxu0 %v8711_v4  ;;  %5831 = vmatprep.subr.bf16.mxu1 %v8714_v5  ;;  %v8798_v4 = vld [vmem:[#allocation2 + $0x100c] ss:$16 sps:$4 sm:$0xff]   ;;  %v1149_v5 = vcombine.high %v9894_v1, %v9897_v2 }
 0x281   :  { %5340 = vmatpush1.bf16.msra.mxu0 %v8709_v6  ;;  %5832 = vmatpush1.bf16.msra.mxu1 %v8712_v7  ;;  %v1113_v6 = vcombine.high %v9881_v33, %v9881_v33  ;;  %v8793_v7 = vld [vmem:[#allocation2 + $0x1000] ss:$16 sps:$4 sm:$0xff]   ;;  %v8807_v33 = vld [vmem:[#allocation2 + $0x1044] ss:$16 sps:$4 sm:$0xff]  }
 0x282   :  { %5341 = vmatprep.subr.bf16.mxu0 %v8717_v60  ;;  %5833 = vmatprep.subr.bf16.mxu1 %v8720_v8  ;;  %v8796_v60 = vld [vmem:[#allocation2 + $0x1008] ss:$16 sps:$4 sm:$0xff]   ;;  %v8801_v8 = vld [vmem:[#allocation2 + $0x1024] ss:$16 sps:$4 sm:$0xff]  }
 0x285   :  { %5342 = vmatpush1.bf16.msra.mxu0 %v8715_v9  ;;  %5834 = vmatpush1.bf16.msra.mxu1 %v8718_v10  ;;  %v8804_v9 = vld [vmem:[#allocation2 + $0x102c] ss:$16 sps:$4 sm:$0xff]   ;;  %v9904_v10 = vrot.slane %v1149_v5, %v9781_v53  ;;  %v8880_v5 = vld [vmem:[#allocation2 + $0x11c8] ss:$16 sps:$4 sm:$0xff]  }
 0x286   :  { %5343 = vmatprep.subr.bf16.mxu0 %v8723_v11  ;;  %5835 = vmatprep.subr.bf16.mxu1 %v8726_v12  ;;  %v8799_v11 = vld [vmem:[#allocation2 + $0x1020] ss:$16 sps:$4 sm:$0xff]   ;;  %v8802_v12 = vld [vmem:[#allocation2 + $0x1028] ss:$16 sps:$4 sm:$0xff]  }
 0x289   :  { %5344 = vmatpush1.bf16.msra.mxu0 %v8721_v13  ;;  %5836 = vmatpush1.bf16.msra.mxu1 %v8724_v14  ;;  %v8810_v13 = vld [vmem:[#allocation2 + $0x104c] ss:$16 sps:$4 sm:$0xff]   ;;  %v8805_v14 = vld [vmem:[#allocation2 + $0x1040] ss:$16 sps:$4 sm:$0xff]  }
 0x28a   :  { %5345 = vmatprep.subr.bf16.mxu0 %v8729_v16  ;;  %5837 = vmatprep.subr.bf16.mxu1 %v8732_v17  ;;  %v8808_v16 = vld [vmem:[#allocation2 + $0x1048] ss:$16 sps:$4 sm:$0xff]   ;;  %v8813_v17 = vld [vmem:[#allocation2 + $0x1064] ss:$16 sps:$4 sm:$0xff]  }
 0x28d   :  { %5346 = vmatpush1.bf16.msra.mxu0 %v8727_v18  ;;  %5838 = vmatpush1.bf16.msra.mxu1 %v8730_v19  ;;  %v8816_v18 = vld [vmem:[#allocation2 + $0x106c] ss:$16 sps:$4 sm:$0xff]   ;;  %v8811_v19 = vld [vmem:[#allocation2 + $0x1060] ss:$16 sps:$4 sm:$0xff]  }
 0x28e   :  { %5347 = vmatprep.subr.bf16.mxu0 %v8735_v20  ;;  %5839 = vmatprep.subr.bf16.mxu1 %v8738_v21  ;;  %v8814_v20 = vld [vmem:[#allocation2 + $0x1068] ss:$16 sps:$4 sm:$0xff]   ;;  %v8819_v21 = vld [vmem:[#allocation2 + $0x1084] ss:$16 sps:$4 sm:$0xff]  }
 0x291   :  { %5348 = vmatpush1.bf16.msra.mxu0 %v8733_v22  ;;  %5840 = vmatpush1.bf16.msra.mxu1 %v8736_v23  ;;  %v8822_v22 = vld [vmem:[#allocation2 + $0x108c] ss:$16 sps:$4 sm:$0xff]   ;;  %v8817_v23 = vld [vmem:[#allocation2 + $0x1080] ss:$16 sps:$4 sm:$0xff]  }
 0x292   :  { %5349 = vmatprep.subr.bf16.mxu0 %v8741_v24  ;;  %5841 = vmatprep.subr.bf16.mxu1 %v8744_v25  ;;  %v8820_v24 = vld [vmem:[#allocation2 + $0x1088] ss:$16 sps:$4 sm:$0xff]   ;;  %v8825_v25 = vld [vmem:[#allocation2 + $0x10a4] ss:$16 sps:$4 sm:$0xff]  }
 0x295   :  { %5350 = vmatpush1.bf16.msra.mxu0 %v8739_v26  ;;  %5842 = vmatpush1.bf16.msra.mxu1 %v8742_v27  ;;  %v8828_v26 = vld [vmem:[#allocation2 + $0x10ac] ss:$16 sps:$4 sm:$0xff]   ;;  %v8823_v27 = vld [vmem:[#allocation2 + $0x10a0] ss:$16 sps:$4 sm:$0xff]  }
 0x296   :  { %5351 = vmatprep.subr.bf16.mxu0 %v8747_v15  ;;  %5843 = vmatprep.subr.bf16.mxu1 %v8750_v28  ;;  %v8826_v15 = vld [vmem:[#allocation2 + $0x10a8] ss:$16 sps:$4 sm:$0xff]   ;;  %v8831_v28 = vld [vmem:[#allocation2 + $0x10c4] ss:$16 sps:$4 sm:$0xff]  }
 0x299   :  { %5352 = vmatpush1.bf16.msra.mxu0 %v8745_v31  ;;  %5844 = vmatpush1.bf16.msra.mxu1 %v8748_v32  ;;  %v8834_v31 = vld [vmem:[#allocation2 + $0x10cc] ss:$16 sps:$4 sm:$0xff]   ;;  %v8829_v32 = vld [vmem:[#allocation2 + $0x10c0] ss:$16 sps:$4 sm:$0xff]  }
 0x29a   :  { %5353 = vmatprep.subr.bf16.mxu0 %v8753_v29  ;;  %5845 = vmatprep.subr.bf16.mxu1 %v8756_v30  ;;  %v8832_v29 = vld [vmem:[#allocation2 + $0x10c8] ss:$16 sps:$4 sm:$0xff]   ;;  %v8837_v30 = vld [vmem:[#allocation2 + $0x10e4] ss:$16 sps:$4 sm:$0xff]  }
 0x29d   :  { %5354 = vmatpush1.bf16.msra.mxu0 %v8751_v37  ;;  %5846 = vmatpush1.bf16.msra.mxu1 %v8754_v38  ;;  %v8840_v37 = vld [vmem:[#allocation2 + $0x10ec] ss:$16 sps:$4 sm:$0xff]   ;;  %v8835_v38 = vld [vmem:[#allocation2 + $0x10e0] ss:$16 sps:$4 sm:$0xff]  }
 0x29e   :  { %5355 = vmatprep.subr.bf16.mxu0 %v8759_v39  ;;  %5847 = vmatprep.subr.bf16.mxu1 %v8762_v40  ;;  %v8838_v39 = vld [vmem:[#allocation2 + $0x10e8] ss:$16 sps:$4 sm:$0xff]   ;;  %v8843_v40 = vld [vmem:[#allocation2 + $0x1104] ss:$16 sps:$4 sm:$0xff]  }
 0x2a1   :  { %5356 = vmatpush1.bf16.msra.mxu0 %v8757_v41  ;;  %5848 = vmatpush1.bf16.msra.mxu1 %v8760_v42  ;;  %v8846_v41 = vld [vmem:[#allocation2 + $0x110c] ss:$16 sps:$4 sm:$0xff]   ;;  %v8841_v42 = vld [vmem:[#allocation2 + $0x1100] ss:$16 sps:$4 sm:$0xff]  }
 0x2a2   :  { %5357 = vmatprep.subr.bf16.mxu0 %v8765_v36  ;;  %5849 = vmatprep.subr.bf16.mxu1 %v8768_v43  ;;  %v8844_v36 = vld [vmem:[#allocation2 + $0x1108] ss:$16 sps:$4 sm:$0xff]   ;;  %v8849_v43 = vld [vmem:[#allocation2 + $0x1124] ss:$16 sps:$4 sm:$0xff]  }
 0x2a5   :  { %5358 = vmatpush1.bf16.msra.mxu0 %v8763_v46  ;;  %5850 = vmatpush1.bf16.msra.mxu1 %v8766_v47  ;;  %v8852_v46 = vld [vmem:[#allocation2 + $0x112c] ss:$16 sps:$4 sm:$0xff]   ;;  %v8847_v47 = vld [vmem:[#allocation2 + $0x1120] ss:$16 sps:$4 sm:$0xff]  }
 0x2a6   :  { %5359 = vmatprep.subr.bf16.mxu0 %v8771_v48  ;;  %5851 = vmatprep.subr.bf16.mxu1 %v8774_v49  ;;  %v8850_v48 = vld [vmem:[#allocation2 + $0x1128] ss:$16 sps:$4 sm:$0xff]   ;;  %v8855_v49 = vld [vmem:[#allocation2 + $0x1144] ss:$16 sps:$4 sm:$0xff]  }
 0x2a9   :  { %5360 = vmatpush1.bf16.msra.mxu0 %v8769_v34  ;;  %5852 = vmatpush1.bf16.msra.mxu1 %v8772_v35  ;;  %v8858_v34 = vld [vmem:[#allocation2 + $0x114c] ss:$16 sps:$4 sm:$0xff]   ;;  %v8853_v35 = vld [vmem:[#allocation2 + $0x1140] ss:$16 sps:$4 sm:$0xff]  }
 0x2aa   :  { %5361 = vmatprep.subr.bf16.mxu0 %v8777_v52  ;;  %5853 = vmatprep.subr.bf16.mxu1 %v8780_v54  ;;  %v8856_v52 = vld [vmem:[#allocation2 + $0x1148] ss:$16 sps:$4 sm:$0xff]   ;;  %v8861_v54 = vld [vmem:[#allocation2 + $0x1164] ss:$16 sps:$4 sm:$0xff]  }
 0x2ad   :  { %5362 = vmatpush1.bf16.msra.mxu0 %v8775_v55  ;;  %5854 = vmatpush1.bf16.msra.mxu1 %v8778_v56  ;;  %v8864_v55 = vld [vmem:[#allocation2 + $0x116c] ss:$16 sps:$4 sm:$0xff]   ;;  %v8859_v56 = vld [vmem:[#allocation2 + $0x1160] ss:$16 sps:$4 sm:$0xff]  }
 0x2ae   :  { %5363 = vmatprep.subr.bf16.mxu0 %v8783_v57  ;;  %5855 = vmatprep.subr.bf16.mxu1 %v8786_v44  ;;  %v8862_v57 = vld [vmem:[#allocation2 + $0x1168] ss:$16 sps:$4 sm:$0xff]   ;;  %v8867_v44 = vld [vmem:[#allocation2 + $0x1184] ss:$16 sps:$4 sm:$0xff]  }
 0x2b1   :  { %5364 = vmatpush1.bf16.msra.mxu0 %v8781_v61  ;;  %5856 = vmatpush1.bf16.msra.mxu1 %v8784_v62  ;;  %v8868_v61 = vld [vmem:[#allocation2 + $0x1188] ss:$16 sps:$4 sm:$0xff]   ;;  %v8873_v62 = vld [vmem:[#allocation2 + $0x11a4] ss:$16 sps:$4 sm:$0xff]  }
 0x2b2   :  { %5365 = vmatprep.subr.bf16.mxu0 %v8789_v63  ;;  %5857 = vmatprep.subr.bf16.mxu1 %v8792_v0  ;;  %v8876_v63 = vld [vmem:[#allocation2 + $0x11ac] ss:$16 sps:$4 sm:$0xff]   ;;  %v8871_v0 = vld [vmem:[#allocation2 + $0x11a0] ss:$16 sps:$4 sm:$0xff]  }
 0x2b5   :  { %5366 = vmatpush1.bf16.msra.mxu0 %v8787_v50  ;;  %5858 = vmatpush1.bf16.msra.mxu1 %v8790_v51  ;;  %v8874_v50 = vld [vmem:[#allocation2 + $0x11a8] ss:$16 sps:$4 sm:$0xff]   ;;  %v8879_v51 = vld [vmem:[#allocation2 + $0x11c4] ss:$16 sps:$4 sm:$0xff]  }
 0x2b6   :  { %5376 = vmatprep.subr.bf16.mxu0 %v8795_v3  ;;  %5868 = vmatprep.subr.bf16.mxu1 %v8798_v4  ;;  %v8882_v3 = vld [vmem:[#allocation2 + $0x11cc] ss:$16 sps:$4 sm:$0xff]   ;;  %v8877_v4 = vld [vmem:[#allocation2 + $0x11c0] ss:$16 sps:$4 sm:$0xff]  }
 0x2b8   :  { %5368 = vmatmul.mubr.bf16.vlgmr.msra.gmra.mrb[0].mxu0 %v1113_v6  ;;  %5860 = vmatmul.mubr.bf16.vlgmr.msra.gmra.mrb[0].mxu1 %v1113_v6  ;;  %v8885_v6 = vld [vmem:[#allocation2 + $0x11e4] ss:$16 sps:$4 sm:$0xff]  }
 0x2b9   :  { %5377 = vmatpush1.bf16.msra.mxu0 %v8793_v7  ;;  %5869 = vmatpush1.bf16.msra.mxu1 %v8796_v60  ;;  %v8888_v7 = vld [vmem:[#allocation2 + $0x11ec] ss:$16 sps:$4 sm:$0xff]   ;;  %v1148_v60 = vcombine.low %v9894_v1, %v9897_v2  ;;  %v1182_v1 = vcombine.high %v9904_v10, %v9904_v10  ;;  %v8899_v2 = vld [vmem:[#allocation2 + $0x1220] ss:$16 sps:$4 sm:$0xff]  }
 0x2ba   :  { %5378 = vmatprep.subr.bf16.mxu0 %v8801_v8  ;;  %5870 = vmatprep.subr.bf16.mxu1 %v8804_v9  ;;  %v8883_v8 = vld [vmem:[#allocation2 + $0x11e0] ss:$16 sps:$4 sm:$0xff]   ;;  %v8886_v9 = vld [vmem:[#allocation2 + $0x11e8] ss:$16 sps:$4 sm:$0xff]  }
 0x2bb   :  { %5408 = vmatprep.mubr.bf16.mxu0 %v9904_v10  ;;  %5900 = vmatprep.mubr.bf16.mxu1 %v9904_v10  ;;  %v8913_v10 = vld [vmem:[#allocation2 + $0x1264] ss:$16 sps:$4 sm:$0xff]  }
 0x2bd   :  { %5379 = vmatpush1.bf16.msra.mxu0 %v8799_v11  ;;  %5871 = vmatpush1.bf16.msra.mxu1 %v8802_v12  ;;  %v8895_v11 = vld [vmem:[#allocation2 + $0x1204] ss:$16 sps:$4 sm:$0xff]   ;;  %v8898_v12 = vld [vmem:[#allocation2 + $0x120c] ss:$16 sps:$4 sm:$0xff]  }
 0x2be   :  { %5380 = vmatprep.subr.bf16.mxu0 %v8807_v33  ;;  %5872 = vmatprep.subr.bf16.mxu1 %v8810_v13  ;;  %v9911_v33 = vrot.slane %v1148_v60, %v9781_v53  ;;  %v8893_v13 = vld [vmem:[#allocation2 + $0x1200] ss:$16 sps:$4 sm:$0xff]   ;;  %v8982_v60 = vld [vmem:[#allocation2 + $0x13cc] ss:$16 sps:$4 sm:$0xff]  }
 0x2c1   :  { %5381 = vmatpush1.bf16.msra.mxu0 %v8805_v14  ;;  %5873 = vmatpush1.bf16.msra.mxu1 %v8808_v16  ;;  %v8896_v14 = vld [vmem:[#allocation2 + $0x1208] ss:$16 sps:$4 sm:$0xff]   ;;  %v8901_v16 = vld [vmem:[#allocation2 + $0x1224] ss:$16 sps:$4 sm:$0xff]  }
 0x2c2   :  { %5382 = vmatprep.subr.bf16.mxu0 %v8813_v17  ;;  %5874 = vmatprep.subr.bf16.mxu1 %v8816_v18  ;;  %v8904_v17 = vld [vmem:[#allocation2 + $0x122c] ss:$16 sps:$4 sm:$0xff]   ;;  %v8902_v18 = vld [vmem:[#allocation2 + $0x1228] ss:$16 sps:$4 sm:$0xff]  }
 0x2c5   :  { %5383 = vmatpush1.bf16.msra.mxu0 %v8811_v19  ;;  %5875 = vmatpush1.bf16.msra.mxu1 %v8814_v20  ;;  %v8907_v19 = vld [vmem:[#allocation2 + $0x1244] ss:$16 sps:$4 sm:$0xff]   ;;  %v8910_v20 = vld [vmem:[#allocation2 + $0x124c] ss:$16 sps:$4 sm:$0xff]  }
 0x2c6   :  { %5384 = vmatprep.subr.bf16.mxu0 %v8819_v21  ;;  %5876 = vmatprep.subr.bf16.mxu1 %v8822_v22  ;;  %v8905_v21 = vld [vmem:[#allocation2 + $0x1240] ss:$16 sps:$4 sm:$0xff]   ;;  %v8908_v22 = vld [vmem:[#allocation2 + $0x1248] ss:$16 sps:$4 sm:$0xff]  }
 0x2c9   :  { %5385 = vmatpush1.bf16.msra.mxu0 %v8817_v23  ;;  %5877 = vmatpush1.bf16.msra.mxu1 %v8820_v24  ;;  %v8916_v23 = vld [vmem:[#allocation2 + $0x126c] ss:$16 sps:$4 sm:$0xff]   ;;  %v8911_v24 = vld [vmem:[#allocation2 + $0x1260] ss:$16 sps:$4 sm:$0xff]  }
 0x2ca   :  { %5386 = vmatprep.subr.bf16.mxu0 %v8825_v25  ;;  %5878 = vmatprep.subr.bf16.mxu1 %v8828_v26  ;;  %v8914_v25 = vld [vmem:[#allocation2 + $0x1268] ss:$16 sps:$4 sm:$0xff]   ;;  %v8919_v26 = vld [vmem:[#allocation2 + $0x1284] ss:$16 sps:$4 sm:$0xff]  }
 0x2cd   :  { %5387 = vmatpush1.bf16.msra.mxu0 %v8823_v27  ;;  %5879 = vmatpush1.bf16.msra.mxu1 %v8826_v15  ;;  %v8922_v27 = vld [vmem:[#allocation2 + $0x128c] ss:$16 sps:$4 sm:$0xff]   ;;  %v8917_v15 = vld [vmem:[#allocation2 + $0x1280] ss:$16 sps:$4 sm:$0xff]  }
 0x2ce   :  { %5388 = vmatprep.subr.bf16.mxu0 %v8831_v28  ;;  %5880 = vmatprep.subr.bf16.mxu1 %v8834_v31  ;;  %v8920_v28 = vld [vmem:[#allocation2 + $0x1288] ss:$16 sps:$4 sm:$0xff]   ;;  %v8925_v31 = vld [vmem:[#allocation2 + $0x12a4] ss:$16 sps:$4 sm:$0xff]  }
 0x2d1   :  { %5389 = vmatpush1.bf16.msra.mxu0 %v8829_v32  ;;  %5881 = vmatpush1.bf16.msra.mxu1 %v8832_v29  ;;  %v8928_v32 = vld [vmem:[#allocation2 + $0x12ac] ss:$16 sps:$4 sm:$0xff]   ;;  %v8923_v29 = vld [vmem:[#allocation2 + $0x12a0] ss:$16 sps:$4 sm:$0xff]  }
 0x2d2   :  { %5390 = vmatprep.subr.bf16.mxu0 %v8837_v30  ;;  %5882 = vmatprep.subr.bf16.mxu1 %v8840_v37  ;;  %v8926_v30 = vld [vmem:[#allocation2 + $0x12a8] ss:$16 sps:$4 sm:$0xff]   ;;  %v8931_v37 = vld [vmem:[#allocation2 + $0x12c4] ss:$16 sps:$4 sm:$0xff]  }
 0x2d5   :  { %5391 = vmatpush1.bf16.msra.mxu0 %v8835_v38  ;;  %5883 = vmatpush1.bf16.msra.mxu1 %v8838_v39  ;;  %v8934_v38 = vld [vmem:[#allocation2 + $0x12cc] ss:$16 sps:$4 sm:$0xff]   ;;  %v8929_v39 = vld [vmem:[#allocation2 + $0x12c0] ss:$16 sps:$4 sm:$0xff]  }
 0x2d6   :  { %5392 = vmatprep.subr.bf16.mxu0 %v8843_v40  ;;  %5884 = vmatprep.subr.bf16.mxu1 %v8846_v41  ;;  %v8932_v40 = vld [vmem:[#allocation2 + $0x12c8] ss:$16 sps:$4 sm:$0xff]   ;;  %v8937_v41 = vld [vmem:[#allocation2 + $0x12e4] ss:$16 sps:$4 sm:$0xff]  }
 0x2d9   :  { %5393 = vmatpush1.bf16.msra.mxu0 %v8841_v42  ;;  %5885 = vmatpush1.bf16.msra.mxu1 %v8844_v36  ;;  %v8940_v42 = vld [vmem:[#allocation2 + $0x12ec] ss:$16 sps:$4 sm:$0xff]   ;;  %v8935_v36 = vld [vmem:[#allocation2 + $0x12e0] ss:$16 sps:$4 sm:$0xff]  }
 0x2da   :  { %5394 = vmatprep.subr.bf16.mxu0 %v8849_v43  ;;  %5886 = vmatprep.subr.bf16.mxu1 %v8852_v46  ;;  %v8938_v43 = vld [vmem:[#allocation2 + $0x12e8] ss:$16 sps:$4 sm:$0xff]   ;;  %v8943_v46 = vld [vmem:[#allocation2 + $0x1304] ss:$16 sps:$4 sm:$0xff]  }
 0x2dd   :  { %5395 = vmatpush1.bf16.msra.mxu0 %v8847_v47  ;;  %5887 = vmatpush1.bf16.msra.mxu1 %v8850_v48  ;;  %v8946_v47 = vld [vmem:[#allocation2 + $0x130c] ss:$16 sps:$4 sm:$0xff]   ;;  %v8941_v48 = vld [vmem:[#allocation2 + $0x1300] ss:$16 sps:$4 sm:$0xff]  }
 0x2de   :  { %5396 = vmatprep.subr.bf16.mxu0 %v8855_v49  ;;  %5888 = vmatprep.subr.bf16.mxu1 %v8858_v34  ;;  %v8944_v49 = vld [vmem:[#allocation2 + $0x1308] ss:$16 sps:$4 sm:$0xff]   ;;  %v8949_v34 = vld [vmem:[#allocation2 + $0x1324] ss:$16 sps:$4 sm:$0xff]  }
 0x2e1   :  { %5397 = vmatpush1.bf16.msra.mxu0 %v8853_v35  ;;  %5889 = vmatpush1.bf16.msra.mxu1 %v8856_v52  ;;  %v8952_v35 = vld [vmem:[#allocation2 + $0x132c] ss:$16 sps:$4 sm:$0xff]   ;;  %v8947_v52 = vld [vmem:[#allocation2 + $0x1320] ss:$16 sps:$4 sm:$0xff]  }
 0x2e2   :  { %5398 = vmatprep.subr.bf16.mxu0 %v8861_v54  ;;  %5890 = vmatprep.subr.bf16.mxu1 %v8864_v55  ;;  %v8950_v54 = vld [vmem:[#allocation2 + $0x1328] ss:$16 sps:$4 sm:$0xff]   ;;  %v8955_v55 = vld [vmem:[#allocation2 + $0x1344] ss:$16 sps:$4 sm:$0xff]  }
 0x2e5   :  { %5399 = vmatpush1.bf16.msra.mxu0 %v8859_v56  ;;  %5891 = vmatpush1.bf16.msra.mxu1 %v8862_v57  ;;  %v8958_v56 = vld [vmem:[#allocation2 + $0x134c] ss:$16 sps:$4 sm:$0xff]   ;;  %v8953_v57 = vld [vmem:[#allocation2 + $0x1340] ss:$16 sps:$4 sm:$0xff]  }
 0x2e6   :  { %5400 = vmatprep.subr.bf16.mxu0 %v8867_v44  ;;  %5892 = vmatprep.subr.bf16.mxu1 %v8870_v58  ;;  %v8956_v44 = vld [vmem:[#allocation2 + $0x1348] ss:$16 sps:$4 sm:$0xff]   ;;  %v8961_v58 = vld [vmem:[#allocation2 + $0x1364] ss:$16 sps:$4 sm:$0xff]  }
 0x2e9   :  { %5401 = vmatpush1.bf16.msra.mxu0 %v8865_v59  ;;  %5893 = vmatpush1.bf16.msra.mxu1 %v8868_v61  ;;  %v8964_v59 = vld [vmem:[#allocation2 + $0x136c] ss:$16 sps:$4 sm:$0xff]   ;;  %v8959_v61 = vld [vmem:[#allocation2 + $0x1360] ss:$16 sps:$4 sm:$0xff]  }
 0x2ea   :  { %5402 = vmatprep.subr.bf16.mxu0 %v8873_v62  ;;  %5894 = vmatprep.subr.bf16.mxu1 %v8876_v63  ;;  %v8962_v62 = vld [vmem:[#allocation2 + $0x1368] ss:$16 sps:$4 sm:$0xff]   ;;  %v8967_v63 = vld [vmem:[#allocation2 + $0x1384] ss:$16 sps:$4 sm:$0xff]  }
 0x2ed   :  { %5403 = vmatpush1.bf16.msra.mxu0 %v8871_v0  ;;  %5895 = vmatpush1.bf16.msra.mxu1 %v8874_v50  ;;  %v8970_v0 = vld [vmem:[#allocation2 + $0x138c] ss:$16 sps:$4 sm:$0xff]   ;;  %v8965_v50 = vld [vmem:[#allocation2 + $0x1380] ss:$16 sps:$4 sm:$0xff]  }
 0x2ee   :  { %5404 = vmatprep.subr.bf16.mxu0 %v8879_v51  ;;  %5896 = vmatprep.subr.bf16.mxu1 %v8882_v3  ;;  %v8968_v51 = vld [vmem:[#allocation2 + $0x1388] ss:$16 sps:$4 sm:$0xff]   ;;  %v8973_v3 = vld [vmem:[#allocation2 + $0x13a4] ss:$16 sps:$4 sm:$0xff]  }
 0x2f1   :  { %5405 = vmatpush1.bf16.msra.mxu0 %v8877_v4  ;;  %5897 = vmatpush1.bf16.msra.mxu1 %v8880_v5  ;;  %v8976_v4 = vld [vmem:[#allocation2 + $0x13ac] ss:$16 sps:$4 sm:$0xff]   ;;  %v8971_v5 = vld [vmem:[#allocation2 + $0x13a0] ss:$16 sps:$4 sm:$0xff]  }
 0x2f2   :  { %5406 = vmatprep.subr.bf16.mxu0 %v8885_v6  ;;  %5898 = vmatprep.subr.bf16.mxu1 %v8888_v7  ;;  %v8974_v6 = vld [vmem:[#allocation2 + $0x13a8] ss:$16 sps:$4 sm:$0xff]   ;;  %v8979_v7 = vld [vmem:[#allocation2 + $0x13c4] ss:$16 sps:$4 sm:$0xff]  }
 0x2f5   :  { %5407 = vmatpush1.bf16.msra.mxu0 %v8883_v8  ;;  %5899 = vmatpush1.bf16.msra.mxu1 %v8886_v9  ;;  %v9085_v8 = vld [vmem:[%s10000_s0 + $0x14] ss:$24 sps:$4 sm:$0xff]   ;;  %v9086_v9 = vld [vmem:[%s10000_s0 + $0x44] ss:$24 sps:$4 sm:$0xff]  }
 0x2f6   :  { %5417 = vmatprep.subr.bf16.mxu0 %v8895_v11  ;;  %5909 = vmatprep.subr.bf16.mxu1 %v8898_v12  ;;  %v8977_v11 = vld [vmem:[#allocation2 + $0x13c0] ss:$16 sps:$4 sm:$0xff]   ;;  %v8980_v12 = vld [vmem:[#allocation2 + $0x13c8] ss:$16 sps:$4 sm:$0xff]  }
 0x2f8   :  { %5409 = vmatmul.mubr.bf16.vlgmr.msra.gmra.mrb[0].mxu0 %v9911_v33  ;;  %5901 = vmatmul.mubr.bf16.vlgmr.msra.gmra.mrb[0].mxu1 %v9911_v33 }
 0x2f9   :  { %5418 = vmatpush1.bf16.msra.mxu0 %v8893_v13  ;;  %5910 = vmatpush1.bf16.msra.mxu1 %v8896_v14  ;;  %v8985_v13 = vld [vmem:[#allocation2 + $0x13e4] ss:$16 sps:$4 sm:$0xff]   ;;  %v8988_v14 = vld [vmem:[#allocation2 + $0x13ec] ss:$16 sps:$4 sm:$0xff]  }
 0x2fa   :  { %5419 = vmatprep.subr.bf16.mxu0 %v8901_v16  ;;  %5911 = vmatprep.subr.bf16.mxu1 %v8904_v17  ;;  %v9924_v16 = vrot.slane %v9085_v8, %v9781_v53  ;;  %v9927_v17 = vrot.slane %v9086_v9, %v9781_v53  ;;  %v9066_v8 = vld [vmem:[#allocation2 + $0x158c] ss:$16 sps:$4 sm:$0xff]   ;;  %v9061_v9 = vld [vmem:[#allocation2 + $0x1580] ss:$16 sps:$4 sm:$0xff]  }
 0x2fb   :  { %5449 = vmatprep.mubr.bf16.mxu0 %v1182_v1  ;;  %5941 = vmatprep.mubr.bf16.mxu1 %v1182_v1  ;;  %v8983_v1 = vld [vmem:[#allocation2 + $0x13e0] ss:$16 sps:$4 sm:$0xff]  }
 0x2fd   :  { %5420 = vmatpush1.bf16.msra.mxu0 %v8899_v2  ;;  %5912 = vmatpush1.bf16.msra.mxu1 %v8902_v18  ;;  %v8986_v2 = vld [vmem:[#allocation2 + $0x13e8] ss:$16 sps:$4 sm:$0xff]   ;;  %v8991_v18 = vld [vmem:[#allocation2 + $0x1404] ss:$16 sps:$4 sm:$0xff]  }
 0x2fe   :  { %5421 = vmatprep.subr.bf16.mxu0 %v8907_v19  ;;  %5913 = vmatprep.subr.bf16.mxu1 %v8910_v20  ;;  %v8994_v19 = vld [vmem:[#allocation2 + $0x140c] ss:$16 sps:$4 sm:$0xff]   ;;  %v1151_v20 = vcombine.high %v9924_v16, %v9927_v17 }
 0x301   :  { %5422 = vmatpush1.bf16.msra.mxu0 %v8905_v21  ;;  %5914 = vmatpush1.bf16.msra.mxu1 %v8908_v22  ;;  %v1180_v21 = vcombine.high %v9911_v33, %v9911_v33  ;;  %v8989_v22 = vld [vmem:[#allocation2 + $0x1400] ss:$16 sps:$4 sm:$0xff]   ;;  %v9003_v33 = vld [vmem:[#allocation2 + $0x1444] ss:$16 sps:$4 sm:$0xff]  }
 0x302   :  { %5423 = vmatprep.subr.bf16.mxu0 %v8913_v10  ;;  %5915 = vmatprep.subr.bf16.mxu1 %v8916_v23  ;;  %v8992_v10 = vld [vmem:[#allocation2 + $0x1408] ss:$16 sps:$4 sm:$0xff]   ;;  %v8997_v23 = vld [vmem:[#allocation2 + $0x1424] ss:$16 sps:$4 sm:$0xff]  }
 0x305   :  { %5424 = vmatpush1.bf16.msra.mxu0 %v8911_v24  ;;  %5916 = vmatpush1.bf16.msra.mxu1 %v8914_v25  ;;  %v9000_v24 = vld [vmem:[#allocation2 + $0x142c] ss:$16 sps:$4 sm:$0xff]   ;;  %v9934_v25 = vrot.slane %v1151_v20, %v9781_v53  ;;  %v9076_v20 = vld [vmem:[#allocation2 + $0x15c8] ss:$16 sps:$4 sm:$0xff]  }
 0x306   :  { %5425 = vmatprep.subr.bf16.mxu0 %v8919_v26  ;;  %5917 = vmatprep.subr.bf16.mxu1 %v8922_v27  ;;  %v8995_v26 = vld [vmem:[#allocation2 + $0x1420] ss:$16 sps:$4 sm:$0xff]   ;;  %v8998_v27 = vld [vmem:[#allocation2 + $0x1428] ss:$16 sps:$4 sm:$0xff]  }
 0x309   :  { %5426 = vmatpush1.bf16.msra.mxu0 %v8917_v15  ;;  %5918 = vmatpush1.bf16.msra.mxu1 %v8920_v28  ;;  %v9006_v15 = vld [vmem:[#allocation2 + $0x144c] ss:$16 sps:$4 sm:$0xff]   ;;  %v9001_v28 = vld [vmem:[#allocation2 + $0x1440] ss:$16 sps:$4 sm:$0xff]  }
 0x30a   :  { %5427 = vmatprep.subr.bf16.mxu0 %v8925_v31  ;;  %5919 = vmatprep.subr.bf16.mxu1 %v8928_v32  ;;  %v9004_v31 = vld [vmem:[#allocation2 + $0x1448] ss:$16 sps:$4 sm:$0xff]   ;;  %v9009_v32 = vld [vmem:[#allocation2 + $0x1464] ss:$16 sps:$4 sm:$0xff]  }
 0x30d   :  { %5428 = vmatpush1.bf16.msra.mxu0 %v8923_v29  ;;  %5920 = vmatpush1.bf16.msra.mxu1 %v8926_v30  ;;  %v9012_v29 = vld [vmem:[#allocation2 + $0x146c] ss:$16 sps:$4 sm:$0xff]   ;;  %v9007_v30 = vld [vmem:[#allocation2 + $0x1460] ss:$16 sps:$4 sm:$0xff]  }
 0x30e   :  { %5429 = vmatprep.subr.bf16.mxu0 %v8931_v37  ;;  %5921 = vmatprep.subr.bf16.mxu1 %v8934_v38  ;;  %v9010_v37 = vld [vmem:[#allocation2 + $0x1468] ss:$16 sps:$4 sm:$0xff]   ;;  %v9015_v38 = vld [vmem:[#allocation2 + $0x1484] ss:$16 sps:$4 sm:$0xff]  }
 0x311   :  { %5430 = vmatpush1.bf16.msra.mxu0 %v8929_v39  ;;  %5922 = vmatpush1.bf16.msra.mxu1 %v8932_v40  ;;  %v9018_v39 = vld [vmem:[#allocation2 + $0x148c] ss:$16 sps:$4 sm:$0xff]   ;;  %v9013_v40 = vld [vmem:[#allocation2 + $0x1480] ss:$16 sps:$4 sm:$0xff]  }
 0x312   :  { %5431 = vmatprep.subr.bf16.mxu0 %v8937_v41  ;;  %5923 = vmatprep.subr.bf16.mxu1 %v8940_v42  ;;  %v9016_v41 = vld [vmem:[#allocation2 + $0x1488] ss:$16 sps:$4 sm:$0xff]   ;;  %v9021_v42 = vld [vmem:[#allocation2 + $0x14a4] ss:$16 sps:$4 sm:$0xff]  }
 0x315   :  { %5432 = vmatpush1.bf16.msra.mxu0 %v8935_v36  ;;  %5924 = vmatpush1.bf16.msra.mxu1 %v8938_v43  ;;  %v9024_v36 = vld [vmem:[#allocation2 + $0x14ac] ss:$16 sps:$4 sm:$0xff]   ;;  %v9019_v43 = vld [vmem:[#allocation2 + $0x14a0] ss:$16 sps:$4 sm:$0xff]  }
 0x316   :  { %5433 = vmatprep.subr.bf16.mxu0 %v8943_v46  ;;  %5925 = vmatprep.subr.bf16.mxu1 %v8946_v47  ;;  %v9022_v46 = vld [vmem:[#allocation2 + $0x14a8] ss:$16 sps:$4 sm:$0xff]   ;;  %v9027_v47 = vld [vmem:[#allocation2 + $0x14c4] ss:$16 sps:$4 sm:$0xff]  }
 0x319   :  { %5434 = vmatpush1.bf16.msra.mxu0 %v8941_v48  ;;  %5926 = vmatpush1.bf16.msra.mxu1 %v8944_v49  ;;  %v9030_v48 = vld [vmem:[#allocation2 + $0x14cc] ss:$16 sps:$4 sm:$0xff]   ;;  %v9025_v49 = vld [vmem:[#allocation2 + $0x14c0] ss:$16 sps:$4 sm:$0xff]  }
 0x31a   :  { %5435 = vmatprep.subr.bf16.mxu0 %v8949_v34  ;;  %5927 = vmatprep.subr.bf16.mxu1 %v8952_v35  ;;  %v9028_v34 = vld [vmem:[#allocation2 + $0x14c8] ss:$16 sps:$4 sm:$0xff]   ;;  %v9033_v35 = vld [vmem:[#allocation2 + $0x14e4] ss:$16 sps:$4 sm:$0xff]  }
 0x31d   :  { %5436 = vmatpush1.bf16.msra.mxu0 %v8947_v52  ;;  %5928 = vmatpush1.bf16.msra.mxu1 %v8950_v54  ;;  %v9036_v52 = vld [vmem:[#allocation2 + $0x14ec] ss:$16 sps:$4 sm:$0xff]   ;;  %v9031_v54 = vld [vmem:[#allocation2 + $0x14e0] ss:$16 sps:$4 sm:$0xff]  }
 0x31e   :  { %5437 = vmatprep.subr.bf16.mxu0 %v8955_v55  ;;  %5929 = vmatprep.subr.bf16.mxu1 %v8958_v56  ;;  %v9034_v55 = vld [vmem:[#allocation2 + $0x14e8] ss:$16 sps:$4 sm:$0xff]   ;;  %v9039_v56 = vld [vmem:[#allocation2 + $0x1504] ss:$16 sps:$4 sm:$0xff]  }
 0x321   :  { %5438 = vmatpush1.bf16.msra.mxu0 %v8953_v57  ;;  %5930 = vmatpush1.bf16.msra.mxu1 %v8956_v44  ;;  %v9042_v57 = vld [vmem:[#allocation2 + $0x150c] ss:$16 sps:$4 sm:$0xff]   ;;  %v9037_v44 = vld [vmem:[#allocation2 + $0x1500] ss:$16 sps:$4 sm:$0xff]  }
 0x322   :  { %5439 = vmatprep.subr.bf16.mxu0 %v8961_v58  ;;  %5931 = vmatprep.subr.bf16.mxu1 %v8964_v59  ;;  %v9040_v58 = vld [vmem:[#allocation2 + $0x1508] ss:$16 sps:$4 sm:$0xff]   ;;  %v9045_v59 = vld [vmem:[#allocation2 + $0x1524] ss:$16 sps:$4 sm:$0xff]  }
 0x325   :  { %5440 = vmatpush1.bf16.msra.mxu0 %v8959_v61  ;;  %5932 = vmatpush1.bf16.msra.mxu1 %v8962_v62  ;;  %v9048_v61 = vld [vmem:[#allocation2 + $0x152c] ss:$16 sps:$4 sm:$0xff]   ;;  %v9043_v62 = vld [vmem:[#allocation2 + $0x1520] ss:$16 sps:$4 sm:$0xff]  }
 0x326   :  { %5441 = vmatprep.subr.bf16.mxu0 %v8967_v63  ;;  %5933 = vmatprep.subr.bf16.mxu1 %v8970_v0  ;;  %v9046_v63 = vld [vmem:[#allocation2 + $0x1528] ss:$16 sps:$4 sm:$0xff]   ;;  %v9051_v0 = vld [vmem:[#allocation2 + $0x1544] ss:$16 sps:$4 sm:$0xff]  }
 0x329   :  { %5442 = vmatpush1.bf16.msra.mxu0 %v8965_v50  ;;  %5934 = vmatpush1.bf16.msra.mxu1 %v8968_v51  ;;  %v9054_v50 = vld [vmem:[#allocation2 + $0x154c] ss:$16 sps:$4 sm:$0xff]   ;;  %v9049_v51 = vld [vmem:[#allocation2 + $0x1540] ss:$16 sps:$4 sm:$0xff]  }
 0x32a   :  { %5443 = vmatprep.subr.bf16.mxu0 %v8973_v3  ;;  %5935 = vmatprep.subr.bf16.mxu1 %v8976_v4  ;;  %v9052_v3 = vld [vmem:[#allocation2 + $0x1548] ss:$16 sps:$4 sm:$0xff]   ;;  %v9057_v4 = vld [vmem:[#allocation2 + $0x1564] ss:$16 sps:$4 sm:$0xff]  }
 0x32d   :  { %5444 = vmatpush1.bf16.msra.mxu0 %v8971_v5  ;;  %5936 = vmatpush1.bf16.msra.mxu1 %v8974_v6  ;;  %v9060_v5 = vld [vmem:[#allocation2 + $0x156c] ss:$16 sps:$4 sm:$0xff]   ;;  %v9055_v6 = vld [vmem:[#allocation2 + $0x1560] ss:$16 sps:$4 sm:$0xff]  }
 0x32e   :  { %5445 = vmatprep.subr.bf16.mxu0 %v8979_v7  ;;  %5937 = vmatprep.subr.bf16.mxu1 %v8982_v60  ;;  %v9058_v7 = vld [vmem:[#allocation2 + $0x1568] ss:$16 sps:$4 sm:$0xff]   ;;  %v9063_v60 = vld [vmem:[#allocation2 + $0x1584] ss:$16 sps:$4 sm:$0xff]  }
 0x331   :  { %5446 = vmatpush1.bf16.msra.mxu0 %v8977_v11  ;;  %5938 = vmatpush1.bf16.msra.mxu1 %v8980_v12  ;;  %v9064_v11 = vld [vmem:[#allocation2 + $0x1588] ss:$16 sps:$4 sm:$0xff]   ;;  %v9069_v12 = vld [vmem:[#allocation2 + $0x15a4] ss:$16 sps:$4 sm:$0xff]  }
 0x332   :  { %5447 = vmatprep.subr.bf16.mxu0 %v8985_v13  ;;  %5939 = vmatprep.subr.bf16.mxu1 %v8988_v14  ;;  %v9072_v13 = vld [vmem:[#allocation2 + $0x15ac] ss:$16 sps:$4 sm:$0xff]   ;;  %v9067_v14 = vld [vmem:[#allocation2 + $0x15a0] ss:$16 sps:$4 sm:$0xff]  }
 0x335   :  { %5448 = vmatpush1.bf16.msra.mxu0 %v8983_v1  ;;  %5940 = vmatpush1.bf16.msra.mxu1 %v8986_v2  ;;  %v9070_v1 = vld [vmem:[#allocation2 + $0x15a8] ss:$16 sps:$4 sm:$0xff]   ;;  %v9075_v2 = vld [vmem:[#allocation2 + $0x15c4] ss:$16 sps:$4 sm:$0xff]  }
 0x336   :  { %5458 = vmatprep.subr.bf16.mxu0 %v8991_v18  ;;  %5950 = vmatprep.subr.bf16.mxu1 %v8994_v19  ;;  %v9078_v18 = vld [vmem:[#allocation2 + $0x15cc] ss:$16 sps:$4 sm:$0xff]   ;;  %v9073_v19 = vld [vmem:[#allocation2 + $0x15c0] ss:$16 sps:$4 sm:$0xff]  }
 0x338   :  { %5450 = vmatmul.mubr.bf16.vlgmr.msra.gmra.mrb[0].mxu0 %v1180_v21  ;;  %5942 = vmatmul.mubr.bf16.vlgmr.msra.gmra.mrb[0].mxu1 %v1180_v21  ;;  %v9081_v21 = vld [vmem:[#allocation2 + $0x15e4] ss:$16 sps:$4 sm:$0xff]  }
 0x339   :  { %5459 = vmatpush1.bf16.msra.mxu0 %v8989_v22  ;;  %5951 = vmatpush1.bf16.msra.mxu1 %v8992_v10  ;;  %v9084_v22 = vld [vmem:[#allocation2 + $0x15ec] ss:$16 sps:$4 sm:$0xff]   ;;  %v1150_v10 = vcombine.low %v9924_v16, %v9927_v17  ;;  %v1183_v16 = vcombine.high %v9934_v25, %v9934_v25  ;;  %v9093_v17 = vld [vmem:[#allocation2 + $0x1620] ss:$16 sps:$4 sm:$0xff]  }
 0x33a   :  { %5460 = vmatprep.subr.bf16.mxu0 %v8997_v23  ;;  %5952 = vmatprep.subr.bf16.mxu1 %v9000_v24  ;;  %v9079_v23 = vld [vmem:[#allocation2 + $0x15e0] ss:$16 sps:$4 sm:$0xff]   ;;  %v9082_v24 = vld [vmem:[#allocation2 + $0x15e8] ss:$16 sps:$4 sm:$0xff]  }
 0x33b   :  { %5490 = vmatprep.mubr.bf16.mxu0 %v9934_v25  ;;  %5982 = vmatprep.mubr.bf16.mxu1 %v9934_v25  ;;  %v9107_v25 = vld [vmem:[#allocation2 + $0x1664] ss:$16 sps:$4 sm:$0xff]  }
 0x33d   :  { %5461 = vmatpush1.bf16.msra.mxu0 %v8995_v26  ;;  %5953 = vmatpush1.bf16.msra.mxu1 %v8998_v27  ;;  %v9089_v26 = vld [vmem:[#allocation2 + $0x1604] ss:$16 sps:$4 sm:$0xff]   ;;  %v9092_v27 = vld [vmem:[#allocation2 + $0x160c] ss:$16 sps:$4 sm:$0xff]  }
 0x33e   :  { %5462 = vmatprep.subr.bf16.mxu0 %v9003_v33  ;;  %5954 = vmatprep.subr.bf16.mxu1 %v9006_v15  ;;  %v9941_v33 = vrot.slane %v1150_v10, %v9781_v53  ;;  %v9087_v15 = vld [vmem:[#allocation2 + $0x1600] ss:$16 sps:$4 sm:$0xff]   ;;  %v9096_v53 = vld [vmem:[#allocation2 + $0x1628] ss:$16 sps:$4 sm:$0xff]  }
 0x33f   :  { %v9171_v10 = vld [vmem:[#allocation2 + $0x17c0] ss:$16 sps:$4 sm:$0xff]  }
 0x341   :  { %5463 = vmatpush1.bf16.msra.mxu0 %v9001_v28  ;;  %5955 = vmatpush1.bf16.msra.mxu1 %v9004_v31  ;;  %v9090_v28 = vld [vmem:[#allocation2 + $0x1608] ss:$16 sps:$4 sm:$0xff]   ;;  %v9095_v31 = vld [vmem:[#allocation2 + $0x1624] ss:$16 sps:$4 sm:$0xff]  }
 0x342   :  { %5464 = vmatprep.subr.bf16.mxu0 %v9009_v32  ;;  %5956 = vmatprep.subr.bf16.mxu1 %v9012_v29  ;;  %v9098_v32 = vld [vmem:[#allocation2 + $0x162c] ss:$16 sps:$4 sm:$0xff]   ;;  %v9101_v29 = vld [vmem:[#allocation2 + $0x1644] ss:$16 sps:$4 sm:$0xff]  }
 0x345   :  { %5465 = vmatpush1.bf16.msra.mxu0 %v9007_v30  ;;  %5957 = vmatpush1.bf16.msra.mxu1 %v9010_v37  ;;  %v9104_v30 = vld [vmem:[#allocation2 + $0x164c] ss:$16 sps:$4 sm:$0xff]   ;;  %v9099_v37 = vld [vmem:[#allocation2 + $0x1640] ss:$16 sps:$4 sm:$0xff]  }
 0x346   :  { %5466 = vmatprep.subr.bf16.mxu0 %v9015_v38  ;;  %5958 = vmatprep.subr.bf16.mxu1 %v9018_v39  ;;  %v9102_v38 = vld [vmem:[#allocation2 + $0x1648] ss:$16 sps:$4 sm:$0xff]   ;;  %v9110_v39 = vld [vmem:[#allocation2 + $0x166c] ss:$16 sps:$4 sm:$0xff]  }
 0x349   :  { %5467 = vmatpush1.bf16.msra.mxu0 %v9013_v40  ;;  %5959 = vmatpush1.bf16.msra.mxu1 %v9016_v41  ;;  %v9105_v40 = vld [vmem:[#allocation2 + $0x1660] ss:$16 sps:$4 sm:$0xff]   ;;  %v9108_v41 = vld [vmem:[#allocation2 + $0x1668] ss:$16 sps:$4 sm:$0xff]  }
 0x34a   :  { %5468 = vmatprep.subr.bf16.mxu0 %v9021_v42  ;;  %5960 = vmatprep.subr.bf16.mxu1 %v9024_v36  ;;  %v9113_v42 = vld [vmem:[#allocation2 + $0x1684] ss:$16 sps:$4 sm:$0xff]   ;;  %v9116_v36 = vld [vmem:[#allocation2 + $0x168c] ss:$16 sps:$4 sm:$0xff]  }
 0x34d   :  { %5469 = vmatpush1.bf16.msra.mxu0 %v9019_v43  ;;  %5961 = vmatpush1.bf16.msra.mxu1 %v9022_v46  ;;  %v9111_v43 = vld [vmem:[#allocation2 + $0x1680] ss:$16 sps:$4 sm:$0xff]   ;;  %v9114_v46 = vld [vmem:[#allocation2 + $0x1688] ss:$16 sps:$4 sm:$0xff]  }
 0x34e   :  { %5470 = vmatprep.subr.bf16.mxu0 %v9027_v47  ;;  %5962 = vmatprep.subr.bf16.mxu1 %v9030_v48  ;;  %v9119_v47 = vld [vmem:[#allocation2 + $0x16a4] ss:$16 sps:$4 sm:$0xff]   ;;  %v9122_v48 = vld [vmem:[#allocation2 + $0x16ac] ss:$16 sps:$4 sm:$0xff]  }
 0x351   :  { %5471 = vmatpush1.bf16.msra.mxu0 %v9025_v49  ;;  %5963 = vmatpush1.bf16.msra.mxu1 %v9028_v34  ;;  %v9117_v49 = vld [vmem:[#allocation2 + $0x16a0] ss:$16 sps:$4 sm:$0xff]   ;;  %v9120_v34 = vld [vmem:[#allocation2 + $0x16a8] ss:$16 sps:$4 sm:$0xff]  }
 0x352   :  { %5472 = vmatprep.subr.bf16.mxu0 %v9033_v35  ;;  %5964 = vmatprep.subr.bf16.mxu1 %v9036_v52  ;;  %v9125_v35 = vld [vmem:[#allocation2 + $0x16c4] ss:$16 sps:$4 sm:$0xff]   ;;  %v9128_v52 = vld [vmem:[#allocation2 + $0x16cc] ss:$16 sps:$4 sm:$0xff]  }
 0x355   :  { %5473 = vmatpush1.bf16.msra.mxu0 %v9031_v54  ;;  %5965 = vmatpush1.bf16.msra.mxu1 %v9034_v55  ;;  %v9123_v54 = vld [vmem:[#allocation2 + $0x16c0] ss:$16 sps:$4 sm:$0xff]   ;;  %v9126_v55 = vld [vmem:[#allocation2 + $0x16c8] ss:$16 sps:$4 sm:$0xff]  }
 0x356   :  { %5474 = vmatprep.subr.bf16.mxu0 %v9039_v56  ;;  %5966 = vmatprep.subr.bf16.mxu1 %v9042_v57  ;;  %v9131_v56 = vld [vmem:[#allocation2 + $0x16e4] ss:$16 sps:$4 sm:$0xff]   ;;  %v9134_v57 = vld [vmem:[#allocation2 + $0x16ec] ss:$16 sps:$4 sm:$0xff]  }
 0x359   :  { %5475 = vmatpush1.bf16.msra.mxu0 %v9037_v44  ;;  %5967 = vmatpush1.bf16.msra.mxu1 %v9040_v58  ;;  %v9129_v44 = vld [vmem:[#allocation2 + $0x16e0] ss:$16 sps:$4 sm:$0xff]   ;;  %v9132_v58 = vld [vmem:[#allocation2 + $0x16e8] ss:$16 sps:$4 sm:$0xff]  }
 0x35a   :  { %5476 = vmatprep.subr.bf16.mxu0 %v9045_v59  ;;  %5968 = vmatprep.subr.bf16.mxu1 %v9048_v61  ;;  %v9137_v59 = vld [vmem:[#allocation2 + $0x1704] ss:$16 sps:$4 sm:$0xff]   ;;  %v9140_v61 = vld [vmem:[#allocation2 + $0x170c] ss:$16 sps:$4 sm:$0xff]  }
 0x35d   :  { %5477 = vmatpush1.bf16.msra.mxu0 %v9043_v62  ;;  %5969 = vmatpush1.bf16.msra.mxu1 %v9046_v63  ;;  %v9135_v62 = vld [vmem:[#allocation2 + $0x1700] ss:$16 sps:$4 sm:$0xff]   ;;  %v9138_v63 = vld [vmem:[#allocation2 + $0x1708] ss:$16 sps:$4 sm:$0xff]  }
 0x35e   :  { %5478 = vmatprep.subr.bf16.mxu0 %v9051_v0  ;;  %5970 = vmatprep.subr.bf16.mxu1 %v9054_v50  ;;  %v9143_v0 = vld [vmem:[#allocation2 + $0x1724] ss:$16 sps:$4 sm:$0xff]   ;;  %v9146_v50 = vld [vmem:[#allocation2 + $0x172c] ss:$16 sps:$4 sm:$0xff]  }
 0x361   :  { %5479 = vmatpush1.bf16.msra.mxu0 %v9049_v51  ;;  %5971 = vmatpush1.bf16.msra.mxu1 %v9052_v3  ;;  %v9141_v51 = vld [vmem:[#allocation2 + $0x1720] ss:$16 sps:$4 sm:$0xff]   ;;  %v9144_v3 = vld [vmem:[#allocation2 + $0x1728] ss:$16 sps:$4 sm:$0xff]  }
 0x362   :  { %5480 = vmatprep.subr.bf16.mxu0 %v9057_v4  ;;  %5972 = vmatprep.subr.bf16.mxu1 %v9060_v5  ;;  %v9149_v4 = vld [vmem:[#allocation2 + $0x1744] ss:$16 sps:$4 sm:$0xff]   ;;  %v9152_v5 = vld [vmem:[#allocation2 + $0x174c] ss:$16 sps:$4 sm:$0xff]  }
 0x365   :  { %5481 = vmatpush1.bf16.msra.mxu0 %v9055_v6  ;;  %5973 = vmatpush1.bf16.msra.mxu1 %v9058_v7  ;;  %v9147_v6 = vld [vmem:[#allocation2 + $0x1740] ss:$16 sps:$4 sm:$0xff]   ;;  %v9150_v7 = vld [vmem:[#allocation2 + $0x1748] ss:$16 sps:$4 sm:$0xff]  }
 0x366   :  { %5482 = vmatprep.subr.bf16.mxu0 %v9063_v60  ;;  %5974 = vmatprep.subr.bf16.mxu1 %v9066_v8  ;;  %v9155_v60 = vld [vmem:[#allocation2 + $0x1764] ss:$16 sps:$4 sm:$0xff]   ;;  %v9158_v8 = vld [vmem:[#allocation2 + $0x176c] ss:$16 sps:$4 sm:$0xff]  }
 0x369   :  { %5483 = vmatpush1.bf16.msra.mxu0 %v9061_v9  ;;  %5975 = vmatpush1.bf16.msra.mxu1 %v9064_v11  ;;  %v9153_v9 = vld [vmem:[#allocation2 + $0x1760] ss:$16 sps:$4 sm:$0xff]   ;;  %v9156_v11 = vld [vmem:[#allocation2 + $0x1768] ss:$16 sps:$4 sm:$0xff]  }
 0x36a   :  { %5484 = vmatprep.subr.bf16.mxu0 %v9069_v12  ;;  %5976 = vmatprep.subr.bf16.mxu1 %v9072_v13  ;;  %v9161_v12 = vld [vmem:[#allocation2 + $0x1784] ss:$16 sps:$4 sm:$0xff]   ;;  %v9164_v13 = vld [vmem:[#allocation2 + $0x178c] ss:$16 sps:$4 sm:$0xff]  }
 0x36d   :  { %5485 = vmatpush1.bf16.msra.mxu0 %v9067_v14  ;;  %5977 = vmatpush1.bf16.msra.mxu1 %v9070_v1  ;;  %v9159_v14 = vld [vmem:[#allocation2 + $0x1780] ss:$16 sps:$4 sm:$0xff]   ;;  %v9162_v1 = vld [vmem:[#allocation2 + $0x1788] ss:$16 sps:$4 sm:$0xff]  }
 0x36e   :  { %5486 = vmatprep.subr.bf16.mxu0 %v9075_v2  ;;  %5978 = vmatprep.subr.bf16.mxu1 %v9078_v18  ;;  %v9167_v2 = vld [vmem:[#allocation2 + $0x17a4] ss:$16 sps:$4 sm:$0xff]   ;;  %v9170_v18 = vld [vmem:[#allocation2 + $0x17ac] ss:$16 sps:$4 sm:$0xff]  }
 0x371   :  { %5487 = vmatpush1.bf16.msra.mxu0 %v9073_v19  ;;  %5979 = vmatpush1.bf16.msra.mxu1 %v9076_v20  ;;  %v9165_v19 = vld [vmem:[#allocation2 + $0x17a0] ss:$16 sps:$4 sm:$0xff]   ;;  %v9168_v20 = vld [vmem:[#allocation2 + $0x17a8] ss:$16 sps:$4 sm:$0xff]  }
 0x372   :  { %5488 = vmatprep.subr.bf16.mxu0 %v9081_v21  ;;  %5980 = vmatprep.subr.bf16.mxu1 %v9084_v22  ;;  %v9173_v21 = vld [vmem:[#allocation2 + $0x17c4] ss:$16 sps:$4 sm:$0xff]   ;;  %v9176_v22 = vld [vmem:[#allocation2 + $0x17cc] ss:$16 sps:$4 sm:$0xff]  }
 0x375   :  { %5489 = vmatpush1.bf16.msra.mxu0 %v9079_v23  ;;  %5981 = vmatpush1.bf16.msra.mxu1 %v9082_v24  ;;  %v9174_v23 = vld [vmem:[#allocation2 + $0x17c8] ss:$16 sps:$4 sm:$0xff]   ;;  %v9179_v24 = vld [vmem:[#allocation2 + $0x17e4] ss:$16 sps:$4 sm:$0xff]  }
 0x376   :  { %5499 = vmatprep.subr.bf16.mxu0 %v9089_v26  ;;  %5991 = vmatprep.subr.bf16.mxu1 %v9092_v27  ;;  %v9182_v26 = vld [vmem:[#allocation2 + $0x17ec] ss:$16 sps:$4 sm:$0xff]   ;;  %v9177_v27 = vld [vmem:[#allocation2 + $0x17e0] ss:$16 sps:$4 sm:$0xff]  }
 0x378   :  { %5491 = vmatmul.mubr.bf16.vlgmr.msra.gmra.mrb[0].mxu0 %v9941_v33  ;;  %5983 = vmatmul.mubr.bf16.vlgmr.msra.gmra.mrb[0].mxu1 %v9941_v33 }
 0x379   :  { %5500 = vmatpush1.bf16.msra.mxu0 %v9087_v15  ;;  %5992 = vmatpush1.bf16.msra.mxu1 %v9090_v28  ;;  %v9180_v15 = vld [vmem:[#allocation2 + $0x17e8] ss:$16 sps:$4 sm:$0xff]  }
 0x37a   :  { %5501 = vmatprep.subr.bf16.mxu0 %v9095_v31  ;;  %5993 = vmatprep.subr.bf16.mxu1 %v9098_v32  ;;  %v9185_v28 = vld [vmem:[#allocation7 + $0x4] ss:$8 sps:$4 sm:$0xff]   ;;  %v1181_v31 = vcombine.high %v9941_v33, %v9941_v33  ;;  %v9183_v32 = vld [vmem:[#allocation7] ss:$8 sps:$4 sm:$0xff]  }
 0x37b   :  { %5531 = vmatprep.mubr.bf16.mxu0 %v1183_v16  ;;  %6023 = vmatprep.mubr.bf16.mxu1 %v1183_v16  ;;  %v9188_v16 = vld [vmem:[#allocation7 + $0x14] ss:$8 sps:$4 sm:$0xff]   ;;  %v9195_v33 = vld [vmem:[#allocation7 + $0x40] ss:$8 sps:$4 sm:$0xff]  }
 0x37d   :  { %5502 = vmatpush1.bf16.msra.mxu0 %v9093_v17  ;;  %5994 = vmatpush1.bf16.msra.mxu1 %v9096_v53  ;;  %v9186_v17 = vld [vmem:[#allocation7 + $0x10] ss:$8 sps:$4 sm:$0xff]   ;;  %v9191_v53 = vld [vmem:[#allocation7 + $0x24] ss:$8 sps:$4 sm:$0xff]  }
 0x37e   :  { %5503 = vmatprep.subr.bf16.mxu0 %v9101_v29  ;;  %5995 = vmatprep.subr.bf16.mxu1 %v9104_v30  ;;  %v9189_v29 = vld [vmem:[#allocation7 + $0x20] ss:$8 sps:$4 sm:$0xff]   ;;  %v9194_v30 = vld [vmem:[#allocation7 + $0x34] ss:$8 sps:$4 sm:$0xff]  }
 0x381   :  { %5504 = vmatpush1.bf16.msra.mxu0 %v9099_v37  ;;  %5996 = vmatpush1.bf16.msra.mxu1 %v9102_v38  ;;  %v9192_v37 = vld [vmem:[#allocation7 + $0x30] ss:$8 sps:$4 sm:$0xff]   ;;  %v9197_v38 = vld [vmem:[#allocation7 + $0x44] ss:$8 sps:$4 sm:$0xff]  }
 0x382   :  { %5505 = vmatprep.subr.bf16.mxu0 %v9107_v25  ;;  %5997 = vmatprep.subr.bf16.mxu1 %v9110_v39  ;;  %v9200_v25 = vld [vmem:[#allocation7 + $0x54] ss:$8 sps:$4 sm:$0xff]   ;;  %v9198_v39 = vld [vmem:[#allocation7 + $0x50] ss:$8 sps:$4 sm:$0xff]  }
 0x385   :  { %5506 = vmatpush1.bf16.msra.mxu0 %v9105_v40  ;;  %5998 = vmatpush1.bf16.msra.mxu1 %v9108_v41  ;;  %v9203_v40 = vld [vmem:[#allocation7 + $0x64] ss:$8 sps:$4 sm:$0xff]   ;;  %v9201_v41 = vld [vmem:[#allocation7 + $0x60] ss:$8 sps:$4 sm:$0xff]  }
 0x386   :  { %5507 = vmatprep.subr.bf16.mxu0 %v9113_v42  ;;  %5999 = vmatprep.subr.bf16.mxu1 %v9116_v36  ;;  %v9206_v42 = vld [vmem:[#allocation7 + $0x74] ss:$8 sps:$4 sm:$0xff]   ;;  %v9204_v36 = vld [vmem:[#allocation7 + $0x70] ss:$8 sps:$4 sm:$0xff]  }
 0x389   :  { %5508 = vmatpush1.bf16.msra.mxu0 %v9111_v43  ;;  %6000 = vmatpush1.bf16.msra.mxu1 %v9114_v46  ;;  %v9209_v43 = vld [vmem:[#allocation7 + $0x84] ss:$8 sps:$4 sm:$0xff]   ;;  %v9207_v46 = vld [vmem:[#allocation7 + $0x80] ss:$8 sps:$4 sm:$0xff]  }
 0x38a   :  { %5509 = vmatprep.subr.bf16.mxu0 %v9119_v47  ;;  %6001 = vmatprep.subr.bf16.mxu1 %v9122_v48  ;;  %v9212_v47 = vld [vmem:[#allocation7 + $0x94] ss:$8 sps:$4 sm:$0xff]   ;;  %v9210_v48 = vld [vmem:[#allocation7 + $0x90] ss:$8 sps:$4 sm:$0xff]  }
 0x38d   :  { %5510 = vmatpush1.bf16.msra.mxu0 %v9117_v49  ;;  %6002 = vmatpush1.bf16.msra.mxu1 %v9120_v34  ;;  %v9215_v49 = vld [vmem:[#allocation7 + $0xa4] ss:$8 sps:$4 sm:$0xff]   ;;  %v9213_v34 = vld [vmem:[#allocation7 + $0xa0] ss:$8 sps:$4 sm:$0xff]  }
 0x38e   :  { %5511 = vmatprep.subr.bf16.mxu0 %v9125_v35  ;;  %6003 = vmatprep.subr.bf16.mxu1 %v9128_v52  ;;  %v9218_v35 = vld [vmem:[#allocation7 + $0xb4] ss:$8 sps:$4 sm:$0xff]   ;;  %v9216_v52 = vld [vmem:[#allocation7 + $0xb0] ss:$8 sps:$4 sm:$0xff]  }
 0x391   :  { %5512 = vmatpush1.bf16.msra.mxu0 %v9123_v54  ;;  %6004 = vmatpush1.bf16.msra.mxu1 %v9126_v55  ;;  %v9221_v54 = vld [vmem:[#allocation7 + $0xc4] ss:$8 sps:$4 sm:$0xff]   ;;  %v9219_v55 = vld [vmem:[#allocation7 + $0xc0] ss:$8 sps:$4 sm:$0xff]  }
 0x392   :  { %5513 = vmatprep.subr.bf16.mxu0 %v9131_v56  ;;  %6005 = vmatprep.subr.bf16.mxu1 %v9134_v57  ;;  %v9224_v56 = vld [vmem:[#allocation7 + $0xd4] ss:$8 sps:$4 sm:$0xff]   ;;  %v9222_v57 = vld [vmem:[#allocation7 + $0xd0] ss:$8 sps:$4 sm:$0xff]  }
 0x395   :  { %5514 = vmatpush1.bf16.msra.mxu0 %v9129_v44  ;;  %6006 = vmatpush1.bf16.msra.mxu1 %v9132_v58  ;;  %v9227_v44 = vld [vmem:[#allocation7 + $0xe4] ss:$8 sps:$4 sm:$0xff]   ;;  %v9225_v58 = vld [vmem:[#allocation7 + $0xe0] ss:$8 sps:$4 sm:$0xff]  }
 0x396   :  { %5515 = vmatprep.subr.bf16.mxu0 %v9137_v59  ;;  %6007 = vmatprep.subr.bf16.mxu1 %v9140_v61  ;;  %v9230_v59 = vld [vmem:[#allocation7 + $0xf4] ss:$8 sps:$4 sm:$0xff]   ;;  %v9228_v61 = vld [vmem:[#allocation7 + $0xf0] ss:$8 sps:$4 sm:$0xff]  }
 0x399   :  { %5516 = vmatpush1.bf16.msra.mxu0 %v9135_v62  ;;  %6008 = vmatpush1.bf16.msra.mxu1 %v9138_v63  ;;  %v9233_v62 = vld [vmem:[#allocation7 + $0x104] ss:$8 sps:$4 sm:$0xff]  }
 0x39a   :  { %5517 = vmatprep.subr.bf16.mxu0 %v9143_v0  ;;  %6009 = vmatprep.subr.bf16.mxu1 %v9146_v50  ;;  %v9279_v63 = vld [vmem:[#allocation10 + $0x40] sm:$0xff]   ;;  %v9281_v50 = vld [vmem:[#allocation10 + $0x48] sm:$0xff]  }
 0x39b   :  { %v9280_v0 = vld [vmem:[#allocation10] sm:$0xff]  }
 0x39d   :  { %5518 = vmatpush1.bf16.msra.mxu0 %v9141_v51  ;;  %6010 = vmatpush1.bf16.msra.mxu1 %v9144_v3  ;;  %v9282_v51 = vld [vmem:[#allocation10 + $0x8] sm:$0xff]   ;;  %v9283_v3 = vld [vmem:[#allocation10 + $0x50] sm:$0xff]  }
 0x39e   :  { %5519 = vmatprep.subr.bf16.mxu0 %v9149_v4  ;;  %6011 = vmatprep.subr.bf16.mxu1 %v9152_v5  ;;  %v9284_v4 = vld [vmem:[#allocation10 + $0x10] sm:$0xff]   ;;  %v9285_v5 = vld [vmem:[#allocation10 + $0x58] sm:$0xff]  }
 0x3a1   :  { %5520 = vmatpush1.bf16.msra.mxu0 %v9147_v6  ;;  %6012 = vmatpush1.bf16.msra.mxu1 %v9150_v7  ;;  %v9286_v6 = vld [vmem:[#allocation10 + $0x18] sm:$0xff]   ;;  %v9287_v7 = vld [vmem:[#allocation10 + $0x60] sm:$0xff]  }
 0x3a2   :  { %5521 = vmatprep.subr.bf16.mxu0 %v9155_v60  ;;  %6013 = vmatprep.subr.bf16.mxu1 %v9158_v8  ;;  %v9288_v60 = vld [vmem:[#allocation10 + $0x20] sm:$0xff]   ;;  %v9289_v8 = vld [vmem:[#allocation10 + $0x68] sm:$0xff]  }
 0x3a5   :  { %5522 = vmatpush1.bf16.msra.mxu0 %v9153_v9  ;;  %6014 = vmatpush1.bf16.msra.mxu1 %v9156_v11  ;;  %v9290_v9 = vld [vmem:[#allocation10 + $0x28] sm:$0xff]   ;;  %v950_v11 = vsub.s32 0, %v9778_v45 }
 0x3a6   :  { %5523 = vmatprep.subr.bf16.mxu0 %v9161_v12  ;;  %6015 = vmatprep.subr.bf16.mxu1 %v9164_v13  ;;  %v9950_v12 = vld [vmem:[#allocation5] sm:$0xf]  ;;  %v954_v13 = vsub.s32 1, %v9778_v45 }
 0x3a9   :  { %5524 = vmatpush1.bf16.msra.mxu0 %v9159_v14  ;;  %6016 = vmatpush1.bf16.msra.mxu1 %v9162_v1  ;;  %v962_v14 = vsub.s32 3, %v9778_v45  ;;  %v951_v1 = vrot.slane %v9950_v12, %v950_v11 }
 0x3aa   :  { %5525 = vmatprep.subr.bf16.mxu0 %v9167_v2  ;;  %6017 = vmatprep.subr.bf16.mxu1 %v9170_v18  ;;  %v955_v2 = vrot.slane %v9950_v12, %v954_v13 }
 0x3ab   :  { %v963_v18 = vrot.slane %v9950_v12, %v962_v14  ;;  %v9584_v14 = vmov 0.0  }
 0x3ad   :  { %5526 = vmatpush1.bf16.msra.mxu0 %v9165_v19  ;;  %6018 = vmatpush1.bf16.msra.mxu1 %v9168_v20 }
 0x3ae   :  { %5527 = vmatprep.subr.bf16.mxu0 %v9173_v21  ;;  %6019 = vmatprep.subr.bf16.mxu1 %v9176_v22 }
 0x3b1   :  { %5528 = vmatpush1.bf16.msra.mxu0 %v9171_v10  ;;  %6020 = vmatpush1.bf16.msra.mxu1 %v9174_v23 }
 0x3b2   :  { %5529 = vmatprep.subr.bf16.mxu0 %v9179_v24  ;;  %6021 = vmatprep.subr.bf16.mxu1 %v9182_v26 }
 0x3b5   :  { %5530 = vmatpush1.bf16.msra.mxu0 %v9177_v27  ;;  %6022 = vmatpush1.bf16.msra.mxu1 %v9180_v15 }
 0x3b6   :  { %6436 = vmatprep.subr.bf16.mxu0 %v9185_v28  ;;  %7813 = vmatprep.subr.bf16.mxu1 %v9279_v63  ;;  %v9270_v63 = vld [vmem:[#allocation7 + $0x1d0] ss:$8 sps:$4 sm:$0xff]  }
 0x3b8   :  { %5532 = vmatmul.mubr.bf16.vlgmr.msra.gmra.mrb[0].mxu0 %v1181_v31  ;;  %6024 = vmatmul.mubr.bf16.vlgmr.msra.gmra.mrb[0].mxu1 %v1181_v31 }
 0x3b9   :  { %6437 = vmatpush1.bf16.msra.mxu0 %v9183_v32  ;;  %7814 = vmatpush3.bf16.msra.mxu1 %v9280_v0 }
 0x3ba   :  { %6438 = vmatprep.subr.bf16.mxu0 %v9188_v16  ;;  %7815 = vmatprep.subr.bf16.mxu1 %v9281_v50  ;;  %v9275_v50 = vld [vmem:[#allocation7 + $0x1e4] ss:$8 sps:$4 sm:$0xff]  }
 0x3bd   :  { %6439 = vmatpush1.bf16.msra.mxu0 %v9186_v17  ;;  %7816 = vmatpush3.bf16.msra.mxu1 %v9282_v51  ;;  %v9273_v51 = vld [vmem:[#allocation7 + $0x1e0] ss:$8 sps:$4 sm:$0xff]  }
 0x3be   :  { %6440 = vmatprep.subr.bf16.mxu0 %v9191_v53  ;;  %7817 = vmatprep.subr.bf16.mxu1 %v9283_v3  ;;  %v9231_v53 = vld [vmem:[#allocation7 + $0x100] ss:$8 sps:$4 sm:$0xff]  }
 0x3c1   :  { %6441 = vmatpush1.bf16.msra.mxu0 %v9189_v29  ;;  %7818 = vmatpush3.bf16.msra.mxu1 %v9284_v4  ;;  %v9278_v4 = vld [vmem:[#allocation7 + $0x1f4] ss:$8 sps:$4 sm:$0xff]  }
 0x3c2   :  { %6442 = vmatprep.subr.bf16.mxu0 %v9194_v30  ;;  %7819 = vmatprep.subr.bf16.mxu1 %v9285_v5  ;;  %v9236_v30 = vld [vmem:[#allocation7 + $0x114] ss:$8 sps:$4 sm:$0xff]   ;;  %v9276_v5 = vld [vmem:[#allocation7 + $0x1f0] ss:$8 sps:$4 sm:$0xff]  }
 0x3c5   :  { %6443 = vmatpush1.bf16.msra.mxu0 %v9192_v37  ;;  %7820 = vmatpush3.bf16.msra.mxu1 %v9286_v6 }
 0x3c6   :  { %6444 = vmatprep.subr.bf16.mxu0 %v9197_v38  ;;  %7821 = vmatprep.subr.bf16.mxu1 %v9287_v7  ;;  %v9234_v38 = vld [vmem:[#allocation7 + $0x110] ss:$8 sps:$4 sm:$0xff]  }
 0x3c9   :  { %6445 = vmatpush1.bf16.msra.mxu0 %v9195_v33  ;;  %7822 = vmatpush3.bf16.msra.mxu1 %v9288_v60  ;;  %v9239_v33 = vld [vmem:[#allocation7 + $0x124] ss:$8 sps:$4 sm:$0xff]   ;;  %v9291_v60 = vld [vmem:[#allocation10 + $0x70] sm:$0xff]  }
 0x3ca   :  { %6446 = vmatprep.subr.bf16.mxu0 %v9200_v25  ;;  %7823 = vmatprep.subr.bf16.mxu1 %v9289_v8  ;;  %v9237_v25 = vld [vmem:[#allocation7 + $0x120] ss:$8 sps:$4 sm:$0xff]   ;;  %v9292_v8 = vld [vmem:[#allocation10 + $0x30] sm:$0xff]  }
 0x3cd   :  { %6447 = vmatpush1.bf16.msra.mxu0 %v9198_v39  ;;  %7824 = vmatpush3.bf16.msra.mxu1 %v9290_v9  ;;  %v9242_v39 = vld [vmem:[#allocation7 + $0x134] ss:$8 sps:$4 sm:$0xff]  }
 0x3ce   :  { %6448 = vmatprep.subr.bf16.mxu0 %v9203_v40  ;;  %v9240_v40 = vld [vmem:[#allocation7 + $0x130] ss:$8 sps:$4 sm:$0xff]   ;;  %7825 = vmatprep.subr.bf16.mxu1 %v9291_v60 }
 0x3cf   :  { %v9293_v9 = vld [vmem:[#allocation10 + $0x78] sm:$0xff]  }
 0x3d1   :  { %6449 = vmatpush1.bf16.msra.mxu0 %v9201_v41  ;;  %v9245_v41 = vld [vmem:[#allocation7 + $0x144] ss:$8 sps:$4 sm:$0xff]   ;;  %7826 = vmatpush3.bf16.msra.mxu1 %v9292_v8 }
 0x3d2   :  { %6450 = vmatprep.subr.bf16.mxu0 %v9206_v42  ;;  %v9243_v42 = vld [vmem:[#allocation7 + $0x140] ss:$8 sps:$4 sm:$0xff]   ;;  %7827 = vmatprep.subr.bf16.mxu1 %v9293_v9 }
 0x3d5   :  { %6451 = vmatpush1.bf16.msra.mxu0 %v9204_v36  ;;  %v9248_v36 = vld [vmem:[#allocation7 + $0x154] ss:$8 sps:$4 sm:$0xff]  }
 0x3d6   :  { %6452 = vmatprep.subr.bf16.mxu0 %v9209_v43  ;;  %v9246_v43 = vld [vmem:[#allocation7 + $0x150] ss:$8 sps:$4 sm:$0xff]  }
 0x3d9   :  { %6453 = vmatpush1.bf16.msra.mxu0 %v9207_v46  ;;  %v9251_v46 = vld [vmem:[#allocation7 + $0x164] ss:$8 sps:$4 sm:$0xff]  }
 0x3da   :  { %6454 = vmatprep.subr.bf16.mxu0 %v9212_v47  ;;  %v9249_v47 = vld [vmem:[#allocation7 + $0x160] ss:$8 sps:$4 sm:$0xff]  }
 0x3dd   :  { %6455 = vmatpush1.bf16.msra.mxu0 %v9210_v48  ;;  %v9254_v48 = vld [vmem:[#allocation7 + $0x174] ss:$8 sps:$4 sm:$0xff]  }
 0x3de   :  { %6456 = vmatprep.subr.bf16.mxu0 %v9215_v49  ;;  %v9252_v49 = vld [vmem:[#allocation7 + $0x170] ss:$8 sps:$4 sm:$0xff]  }
 0x3e1   :  { %6457 = vmatpush1.bf16.msra.mxu0 %v9213_v34  ;;  %v9257_v34 = vld [vmem:[#allocation7 + $0x184] ss:$8 sps:$4 sm:$0xff]  }
 0x3e2   :  { %6458 = vmatprep.subr.bf16.mxu0 %v9218_v35  ;;  %v9255_v35 = vld [vmem:[#allocation7 + $0x180] ss:$8 sps:$4 sm:$0xff]  }
 0x3e5   :  { %6459 = vmatpush1.bf16.msra.mxu0 %v9216_v52  ;;  %v9260_v52 = vld [vmem:[#allocation7 + $0x194] ss:$8 sps:$4 sm:$0xff]  }
 0x3e6   :  { %6460 = vmatprep.subr.bf16.mxu0 %v9221_v54  ;;  %v9258_v54 = vld [vmem:[#allocation7 + $0x190] ss:$8 sps:$4 sm:$0xff]  }
 0x3e9   :  { %6461 = vmatpush1.bf16.msra.mxu0 %v9219_v55  ;;  %v9263_v55 = vld [vmem:[#allocation7 + $0x1a4] ss:$8 sps:$4 sm:$0xff]  }
 0x3ea   :  { %6462 = vmatprep.subr.bf16.mxu0 %v9224_v56  ;;  %v9261_v56 = vld [vmem:[#allocation7 + $0x1a0] ss:$8 sps:$4 sm:$0xff]  }
 0x3ed   :  { %6463 = vmatpush1.bf16.msra.mxu0 %v9222_v57  ;;  %v9266_v57 = vld [vmem:[#allocation7 + $0x1b4] ss:$8 sps:$4 sm:$0xff]  }
 0x3ee   :  { %6464 = vmatprep.subr.bf16.mxu0 %v9227_v44  ;;  %v9264_v44 = vld [vmem:[#allocation7 + $0x1b0] ss:$8 sps:$4 sm:$0xff]  }
 0x3f1   :  { %6465 = vmatpush1.bf16.msra.mxu0 %v9225_v58  ;;  %v9269_v58 = vld [vmem:[#allocation7 + $0x1c4] ss:$8 sps:$4 sm:$0xff]  }
 0x3f2   :  { %6466 = vmatprep.subr.bf16.mxu0 %v9230_v59  ;;  %v9267_v59 = vld [vmem:[#allocation7 + $0x1c0] ss:$8 sps:$4 sm:$0xff]  }
 0x3f5   :  { %6467 = vmatpush1.bf16.msra.mxu0 %v9228_v61  ;;  %v958_v61 = vsub.s32 2, %v9778_v45  ;;  %v9297_v45 = vld [vmem:[#allocation13 + $0x10] sm:$0xff]  }
 0x3f6   :  { %6477 = vmatprep.subr.bf16.mxu0 %v9233_v62  ;;  %v9272_v62 = vld [vmem:[#allocation7 + $0x1d4] ss:$8 sps:$4 sm:$0xff]  }
 0x3f7   :  { %v959_v0 = vrot.slane %v9950_v12, %v958_v61  ;;  %v9294_v12 = vld [vmem:[#allocation10 + $0x38] sm:$0xff]  }
 0x3f8   :  { %7828 = vmatpush3.bf16.msra.mxu1 %v9294_v12 }
 0x3f9   :  { %7853 = vmatprep.subr.bf16.mxu1 %v9584_v14 }
 0x48b   :  { %v5533_v19 = vpop.f32.mrb[0].mxu0  ;;  %v9961_v20 = vpop.f32.mrb[0].mxu1 }
 0x48c   :  { %v7893_v21 = vadd.f32 %v5533_v19, %v951_v1  ;;  %v5535_v22 = vpop.f32.mrb[1].mxu0  ;;  %v6027_v10 = vpop.f32.mrb[1].mxu1  ;;  %v7895_v3 = vadd.f32 %v9961_v20, %v959_v0  ;;  %v6104_v1 = vld [vmem:[#allocation8] sm:$0x3] }
 0x48d   :  { %v7894_v23 = vadd.f32 %v5535_v22, %v955_v2  ;;  %v7896_v24 = vadd.f32 %v6027_v10, %v963_v18  ;;  %v5537_v26 = vpop.f32.mrb[2].mxu0  ;;  %v6029_v27 = vpop.f32.mrb[2].mxu1  ;;  %v6109_v2 = vrot.slane %v6104_v1, %v950_v11  ;;  %v6113_v18 = vrot.slane %v6104_v1, %v954_v13  ;;  %v9298_v11 = vld [vmem:[#allocation13 + $0x18] sm:$0xff]   ;;  %v9299_v13 = vld [vmem:[#allocation13 + $0x20] sm:$0xff]  }
 0x48e   :  { %v6032_v15 = vmax.f32 %v7893_v21, 0.0  ;;  %v5538_v28 = vpop.f32.mrb[3].mxu0  ;;  %v6030_v31 = vpop.f32.mrb[3].mxu1  ;;  %v6034_v6 = vmax.f32 %v7895_v3, 0.0 }
 0x48f   :  { %v6033_v32 = vmax.f32 %v7894_v23, 0.0  ;;  %v6035_v16 = vmax.f32 %v7896_v24, 0.0  ;;  %v9296_v31 = vld [vmem:[#allocation13 + $0x8] sm:$0xff]  }
 0x490   :  { %v6036_v29 = vpack.c.bf16 %v6032_v15, %v6032_v15  ;;  %v6038_v7 = vpack.c.bf16 %v6034_v6, %v6034_v6  ;;  %v9295_v15 = vld [vmem:[#allocation13] sm:$0xff]  }
 0x491   :  { %v6037_v17 = vpack.c.bf16 %v6033_v32, %v6033_v32  ;;  %v6039_v37 = vpack.c.bf16 %v6035_v16, %v6035_v16  ;;  %v9300_v32 = vld [vmem:[#allocation13 + $0x28] sm:$0xff]   ;;  %v9301_v16 = vld [vmem:[#allocation13 + $0x30] sm:$0xff]  }
 0x493   :  { %6468 = vmatprep.mubr.bf16.mxu0 %v6037_v17  ;;  %v9302_v17 = vld [vmem:[#allocation13 + $0x38] sm:$0xff]  }
 0x494   :  { %6469 = vmatmul.mubr.bf16.vlgmr.msra.gmra.mrb[4].mxu0 %v6036_v29  ;;  %v7778_v29 = vld [vmem:[#allocation11] ss:$0 sm:$0xff] }
 0x495   :  { %6478 = vmatpush1.bf16.msra.mxu0 %v9231_v53  ;;  %6509 = vmatprep.mubr.bf16.mxu0 %v6039_v37 }
 0x496   :  { %6479 = vmatprep.subr.bf16.mxu0 %v9236_v30 }
 0x499   :  { %6480 = vmatpush1.bf16.msra.mxu0 %v9234_v38 }
 0x49a   :  { %6481 = vmatprep.subr.bf16.mxu0 %v9239_v33 }
 0x49d   :  { %6482 = vmatpush1.bf16.msra.mxu0 %v9237_v25 }
 0x49e   :  { %6483 = vmatprep.subr.bf16.mxu0 %v9242_v39 }
 0x4a1   :  { %6484 = vmatpush1.bf16.msra.mxu0 %v9240_v40  ;;  %v9303_v40 = vld [vmem:[#allocation16] sm:$0xff]  }
 0x4a2   :  { %6485 = vmatprep.subr.bf16.mxu0 %v9245_v41 }
 0x4a5   :  { %6486 = vmatpush1.bf16.msra.mxu0 %v9243_v42  ;;  %v9304_v42 = vld [vmem:[#allocation16 + $0x8] sm:$0xff]  }
 0x4a6   :  { %6487 = vmatprep.subr.bf16.mxu0 %v9248_v36  ;;  %v9305_v36 = vld [vmem:[#allocation16 + $0x10] sm:$0xff]  }
 0x4a9   :  { %6488 = vmatpush1.bf16.msra.mxu0 %v9246_v43  ;;  %v9306_v43 = vld [vmem:[#allocation16 + $0x18] sm:$0xff]  }
 0x4aa   :  { %6489 = vmatprep.subr.bf16.mxu0 %v9251_v46  ;;  %v9307_v46 = vld [vmem:[#allocation16 + $0x20] sm:$0xff]  }
 0x4ad   :  { %6490 = vmatpush1.bf16.msra.mxu0 %v9249_v47  ;;  %v9308_v47 = vld [vmem:[#allocation16 + $0x28] sm:$0xff]  }
 0x4ae   :  { %6491 = vmatprep.subr.bf16.mxu0 %v9254_v48  ;;  %v9309_v48 = vld [vmem:[#allocation16 + $0x30] sm:$0xff]  }
 0x4b1   :  { %6492 = vmatpush1.bf16.msra.mxu0 %v9252_v49  ;;  %v9310_v49 = vld [vmem:[#allocation16 + $0x38] sm:$0xff]  }
 0x4b2   :  { %6493 = vmatprep.subr.bf16.mxu0 %v9257_v34  ;;  %v7795_v34 = vld [vmem:[#allocation14] ss:$0 sm:$0xff] }
 0x4b5   :  { %6494 = vmatpush1.bf16.msra.mxu0 %v9255_v35 }
 0x4b6   :  { %6495 = vmatprep.subr.bf16.mxu0 %v9260_v52 }
 0x4b9   :  { %6496 = vmatpush1.bf16.msra.mxu0 %v9258_v54 }
 0x4ba   :  { %6497 = vmatprep.subr.bf16.mxu0 %v9263_v55 }
 0x4bd   :  { %6498 = vmatpush1.bf16.msra.mxu0 %v9261_v56 }
 0x4be   :  { %6499 = vmatprep.subr.bf16.mxu0 %v9266_v57 }
 0x4c1   :  { %6500 = vmatpush1.bf16.msra.mxu0 %v9264_v44 }
 0x4c2   :  { %6501 = vmatprep.subr.bf16.mxu0 %v9269_v58  ;;  %v7804_v58 = vld [vmem:[#allocation17] ss:$0 sm:$0xff] }
 0x4c5   :  { %6502 = vmatpush1.bf16.msra.mxu0 %v9267_v59 }
 0x4c6   :  { %6503 = vmatprep.subr.bf16.mxu0 %v9272_v62 }
 0x4c9   :  { %6504 = vmatpush1.bf16.msra.mxu0 %v9270_v63 }
 0x4ca   :  { %6505 = vmatprep.subr.bf16.mxu0 %v9275_v50 }
 0x4cd   :  { %6506 = vmatpush1.bf16.msra.mxu0 %v9273_v51 }
 0x4ce   :  { %6507 = vmatprep.subr.bf16.mxu0 %v9278_v4 }
 0x4d1   :  { %6508 = vmatpush1.bf16.msra.mxu0 %v9276_v5 }
 0x4d4   :  { %6510 = vmatmul.mubr.bf16.vlgmr.msra.gmra.mrb[4].mxu0 %v6038_v7 }
 0x5a7   :  { %v6511_v19 = vpop.f32.mrb[4].mxu0 }
 0x5a8   :  { %v7897_v20 = vadd.f32 %v6511_v19, %v6109_v2  ;;  %v6513_v21 = vpop.f32.mrb[5].mxu0 }
 0x5a9   :  { %v7898_v22 = vadd.f32 %v6513_v21, %v6113_v18  ;;  %v6515_v10 = vpop.f32.mrb[6].mxu0 }
 0x5aa   :  { %v6518_v23 = vmax.f32 %v7897_v20, 0.0  ;;  %v6516_v24 = vpop.f32.mrb[7].mxu0 }
 0x5ab   :  { %v6519_v26 = vmax.f32 %v7898_v22, 0.0 }
 0x5ac   :  { %v6520_v28 = vpack.c.bf16 %v6518_v23, %v6518_v23 }
 0x5ad   :  { %v6521_v27 = vpack.c.bf16 %v6519_v26, %v6519_v26 }
 0x5af   :  { %6689 = vmatprep.mubr.bf16.mxu1 %v6521_v27 }
 0x5b0   :  { %6690 = vmatmul.mubr.bf16.vlgmr.msra.gmra.mrb[4].mxu1 %v6520_v28 }
 0x5b1   :  { %7854 = vmatpush3.bf16.msra.mxu1 %v9295_v15  ;;  %7869 = vmatprep.mubr.msk.bf16.mxu1 %vm9585_vm0, %v9584_v14 }
 0x5b2   :  { %7855 = vmatprep.subr.bf16.mxu1 %v9584_v14 }
 0x5b5   :  { %7856 = vmatpush3.bf16.msra.mxu1 %v9296_v31 }
 0x5b6   :  { %7857 = vmatprep.subr.bf16.mxu1 %v9584_v14 }
 0x5b9   :  { %7858 = vmatpush3.bf16.msra.mxu1 %v9297_v45 }
 0x5ba   :  { %7859 = vmatprep.subr.bf16.mxu1 %v9584_v14 }
 0x5bd   :  { %7860 = vmatpush3.bf16.msra.mxu1 %v9298_v11 }
 0x5be   :  { %7861 = vmatprep.subr.bf16.mxu1 %v9584_v14 }
 0x5c1   :  { %7862 = vmatpush3.bf16.msra.mxu1 %v9299_v13 }
 0x5c2   :  { %7863 = vmatprep.subr.bf16.mxu1 %v9584_v14 }
 0x5c5   :  { %7864 = vmatpush3.bf16.msra.mxu1 %v9300_v32 }
 0x5c6   :  { %7865 = vmatprep.subr.bf16.mxu1 %v9584_v14 }
 0x5c9   :  { %7866 = vmatpush3.bf16.msra.mxu1 %v9301_v16 }
 0x5ca   :  { %7867 = vmatprep.subr.bf16.mxu1 %v9584_v14 }
 0x5cd   :  { %7868 = vmatpush3.bf16.msra.mxu1 %v9302_v17 }
 0x5ce   :  { %7873 = vmatprep.subr.bf16.mxu1 %v9584_v14 }
 0x683   :  { %v7829_v53 = vpop.f32.mrb[4].mxu1 }
 0x684   :  { %v7830_v30 = vpop.f32.mrb[5].mxu1 }
 0x685   :  { %v7831_v37 = vadd.f32 %v7830_v30, %v7829_v53  ;;  %v7832_v38 = vpop.f32.mrb[6].mxu1 }
 0x686   :  { %v7833_v33 = vpop.f32.mrb[7].mxu1 }
 0x687   :  { %v6692_v25 = vadd.f32 %v7831_v37, %v7778_v29 }
 0x689   :  { %v6697_v39 = vmax.f32 %v6692_v25, 0.0 }
 0x68b   :  { %v6698_v41 = vpack.c.bf16 %v6697_v39, %v6697_v39 }
 0x68d   :  { %7870 = vmatmul.mubr.bf16.vlgmr.msra.gmra.mrb[8].mxu1 %v6698_v41 }
 0x68e   :  { %7874 = vmatpush3.bf16.msra.mxu1 %v9303_v40  ;;  %7889 = vmatprep.mubr.msk.bf16.mxu1 %vm9585_vm0, %v9584_v14 }
 0x68f   :  { %7875 = vmatprep.subr.bf16.mxu1 %v9584_v14 }
 0x692   :  { %7876 = vmatpush3.bf16.msra.mxu1 %v9304_v42 }
 0x693   :  { %7877 = vmatprep.subr.bf16.mxu1 %v9584_v14 }
 0x696   :  { %7878 = vmatpush3.bf16.msra.mxu1 %v9305_v36 }
 0x697   :  { %7879 = vmatprep.subr.bf16.mxu1 %v9584_v14 }
 0x69a   :  { %7880 = vmatpush3.bf16.msra.mxu1 %v9306_v43 }
 0x69b   :  { %7881 = vmatprep.subr.bf16.mxu1 %v9584_v14 }
 0x69e   :  { %7882 = vmatpush3.bf16.msra.mxu1 %v9307_v46 }
 0x69f   :  { %7883 = vmatprep.subr.bf16.mxu1 %v9584_v14 }
 0x6a2   :  { %7884 = vmatpush3.bf16.msra.mxu1 %v9308_v47 }
 0x6a3   :  { %7885 = vmatprep.subr.bf16.mxu1 %v9584_v14 }
 0x6a6   :  { %7886 = vmatpush3.bf16.msra.mxu1 %v9309_v48 }
 0x6a7   :  { %7887 = vmatprep.subr.bf16.mxu1 %v9584_v14 }
 0x6aa   :  { %7888 = vmatpush3.bf16.msra.mxu1 %v9310_v49 }
 0x760   :  { %v6804_v35 = vpop.f32.mrb[8].mxu1 }
 0x761   :  { %v6805_v52 = vadd.f32 %v7795_v34, %v6804_v35  ;;  %v7871_v54 = vpop.f32.mrb[9].mxu1 }
 0x762   :  { %v6807_v55 = vpop.f32.mrb[10].mxu1 }
 0x763   :  { %v6810_v56 = vmax.f32 %v6805_v52, 0.0  ;;  %v7872_v57 = vpop.f32.mrb[11].mxu1 }
 0x765   :  { %v6811_v44 = vpack.c.bf16 %v6810_v56, %v6810_v56 }
 0x767   :  { %7890 = vmatmul.mubr.bf16.vlgmr.msra.gmra.mrb[12].mxu1 %v6811_v44 }
 0x83a   :  { %v6917_v59 = vpop.f32.mrb[12].mxu1 }
 0x83b   :  { %v6918_v61 = vadd.f32 %v7804_v58, %v6917_v59  ;;  %v7891_v62 = vpop.f32.mrb[13].mxu1 }
 0x83c   :  { %v6920_v63 = vpop.f32.mrb[14].mxu1 }
 0x83d   :  { %6923 = vst [vmem:[#allocation19] sm:$0xff] %v6918_v61  ;;  %v7892_v0 = vpop.f32.mrb[15].mxu1 }
 0x83e   :  { %6928 = vsyncadd [#allocation4], 96  ;;  %s9586_s0 = smov [#allocation19]  }
 0x83f   :  { %s6929_s28 = sshll.u32 %s9586_s0, 4  ;;  %s6930_s28 = int_to_ptr.vmem [resolvable:$true] %s6929_s28 }
 0x840   :  { %s9531_s29 = scalar_lea.vmem %s6930_s28, 32  ;;  %s9535_s9 = scalar_lea.vmem %s6930_s28, 128 }
 0x841   :  { %p9532_p10 = scmp.ne.s32.totalorder %s6930_s28, %s9531_s29  ;;  %p9536_p11 = scmp.lt.s32.totalorder %s6930_s28, %s6930_s28 }
 0x842   :  { %p9537_p12 = scmp.lt.s32.totalorder %s9535_s9, %s9531_s29 }
 0x844   :  { %p9538_p13 = por %p9537_p12, %p9536_p11 }
 0x846   :  { %p9539_p0 = pnand %p9538_p13, %p9532_p10 }
 0x848   :  { %9542 = shalt.err (!%p9539_p0)
}
 0x849   :  { %s9543_s10 = scalar_lea.hbm %s10011_s11, 32 }
 0x84a   :  { %p9544_p1 = scmp.ne.s32.totalorder %s10011_s11, %s9543_s10  ;;  %p9547_p2 = scmp.lt.u32.totalorder %s9543_s10, %s10011_s11 }
 0x84c   :  { %p9549_p3 = pnand %p9547_p2, %p9544_p1 }
 0x84e   :  { %9552 = shalt.err (!%p9549_p3)
}
 0x84f   :  { %s9587_s13 = smov 32   ;;  %s9588_s4 = smov 2  }
 0x850   :  { %6935 = dma.vmem_to_hbm [thread:$0]  %s6930_s28, 32, %s10011_s11, [#allocation4], %s9587_s13, %s9587_s13, %s9588_s4  }
 0x851   :  { %9565 = dma.done.wait [#allocation4], 128  }
 0x852   :  { %9566 = vsyncadd [#allocation4], 4294967168 }
 0x853   :  { %6939 = vsyncpa [#allocation3], 1 }
 0x854   :  { %6940 = vsyncpa [#allocation6], 1 }
 0x855   :  { %6941 = vsyncpa [#allocation9], 1 }
 0x856   :  { %6942 = vsyncpa [#allocation12], 1 }
 0x857   :  { %6943 = vsyncpa [#allocation15], 1 }
 0x858   :  { %6944 = vsyncpa [#allocation18], 1 }
 0x859   :  { %6945 = vsyncpa [#allocation4], 1 }

</bundles_post_ra>
